<compile_context>
chip_gen: v7x
topology: tpu7x:2x2x1
jax: 0.10.0
libtpu: 0.0.40
codegen_flags: <defaults>
</compile_context>

<pallas_src>
import jax
import jax.numpy as jnp
import numpy as np
from jax import lax
from jax.experimental import pallas as pl
from jax.experimental.pallas import tpu as pltpu

C_IN = 336      # channels of x185 / x191 / x192
C_MID = 84      # SE bottleneck channels
N, H, W = 1, 14, 14
BN_EPS = 1e-5


def _default_num_row_tiles():
    """1 grid step on single-TensorCore chips (v5e/v6e: grid overhead dominates);
    2 independent parallel row tiles on v7x (2 TensorCores per chip)."""
    try:
        kind = jax.devices()[0].device_kind.lower()
    except Exception:
        return 1
    return 2 if "7" in kind else 1


NUM_ROW_TILES = _default_num_row_tiles()


def fused_se_conv_bn_add_kernel(s_ref, x191_ref, x185_ref,
                                w1_ref, b1_ref, w2_ref, b2_ref, w3_ref,
                                o_ref):
    """Grid over output-channel row tiles of conv2d63 (each tile independent).

    s_ref    : [1, C]        pooled input (x192)
    x191_ref : [C, P]        features to gate (full, resident)
    x185_ref : [tc, P]       residual row tile
    w1_ref   : [Cmid, C]     conv2d61 weight, natural [out, in]
    b1_ref   : [1, Cmid]
    w2_ref   : [C, Cmid]     conv2d62 weight, natural [out, in]
    b2_ref   : [1, C]
    w3_ref   : [tc, C]       conv2d63 weight row tile, natural [out, in]
    o_ref    : [tc, P]       output row tile
    """
    # ---- SE gate (tiny, ~56K MACs): recomputed per tile so every grid step
    # is fully independent -> grid marked "parallel" (megacore split on v7x).
    h = lax.dot_general(s_ref[...], w1_ref[...],
                        (((1,), (1,)), ((), ())),
                        preferred_element_type=jnp.float32)          # [1, Cmid]
    h = jnp.maximum(h + b1_ref[...], 0.0)                            # ReLU
    g = lax.dot_general(h, w2_ref[...],
                        (((1,), (1,)), ((), ())),
                        preferred_element_type=jnp.float32)          # [1, C]
    g = jax.nn.sigmoid(g + b2_ref[...])                              # per-channel gate

    # ---- conv2d63 row tile: fold the gate into the W3 rows,
    #      z = (W3 * g) @ x191  ==  W3 @ (g * x191)  (no scratch needed)
    w3g = w3_ref[...] * g                                            # [tc, C]
    z = jnp.dot(w3g, x191_ref[...],
                preferred_element_type=jnp.float32)                  # [tc, P]

    # ---- training-mode BatchNorm (batch stats over P), single pass ----
    inv_p = 1.0 / z.shape[-1]
    mean = jnp.sum(z, axis=-1, keepdims=True) * inv_p                # [tc, 1]
    var = jnp.sum(z * z, axis=-1, keepdims=True) * inv_p - mean * mean
    var = jnp.maximum(var, 0.0)        # guard single-pass cancellation
    inv = lax.rsqrt(var + BN_EPS)      # gamma=1, beta=0 at init

    # ---- fused normalize + residual add ----
    o_ref[...] = x185_ref[...] + (z - mean) * inv


@jax.jit
def fused_module(x192, x191, x185, w1, b1, w2, b2, w3):
    """x192: [1, C, 1, 1], x191/x185: [1, C, H, W] (NCHW). Returns [1, C, H, W]."""
    n, c, hh, ww = x191.shape
    assert n == 1, "kernel assumes N == 1 (as in the module spec)"
    p = n * hh * ww

    # N == 1: NCHW -> [C, P] is a pure reshape (no transposes, no data movement).
    x191_cp = x191.reshape(c, p)
    x185_cp = x185.reshape(c, p)
    s_row = x192.reshape(1, c)

    # Conv weights stay in their natural [out, in] layouts (no wrapper transposes).
    w1_m = w1.reshape(C_MID, C_IN)     # [Cmid, C]
    w2_m = w2.reshape(C_IN, C_MID)     # [C, Cmid]
    w3_m = w3.reshape(C_IN, C_IN)      # [C, C]
    b1_r = b1.reshape(1, C_MID)
    b2_r = b2.reshape(1, C_IN)

    nt = NUM_ROW_TILES if c % (8 * NUM_ROW_TILES) == 0 else 1
    tc = c // nt

    # TODO(synk): BatchNorm running-mean/var (momentum) buffer updates are a
    # training-time side effect with no influence on the returned tensor; they
    # are not emitted here.
    out_cp = pl.pallas_call(
        fused_se_conv_bn_add_kernel,
        out_shape=jax.ShapeDtypeStruct((c, p), jnp.float32),
        grid_spec=pltpu.PrefetchScalarGridSpec(
            num_scalar_prefetch=0,
            grid=(nt,),
            in_specs=[
                pl.BlockSpec((1, c), lambda j: (0, 0)),        # s (pooled)
                pl.BlockSpec((c, p), lambda j: (0, 0)),        # x191, resident
                pl.BlockSpec((tc, p), lambda j: (j, 0)),       # x185 row tile
                pl.BlockSpec((C_MID, c), lambda j: (0, 0)),    # w1 [out,in]
                pl.BlockSpec((1, C_MID), lambda j: (0, 0)),    # b1
                pl.BlockSpec((c, C_MID), lambda j: (0, 0)),    # w2 [out,in]
                pl.BlockSpec((1, c), lambda j: (0, 0)),        # b2 (row form)
                pl.BlockSpec((tc, c), lambda j: (j, 0)),       # w3 row tile
            ],
            out_specs=pl.BlockSpec((tc, p), lambda j: (j, 0)),
        ),
        compiler_params=pltpu.CompilerParams(
            dimension_semantics=("parallel",)),                # tiles independent
    )(s_row, x191_cp, x185_cp, w1_m, b1_r, w2_m, b2_r, w3_m)

    # [C, P] -> NCHW (free reshape for N == 1)
    return out_cp.reshape(n, c, hh, ww)


def reference(x192, x191, x185, w1, b1, w2, b2, w3):
    """Pure-JAX reference mirroring the PyTorch forward (training-mode BN)."""
    s = x192.reshape(1, C_IN)
    h = jnp.maximum(s @ w1.reshape(C_MID, C_IN).T + b1[None, :], 0.0)
    g = jax.nn.sigmoid(h @ w2.reshape(C_IN, C_MID).T + b2[None, :])    # [1, C]
    gate = g.reshape(1, C_IN, 1, 1)
    scaled = x191 * gate
    z = jnp.einsum('nchw,oc->nohw', scaled, w3.reshape(C_IN, C_IN))
    mean = jnp.mean(z, axis=(0, 2, 3), keepdims=True)
    var = jnp.mean((z - mean) ** 2, axis=(0, 2, 3), keepdims=True)
    zn = (z - mean) / jnp.sqrt(var + BN_EPS)
    return x185 + zn


if __name__ == "__main__":
    key = jax.random.PRNGKey(0)
    k = jax.random.split(key, 8)

    # Inputs (shapes implied by the module's forward)
    x185 = jax.random.normal(k[0], (N, C_IN, H, W), dtype=jnp.float32)
    x191 = jax.random.normal(k[1], (N, C_IN, H, W), dtype=jnp.float32)
    x192 = jax.random.normal(k[2], (N, C_IN, 1, 1), dtype=jnp.float32)

    # Deterministic parameter init (shapes from module __init__)
    w1 = jax.random.normal(k[3], (C_MID, C_IN, 1, 1), dtype=jnp.float32) * 0.05
    b1 = jax.random.normal(k[4], (C_MID,), dtype=jnp.float32) * 0.05
    w2 = jax.random.normal(k[5], (C_IN, C_MID, 1, 1), dtype=jnp.float32) * 0.05
    b2 = jax.random.normal(k[6], (C_IN,), dtype=jnp.float32) * 0.05
    w3 = jax.random.normal(k[7], (C_IN, C_IN, 1, 1), dtype=jnp.float32) * 0.05
    # BatchNorm affine params are weight=1, bias=0 at init -> folded into kernel.

    out = fused_module(x192, x191, x185, w1, b1, w2, b2, w3)
    out = jax.block_until_ready(out)

    ref = reference(x192, x191, x185, w1, b1, w2, b2, w3)
    np.testing.assert_allclose(np.asarray(out), np.asarray(ref),
                               rtol=1e-4, atol=1e-4)
    assert out.shape == (N, C_IN, H, W) and out.dtype == jnp.float32

    print("KERNEL_OK")
</pallas_src>

<mosaic_0001>
module attributes {stable_mosaic.version = 11 : i64} {
  func.func @fused_se_conv_bn_add_kernel(%arg0: i32, %arg1: memref<1x336xf32, #tpu.memory_space<vmem>>, %arg2: memref<336x196xf32, #tpu.memory_space<vmem>>, %arg3: memref<336x196xf32, #tpu.memory_space<vmem>>, %arg4: memref<84x336xf32, #tpu.memory_space<vmem>>, %arg5: memref<1x84xf32, #tpu.memory_space<vmem>>, %arg6: memref<336x84xf32, #tpu.memory_space<vmem>>, %arg7: memref<1x336xf32, #tpu.memory_space<vmem>>, %arg8: memref<336x336xf32, #tpu.memory_space<vmem>>, %arg9: memref<336x196xf32, #tpu.memory_space<vmem>>) attributes {dimension_semantics = [#tpu.dimension_semantics<parallel>], iteration_bounds = array<i64: 1>, scalar_prefetch = 0 : i64, scratch_operands = 0 : i64, tpu.core_type = #tpu.core_type<tc>, window_params = [{pipeline_mode = #tpu.pipeline_mode<synchronous>, transform_indices = @transform_0, window_bounds = array<i64: 1, 336>}, {pipeline_mode = #tpu.pipeline_mode<synchronous>, transform_indices = @transform_1, window_bounds = array<i64: 336, 196>}, {transform_indices = @transform_2, window_bounds = array<i64: 336, 196>}, {pipeline_mode = #tpu.pipeline_mode<synchronous>, transform_indices = @transform_3, window_bounds = array<i64: 84, 336>}, {pipeline_mode = #tpu.pipeline_mode<synchronous>, transform_indices = @transform_4, window_bounds = array<i64: 1, 84>}, {pipeline_mode = #tpu.pipeline_mode<synchronous>, transform_indices = @transform_5, window_bounds = array<i64: 336, 84>}, {pipeline_mode = #tpu.pipeline_mode<synchronous>, transform_indices = @transform_6, window_bounds = array<i64: 1, 336>}, {transform_indices = @transform_7, window_bounds = array<i64: 336, 336>}, {transform_indices = @transform_8, window_bounds = array<i64: 336, 196>}]} {
    %c0 = arith.constant 0 : index
    %c0_0 = arith.constant 0 : index
    %0 = vector.load %arg1[%c0, %c0_0] : memref<1x336xf32, #tpu.memory_space<vmem>>, vector<1x336xf32>
    %c0_1 = arith.constant 0 : index
    %c0_2 = arith.constant 0 : index
    %1 = vector.load %arg4[%c0_1, %c0_2] : memref<84x336xf32, #tpu.memory_space<vmem>>, vector<84x336xf32>
    %cst = arith.constant dense<0.000000e+00> : vector<1x84xf32>
    %2 = tpu.matmul %0, %1, %cst {dimension_numbers = #tpu.dot_dimension_numbers<[1], [1], [0], [0], [0, 0, 1, 0], [], []>} : vector<1x336xf32>, vector<84x336xf32>, vector<1x84xf32> -> vector<1x84xf32>
    %c0_3 = arith.constant 0 : index
    %c0_4 = arith.constant 0 : index
    %3 = vector.load %arg5[%c0_3, %c0_4] : memref<1x84xf32, #tpu.memory_space<vmem>>, vector<1x84xf32>
    %4 = arith.addf %2, %3 : vector<1x84xf32>
    %cst_5 = arith.constant 0.000000e+00 : f32
    %5 = vector.broadcast %cst_5 : f32 to vector<1x84xf32>
    %6 = arith.maximumf %4, %5 : vector<1x84xf32>
    %c0_6 = arith.constant 0 : index
    %c0_7 = arith.constant 0 : index
    %7 = vector.load %arg6[%c0_6, %c0_7] : memref<336x84xf32, #tpu.memory_space<vmem>>, vector<336x84xf32>
    %cst_8 = arith.constant dense<0.000000e+00> : vector<1x336xf32>
    %8 = tpu.matmul %6, %7, %cst_8 {dimension_numbers = #tpu.dot_dimension_numbers<[1], [1], [0], [0], [0, 0, 1, 0], [], []>} : vector<1x84xf32>, vector<336x84xf32>, vector<1x336xf32> -> vector<1x336xf32>
    %c0_9 = arith.constant 0 : index
    %c0_10 = arith.constant 0 : index
    %9 = vector.load %arg7[%c0_9, %c0_10] : memref<1x336xf32, #tpu.memory_space<vmem>>, vector<1x336xf32>
    %10 = arith.addf %8, %9 : vector<1x336xf32>
    %11 = arith.negf %10 : vector<1x336xf32>
    %12 = math.exp %11 : vector<1x336xf32>
    %cst_11 = arith.constant 1.000000e+00 : f32
    %13 = vector.broadcast %cst_11 : f32 to vector<1x336xf32>
    %14 = arith.addf %13, %12 : vector<1x336xf32>
    %15 = arith.divf %13, %14 : vector<1x336xf32>
    %c0_12 = arith.constant 0 : index
    %c0_13 = arith.constant 0 : index
    %16 = vector.load %arg8[%c0_12, %c0_13] : memref<336x336xf32, #tpu.memory_space<vmem>>, vector<336x336xf32>
    %17 = vector.broadcast %15 : vector<1x336xf32> to vector<336x336xf32>
    %18 = arith.mulf %16, %17 : vector<336x336xf32>
    %c0_14 = arith.constant 0 : index
    %c0_15 = arith.constant 0 : index
    %19 = vector.load %arg2[%c0_14, %c0_15] : memref<336x196xf32, #tpu.memory_space<vmem>>, vector<336x196xf32>
    %cst_16 = arith.constant dense<0.000000e+00> : vector<336x196xf32>
    %20 = tpu.matmul %18, %19, %cst_16 {dimension_numbers = #tpu.dot_dimension_numbers<[1], [0], [0], [1], [0, 0, 1, 1], [], []>} : vector<336x336xf32>, vector<336x196xf32>, vector<336x196xf32> -> vector<336x196xf32>
    %cst_17 = arith.constant dense<0.000000e+00> : vector<336xf32>
    %21 = vector.multi_reduction <add>, %20, %cst_17 [1] : vector<336x196xf32> to vector<336xf32>
    %22 = vector.shape_cast %21 : vector<336xf32> to vector<336x1xf32>
    %cst_18 = arith.constant 0.00510204071 : f32
    %23 = vector.broadcast %cst_18 : f32 to vector<336x1xf32>
    %24 = arith.mulf %22, %23 : vector<336x1xf32>
    %25 = arith.mulf %20, %20 : vector<336x196xf32>
    %cst_19 = arith.constant dense<0.000000e+00> : vector<336xf32>
    %26 = vector.multi_reduction <add>, %25, %cst_19 [1] : vector<336x196xf32> to vector<336xf32>
    %27 = vector.shape_cast %26 : vector<336xf32> to vector<336x1xf32>
    %cst_20 = arith.constant 0.00510204071 : f32
    %28 = vector.broadcast %cst_20 : f32 to vector<336x1xf32>
    %29 = arith.mulf %27, %28 : vector<336x1xf32>
    %30 = arith.mulf %24, %24 : vector<336x1xf32>
    %31 = arith.subf %29, %30 : vector<336x1xf32>
    %cst_21 = arith.constant 0.000000e+00 : f32
    %32 = vector.broadcast %cst_21 : f32 to vector<336x1xf32>
    %33 = arith.maximumf %31, %32 : vector<336x1xf32>
    %cst_22 = arith.constant 9.99999974E-6 : f32
    %34 = vector.broadcast %cst_22 : f32 to vector<336x1xf32>
    %35 = arith.addf %33, %34 : vector<336x1xf32>
    %36 = math.rsqrt %35 : vector<336x1xf32>
    %c0_23 = arith.constant 0 : index
    %c0_24 = arith.constant 0 : index
    %37 = vector.load %arg3[%c0_23, %c0_24] : memref<336x196xf32, #tpu.memory_space<vmem>>, vector<336x196xf32>
    %38 = vector.broadcast %24 : vector<336x1xf32> to vector<336x196xf32>
    %39 = arith.subf %20, %38 : vector<336x196xf32>
    %40 = vector.broadcast %36 : vector<336x1xf32> to vector<336x196xf32>
    %41 = arith.mulf %39, %40 : vector<336x196xf32>
    %42 = arith.addf %37, %41 : vector<336x196xf32>
    %c0_25 = arith.constant 0 : index
    %c0_26 = arith.constant 0 : index
    %43 = vector.load %arg9[%c0_25, %c0_26] : memref<336x196xf32, #tpu.memory_space<vmem>>, vector<336x196xf32>
    tpu.vector_store %arg9[%c0_25, %c0_26], %42 {strides = array<i32>} : memref<336x196xf32, #tpu.memory_space<vmem>>, vector<336x196xf32>,
    return
  }
  func.func @transform_0(%arg0: i32) -> (i32, i32) {
    %c0_i32 = arith.constant 0 : i32
    %c0_i32_0 = arith.constant 0 : i32
    %c0_i32_1 = arith.constant 0 : i32
    return %c0_i32, %c0_i32_0 : i32, i32
  }
  func.func @transform_1(%arg0: i32) -> (i32, i32) {
    %c0_i32 = arith.constant 0 : i32
    %c0_i32_0 = arith.constant 0 : i32
    %c0_i32_1 = arith.constant 0 : i32
    return %c0_i32, %c0_i32_0 : i32, i32
  }
  func.func @transform_2(%arg0: i32) -> (i32, i32) {
    %c0_i32 = arith.constant 0 : i32
    %c0_i32_0 = arith.constant 0 : i32
    return %arg0, %c0_i32 : i32, i32
  }
  func.func @transform_3(%arg0: i32) -> (i32, i32) {
    %c0_i32 = arith.constant 0 : i32
    %c0_i32_0 = arith.constant 0 : i32
    %c0_i32_1 = arith.constant 0 : i32
    return %c0_i32, %c0_i32_0 : i32, i32
  }
  func.func @transform_4(%arg0: i32) -> (i32, i32) {
    %c0_i32 = arith.constant 0 : i32
    %c0_i32_0 = arith.constant 0 : i32
    %c0_i32_1 = arith.constant 0 : i32
    return %c0_i32, %c0_i32_0 : i32, i32
  }
  func.func @transform_5(%arg0: i32) -> (i32, i32) {
    %c0_i32 = arith.constant 0 : i32
    %c0_i32_0 = arith.constant 0 : i32
    %c0_i32_1 = arith.constant 0 : i32
    return %c0_i32, %c0_i32_0 : i32, i32
  }
  func.func @transform_6(%arg0: i32) -> (i32, i32) {
    %c0_i32 = arith.constant 0 : i32
    %c0_i32_0 = arith.constant 0 : i32
    %c0_i32_1 = arith.constant 0 : i32
    return %c0_i32, %c0_i32_0 : i32, i32
  }
  func.func @transform_7(%arg0: i32) -> (i32, i32) {
    %c0_i32 = arith.constant 0 : i32
    %c0_i32_0 = arith.constant 0 : i32
    return %arg0, %c0_i32 : i32, i32
  }
  func.func @transform_8(%arg0: i32) -> (i32, i32) {
    %c0_i32 = arith.constant 0 : i32
    %c0_i32_0 = arith.constant 0 : i32
    return %arg0, %c0_i32 : i32, i32
  }
}

</mosaic_0001>

<bundles_post_ra>
// kernel: fused_module.1
= control target key start
LH: loop header
LB: loop body
LE: loop exit
PB: predicated region body
PF: predicated region fallthrough
CT: control target
= control target key end

     0   :  { %v65_v0 = vlaneseq  ;;  %vm315_vm0 = vcmask 687104   ;;  %vm79_vm2 = vcmask 654336   ;;  %vm3436_vm4 = vmmov 0   ;;  %s6556_s3 = inlined_call_operand.vmem [shape: f32[84,336], index: 3, kind: input, shape index: {}]   ;;  %s6557_s0 = inlined_call_operand.vmem [shape: f32[1,336], index: 0, kind: input, shape index: {}]   ;;  %s6558_s5 = inlined_call_operand.vmem [shape: f32[336,84], index: 5, kind: input, shape index: {}]   ;;  %s6559_s1 = inlined_call_operand.vmem [shape: f32[336,196], index: 1, kind: input, shape index: {}]   ;;  %s6560_s4 = inlined_call_operand.vmem [shape: f32[1,84], index: 4, kind: input, shape index: {}]   ;;  %s6561_s6 = inlined_call_operand.vmem [shape: f32[1,336], index: 6, kind: input, shape index: {}]   ;;  %s6562_s7 = inlined_call_operand.vmem [shape: f32[336,336], index: 7, kind: input, shape index: {}]   ;;  %s6563_s2 = inlined_call_operand.vmem [shape: f32[336,196], index: 2, kind: input, shape index: {}]   ;;  %s6564_s8 = inlined_call_operand.vmem [shape: f32[336,196], index: 8, kind: output, shape index: {}]  }
   0x1   :  { %v31_v1 = vld [vmem:[%s6556_s3 + $0x8] sm:$0xff]  ;;  %v34_v2 = vld [vmem:[%s6556_s3 + $0x20] sm:$0xff]  ;;  %v33_v5 = vld [vmem:[%s6556_s3 + $0x18] sm:$0xff]  ;;  %vm1712_vm5 = vcmask 556032  }
   0x2   :  { %v30_v3 = vld [vmem:[%s6556_s3] sm:$0xff]  ;;  %v3057_v4 = vpack.c.bf16 %v34_v2, %v31_v1  ;;  %v37_v6 = vld [vmem:[%s6556_s3 + $0x38] sm:$0xff]  ;;  %v40_v7 = vld [vmem:[%s6556_s3 + $0x50] sm:$0xff]  ;;  %v3501_v8 = vshrl.u32 %v65_v0, 7 }
   0x3   :  { %v3059_v9 = vpack.c.bf16 %v33_v5, %v30_v3  ;;  %v3061_v10 = vpack.c.bf16 %v40_v7, %v37_v6  ;;  %v36_v12 = vld [vmem:[%s6556_s3 + $0x30] sm:$0xff]  ;;  %v39_v13 = vld [vmem:[%s6556_s3 + $0x48] sm:$0xff]  ;;  %v46_v15 = vld [vmem:[%s6556_s3 + $0x80] sm:$0xff] }
   0x4   :  { %3058 = vmatprep.subr.bf16.mxu0 %v3057_v4  ;;  %v71_v11 = vsub.s32 1, %v3501_v8  ;;  %v43_v14 = vld [vmem:[%s6556_s3 + $0x68] sm:$0xff]  ;;  %v3519_v16 = vld [vmem:[%s6557_s0] sm:$0x7]  ;;  %v3063_v17 = vpack.c.bf16 %v39_v13, %v36_v12  ;;  %v45_v21 = vld [vmem:[%s6556_s3 + $0x78] sm:$0xff]  ;;  %v3632_v0 = vsub.s32 0, %v3501_v8 }
   0x5   :  { %3060 = vmatpush1.bf16.xpose.msra.mxu0 %v3059_v9  ;;  %v3065_v19 = vpack.c.bf16 %v46_v15, %v43_v14  ;;  %v42_v20 = vld [vmem:[%s6556_s3 + $0x60] sm:$0xff]  ;;  %v273_v23 = vld [vmem:[%s6558_s5 + $0x88] sm:$0xff]  ;;  %vm3538_vm1 = vmpackc.low %vm315_vm0, %vm315_vm0  ;;  %v3435_v12 = vmov 0.0|0.0  }
   0x6   :  { %3062 = vmatprep.subr.bf16.mxu0 %v3061_v10  ;;  %v72_v18 = vrot.slane %v3519_v16, %v71_v11  ;;  %v272_v22 = vld [vmem:[%s6558_s5 + $0x80] sm:$0xff]  ;;  %v257_v27 = vld [vmem:[%s6558_s5 + $0x8] sm:$0xff]  ;;  %v274_v28 = vld [vmem:[%s6558_s5 + $0x90] sm:$0xff]  ;;  %v3067_v34 = vpack.c.bf16 %v45_v21, %v42_v20  ;;  %v68_v6 = vrot.slane %v3519_v16, %v3632_v0 }
   0x7   :  { %v256_v25 = vld [vmem:[%s6558_s5] sm:$0xff]  ;;  %v3097_v26 = vpack.c.bf16 %v273_v23, %v272_v22  ;;  %v275_v29 = vld [vmem:[%s6558_s5 + $0x98] sm:$0xff]  ;;  %v52_v31 = vld [vmem:[%s6556_s3 + $0xb0] sm:$0xff] }
   0x8   :  { %179 = vmatprep.mubr.f32.mxu0 %v72_v18  ;;  %v49_v30 = vld [vmem:[%s6556_s3 + $0x98] sm:$0xff]  ;;  %v3100_v32 = vpack.c.bf16 %v257_v27, %v256_v25  ;;  %v3103_v33 = vpack.c.bf16 %v275_v29, %v274_v28  ;;  %v258_v36 = vld [vmem:[%s6558_s5 + $0x10] sm:$0xff]  ;;  %v276_v38 = vld [vmem:[%s6558_s5 + $0xa0] sm:$0xff] }
   0x9   :  { %3099 = vmatprep.subr.msk.bf16.mxu1 %vm3538_vm1, %v3097_v26  ;;  %v3069_v35 = vpack.c.bf16 %v52_v31, %v49_v30  ;;  %v259_v37 = vld [vmem:[%s6558_s5 + $0x18] sm:$0xff]  ;;  %v277_v39 = vld [vmem:[%s6558_s5 + $0xa8] sm:$0xff]  ;;  %v48_v41 = vld [vmem:[%s6556_s3 + $0x90] sm:$0xff] }
   0xa   :  { %3102 = vmatpush3.bf16.xpose.msk.msra.mxu1 %vm3538_vm1, %v3100_v32  ;;  %v3106_v40 = vpack.c.bf16 %v259_v37, %v258_v36  ;;  %v51_v42 = vld [vmem:[%s6556_s3 + $0xa8] sm:$0xff]  ;;  %v3109_v43 = vpack.c.bf16 %v277_v39, %v276_v38  ;;  %v58_v45 = vld [vmem:[%s6556_s3 + $0xe0] sm:$0xff]  ;;  %v278_v50 = vld [vmem:[%s6558_s5 + $0xb0] sm:$0xff] }
   0xb   :  { %3105 = vmatprep.subr.msk.bf16.mxu1 %vm3538_vm1, %v3103_v33  ;;  %v55_v44 = vld [vmem:[%s6556_s3 + $0xc8] sm:$0xff]  ;;  %v3071_v46 = vpack.c.bf16 %v51_v42, %v48_v41  ;;  %v260_v48 = vld [vmem:[%s6558_s5 + $0x20] sm:$0xff]  ;;  %v279_v51 = vld [vmem:[%s6558_s5 + $0xb8] sm:$0xff] }
   0xc   :  { %v3073_v47 = vpack.c.bf16 %v58_v45, %v55_v44  ;;  %v261_v49 = vld [vmem:[%s6558_s5 + $0x28] sm:$0xff]  ;;  %v54_v53 = vld [vmem:[%s6556_s3 + $0xc0] sm:$0xff]  ;;  %v57_v54 = vld [vmem:[%s6556_s3 + $0xd8] sm:$0xff]  ;;  %v3115_v55 = vpack.c.bf16 %v279_v51, %v278_v50 }
   0xd   :  { %3064 = vmatpush1.bf16.xpose.msra.mxu0 %v3063_v17  ;;  %v3112_v52 = vpack.c.bf16 %v261_v49, %v260_v48  ;;  %v3075_v56 = vpack.c.bf16 %v57_v54, %v54_v53  ;;  %v262_v57 = vld [vmem:[%s6558_s5 + $0x30] sm:$0xff]  ;;  %v263_v58 = vld [vmem:[%s6558_s5 + $0x38] sm:$0xff]  ;;  %v280_v60 = vld [vmem:[%s6558_s5 + $0xc0] sm:$0xff]  ;;  %v6565_v17 = vmov 0.0  }
   0xe   :  { %3066 = vmatprep.subr.bf16.mxu0 %v3065_v19  ;;  %v61_v59 = vld [vmem:[%s6556_s3 + $0xf8] sm:$0xf]  ;;  %v281_v61 = vld [vmem:[%s6558_s5 + $0xc8] sm:$0xff]  ;;  %v3118_v62 = vpack.c.bf16 %v263_v58, %v262_v57  ;;  %v60_v1 = vld [vmem:[%s6556_s3 + $0xf0] sm:$0xf] }
   0xf   :  { %v3121_v63 = vpack.c.bf16 %v281_v61, %v280_v60  ;;  %v32_v2 = vld [vmem:[%s6556_s3 + $0x10] sm:$0xff]  ;;  %v35_v3 = vld [vmem:[%s6556_s3 + $0x28] sm:$0xff]  ;;  %v264_v4 = vld [vmem:[%s6558_s5 + $0x40] sm:$0xff] }
  0x10   :  { %v265_v5 = vld [vmem:[%s6558_s5 + $0x48] sm:$0xff]  ;;  %v282_v7 = vld [vmem:[%s6558_s5 + $0xd0] sm:$0xff]  ;;  %v283_v9 = vld [vmem:[%s6558_s5 + $0xd8] sm:$0xff]  ;;  %v3078_v10 = vpack.c.bf16 %v35_v3, %v32_v2 }
  0x11   :  { %vm3664_vm3 = vmpackc.low %vm79_vm2, %vm79_vm2  ;;  %v3124_v14 = vpack.c.bf16 %v265_v5, %v264_v4  ;;  %v3127_v15 = vpack.c.bf16 %v283_v9, %v282_v7  ;;  %v38_v18 = vld [vmem:[%s6556_s3 + $0x40] sm:$0xff]  ;;  %v41_v19 = vld [vmem:[%s6556_s3 + $0x58] sm:$0xff] }
  0x12   :  { %3108 = vmatpush3.bf16.xpose.msk.msra.mxu1 %vm3538_vm1, %v3106_v40  ;;  %v266_v20 = vld [vmem:[%s6558_s5 + $0x50] sm:$0xff]  ;;  %v267_v21 = vld [vmem:[%s6558_s5 + $0x58] sm:$0xff]  ;;  %v284_v22 = vld [vmem:[%s6558_s5 + $0xe0] sm:$0xff]  ;;  %v3082_v25 = vpack.c.bf16 %v41_v19, %v38_v18 }
  0x13   :  { %3111 = vmatprep.subr.msk.bf16.mxu1 %vm3538_vm1, %v3109_v43  ;;  %v285_v23 = vld [vmem:[%s6558_s5 + $0xe8] sm:$0xff]  ;;  %v3130_v26 = vpack.c.bf16 %v267_v21, %v266_v20  ;;  %v44_v28 = vld [vmem:[%s6556_s3 + $0x70] sm:$0xff]  ;;  %v268_v30 = vld [vmem:[%s6558_s5 + $0x60] sm:$0xff] }
  0x14   :  { %v3133_v27 = vpack.c.bf16 %v285_v23, %v284_v22  ;;  %v47_v29 = vld [vmem:[%s6556_s3 + $0x88] sm:$0xff]  ;;  %v286_v32 = vld [vmem:[%s6558_s5 + $0xf0] sm:$0xff]  ;;  %v287_v33 = vld [vmem:[%s6558_s5 + $0xf8] sm:$0xff] }
  0x15   :  { %3068 = vmatpush1.bf16.xpose.msra.mxu0 %v3067_v34  ;;  %v269_v31 = vld [vmem:[%s6558_s5 + $0x68] sm:$0xff]  ;;  %v3086_v34 = vpack.c.bf16 %v47_v29, %v44_v28  ;;  %v3139_v36 = vpack.c.bf16 %v287_v33, %v286_v32  ;;  %v50_v37 = vld [vmem:[%s6556_s3 + $0xa0] sm:$0xff]  ;;  %v53_v38 = vld [vmem:[%s6556_s3 + $0xb8] sm:$0xff] }
  0x16   :  { %3070 = vmatprep.subr.bf16.mxu0 %v3069_v35  ;;  %v3136_v35 = vpack.c.bf16 %v269_v31, %v268_v30  ;;  %v270_v39 = vld [vmem:[%s6558_s5 + $0x70] sm:$0xff]  ;;  %v271_v40 = vld [vmem:[%s6558_s5 + $0x78] sm:$0xff]  ;;  %v3090_v41 = vpack.c.bf16 %v53_v38, %v50_v37  ;;  %v59_v44 = vld [vmem:[%s6556_s3 + $0xe8] sm:$0xff] }
  0x17   :  { %v3142_v42 = vpack.c.bf16 %v271_v40, %v270_v39  ;;  %v56_v43 = vld [vmem:[%s6556_s3 + $0xd0] sm:$0xff]  ;;  %v869_v49 = vld [vmem:[%s6559_s1 + $0x8] sm:$0xff]  ;;  %v871_v50 = vld [vmem:[%s6559_s1 + $0x18] sm:$0xff] }
  0x18   :  { %v3094_v45 = vpack.c.bf16 %v59_v44, %v56_v43  ;;  %v868_v51 = vld [vmem:[%s6559_s1] sm:$0xff]  ;;  %v873_v53 = vld [vmem:[%s6559_s1 + $0x28] sm:$0xff]  ;;  %v875_v54 = vld [vmem:[%s6559_s1 + $0x38] sm:$0xff] }
  0x19   :  { %v872_v57 = vld [vmem:[%s6559_s1 + $0x20] sm:$0xff]  ;;  %v874_v58 = vld [vmem:[%s6559_s1 + $0x30] sm:$0xff]  ;;  %v879_v60 = vld [vmem:[%s6559_s1 + $0x58] sm:$0xff] }
  0x1a   :  { %3114 = vmatpush3.bf16.xpose.msk.msra.mxu1 %vm3538_vm1, %v3112_v52  ;;  %v3165_v52 = vpack.c.bf16 %v871_v50, %v869_v49  ;;  %v3171_v61 = vpack.c.bf16 %v874_v58, %v872_v57  ;;  %v881_v2 = vld [vmem:[%s6559_s1 + $0x68] sm:$0xff]  ;;  %v883_v3 = vld [vmem:[%s6559_s1 + $0x78] sm:$0xff]  ;;  %v882_v7 = vld [vmem:[%s6559_s1 + $0x70] sm:$0xff] }
  0x1b   :  { %3117 = vmatprep.subr.msk.bf16.mxu1 %vm3538_vm1, %v3115_v55  ;;  %v3177_v5 = vpack.c.bf16 %v883_v3, %v881_v2  ;;  %v885_v9 = vld [vmem:[%s6559_s1 + $0x88] sm:$0xff]  ;;  %v886_v18 = vld [vmem:[%s6559_s1 + $0x90] sm:$0xff]  ;;  %v891_v20 = vld [vmem:[%s6559_s1 + $0xb8] sm:$0xff] }
  0x1c   :  { %v889_v19 = vld [vmem:[%s6559_s1 + $0xa8] sm:$0xff]  ;;  %v888_v23 = vld [vmem:[%s6559_s1 + $0xa0] sm:$0xff]  ;;  %v894_v31 = vld [vmem:[%s6559_s1 + $0xd0] sm:$0xff] }
  0x1d   :  { %3072 = vmatpush1.bf16.xpose.msra.mxu0 %v3071_v46  ;;  %v75_v46 = vsub.s32 2, %v3501_v8  ;;  %v3185_v22 = vpack.c.bf16 %v891_v20, %v889_v19  ;;  %v892_v30 = vld [vmem:[%s6559_s1 + $0xc0] sm:$0xff]  ;;  %v897_v32 = vld [vmem:[%s6559_s1 + $0xe8] sm:$0xff]  ;;  %v899_v33 = vld [vmem:[%s6559_s1 + $0xf8] sm:$0xff] }
  0x1e   :  { %3074 = vmatprep.subr.bf16.mxu0 %v3073_v47  ;;  %v62_v47 = vld [vmem:[%s6556_s3 + $0x100] sm:$0xf]  ;;  %v289_v39 = vld [vmem:[%s6558_s5 + $0x108] sm:$0xff]  ;;  %v290_v44 = vld [vmem:[%s6558_s5 + $0x110] sm:$0xff] }
  0x1f   :  { %v76_v48 = vrot.slane %v3519_v16, %v75_v46  ;;  %v870_v16 = vld [vmem:[%s6559_s1 + $0x10] sm:$0xff]  ;;  %v288_v38 = vld [vmem:[%s6558_s5 + $0x100] sm:$0xff]  ;;  %v293_v49 = vld [vmem:[%s6558_s5 + $0x128] sm:$0xff] }
  0x20   :  { %v3167_v55 = vpack.c.bf16 %v870_v16, %v868_v51  ;;  %v3146_v43 = vpack.c.bf16 %v289_v39, %v288_v38  ;;  %v294_v51 = vld [vmem:[%s6558_s5 + $0x130] sm:$0xff]  ;;  %v901_v58 = vld [vmem:[%s6559_s1 + $0x108] sm:$0xff]  ;;  %v903_v24 = vld [vmem:[%s6559_s1 + $0x118] sm:$0xff] }
  0x21   :  { %v904_v3 = vld [vmem:[%s6559_s1 + $0x120] sm:$0xff]  ;;  %v670_v8 = vld [vmem:[%s6562_s7 + $0x210] sm:$0xff] }
  0x22   :  { %3120 = vmatpush3.bf16.xpose.msk.msra.mxu1 %vm3538_vm1, %v3118_v62  ;;  %v912_v20 = vld [vmem:[%s6559_s1 + $0x160] sm:$0xff] }
  0x23   :  { %3123 = vmatprep.subr.msk.bf16.mxu1 %vm3538_vm1, %v3121_v63  ;;  %v876_v63 = vld [vmem:[%s6559_s1 + $0x40] sm:$0xff] }
  0x24   :  { %v924_v39 = vld [vmem:[%s6559_s1 + $0x1c0] sm:$0xff] }
  0x25   :  { %3076 = vmatpush1.bf16.xpose.msra.mxu0 %v3075_v56  ;;  %v3169_v56 = vpack.c.bf16 %v875_v54, %v873_v53  ;;  %v296_v53 = vld [vmem:[%s6558_s5 + $0x140] sm:$0xff]  ;;  %v297_v54 = vld [vmem:[%s6558_s5 + $0x148] sm:$0xff] }
  0x26   :  { %135 = vmatprep.subr.mxu0 %v61_v59  ;;  %v877_v59 = vld [vmem:[%s6559_s1 + $0x48] sm:$0xff] }
  0x27   :  { %v3173_v62 = vpack.c.bf16 %v879_v60, %v877_v59  ;;  %v3197_v59 = vpack.c.bf16 %v903_v24, %v901_v58  ;;  %v900_v60 = vld [vmem:[%s6559_s1 + $0x100] sm:$0xff]  ;;  %v941_v24 = vld [vmem:[%s6559_s1 + $0x248] sm:$0xff] }
  0x2a   :  { %3126 = vmatpush3.bf16.xpose.msk.msra.mxu1 %vm3538_vm1, %v3124_v14 }
  0x2b   :  { %3129 = vmatprep.subr.msk.bf16.mxu1 %vm3538_vm1, %v3127_v15  ;;  %v884_v15 = vld [vmem:[%s6559_s1 + $0x80] sm:$0xff] }
  0x2c   :  { %v3183_v21 = vpack.c.bf16 %v886_v18, %v884_v15  ;;  %v913_v15 = vld [vmem:[%s6559_s1 + $0x168] sm:$0xff]  ;;  %v915_v18 = vld [vmem:[%s6559_s1 + $0x178] sm:$0xff] }
  0x2d   :  { %136 = vmatpush1.xpose.msra.mxu0 %v60_v1  ;;  %v878_v1 = vld [vmem:[%s6559_s1 + $0x50] sm:$0xff]  ;;  %v3209_v19 = vpack.c.bf16 %v915_v18, %v913_v15  ;;  %v298_v18 = vld [vmem:[%s6561_s6] sm:$0x7] }
  0x2e   :  { %3077 = vmatprep.subr.bf16.mxu0 %v3435_v12  ;;  %v3175_v4 = vpack.c.bf16 %v878_v1, %v876_v63  ;;  %v905_v63 = vld [vmem:[%s6559_s1 + $0x128] sm:$0xff]  ;;  %v907_v1 = vld [vmem:[%s6559_s1 + $0x138] sm:$0xff] }
  0x2f   :  { %v3201_v2 = vpack.c.bf16 %v907_v1, %v905_v63  ;;  %v945_v1 = vld [vmem:[%s6559_s1 + $0x268] sm:$0xff] }
  0x30   :  { %180 = vmatmul.mubr.f32.vlgmr.msra.gmra.mrb[0].mxu0 %v68_v6  ;;  %v880_v6 = vld [vmem:[%s6559_s1 + $0x60] sm:$0xff] }
  0x31   :  { %3080 = vmatpush3.bf16.xpose.msk.msra.mxu0 %vm3664_vm3, %v3078_v10  ;;  %3031 = vmatprep.mubr.msk.f32.mxu0 %vm3436_vm4, %v6565_v17  ;;  %v887_v10 = vld [vmem:[%s6559_s1 + $0x98] sm:$0xff]  ;;  %v3179_v13 = vpack.c.bf16 %v882_v7, %v880_v6  ;;  %v909_v6 = vld [vmem:[%s6559_s1 + $0x148] sm:$0xff] }
  0x32   :  { %3081 = vmatprep.subr.bf16.mxu0 %v3435_v12  ;;  %3132 = vmatpush3.bf16.xpose.msk.msra.mxu1 %vm3538_vm1, %v3130_v26  ;;  %v3181_v14 = vpack.c.bf16 %v887_v10, %v885_v9  ;;  %v893_v26 = vld [vmem:[%s6559_s1 + $0xc8] sm:$0xff]  ;;  %v911_v7 = vld [vmem:[%s6559_s1 + $0x158] sm:$0xff]  ;;  %v908_v10 = vld [vmem:[%s6559_s1 + $0x140] sm:$0xff] }
  0x33   :  { %3135 = vmatprep.subr.msk.bf16.mxu1 %vm3538_vm1, %v3133_v27  ;;  %v895_v27 = vld [vmem:[%s6559_s1 + $0xd8] sm:$0xff]  ;;  %v3205_v9 = vpack.c.bf16 %v911_v7, %v909_v6  ;;  %v949_v7 = vld [vmem:[%s6559_s1 + $0x288] sm:$0xff] }
  0x34   :  { %v3189_v29 = vpack.c.bf16 %v895_v27, %v893_v26  ;;  %v916_v27 = vld [vmem:[%s6559_s1 + $0x180] sm:$0xff] }
  0x39   :  { %3084 = vmatpush3.bf16.xpose.msk.msra.mxu0 %vm3664_vm3, %v3082_v25  ;;  %v890_v25 = vld [vmem:[%s6559_s1 + $0xb0] sm:$0xff] }
  0x3a   :  { %3085 = vmatprep.subr.bf16.mxu0 %v3435_v12  ;;  %3138 = vmatpush3.bf16.xpose.msk.msra.mxu1 %vm3538_vm1, %v3136_v35  ;;  %v3187_v28 = vpack.c.bf16 %v890_v25, %v888_v23  ;;  %v3193_v35 = vpack.c.bf16 %v899_v33, %v897_v32  ;;  %v917_v23 = vld [vmem:[%s6559_s1 + $0x188] sm:$0xff]  ;;  %v919_v25 = vld [vmem:[%s6559_s1 + $0x198] sm:$0xff]  ;;  %v920_v33 = vld [vmem:[%s6559_s1 + $0x1a0] sm:$0xff] }
  0x3b   :  { %3141 = vmatprep.subr.msk.bf16.mxu1 %vm3538_vm1, %v3139_v36  ;;  %v63_v36 = vld [vmem:[%s6560_s4] sm:$0x1]  ;;  %v3213_v26 = vpack.c.bf16 %v919_v25, %v917_v23 }
  0x41   :  { %3088 = vmatpush3.bf16.xpose.msk.msra.mxu0 %vm3664_vm3, %v3086_v34  ;;  %v3191_v34 = vpack.c.bf16 %v894_v31, %v892_v30  ;;  %v921_v30 = vld [vmem:[%s6559_s1 + $0x1a8] sm:$0xff]  ;;  %v923_v31 = vld [vmem:[%s6559_s1 + $0x1b8] sm:$0xff] }
  0x42   :  { %3089 = vmatprep.subr.bf16.mxu0 %v3435_v12  ;;  %3144 = vmatpush3.bf16.xpose.msk.msra.mxu1 %vm3538_vm1, %v3142_v42  ;;  %v3217_v32 = vpack.c.bf16 %v923_v31, %v921_v30 }
  0x43   :  { %3145 = vmatprep.subr.bf16.mxu1 %v3435_v12 }
  0x49   :  { %3092 = vmatpush3.bf16.xpose.msk.msra.mxu0 %vm3664_vm3, %v3090_v41 }
  0x4a   :  { %3093 = vmatprep.subr.bf16.mxu0 %v3435_v12 }
  0x51   :  { %3096 = vmatpush3.bf16.xpose.msk.msra.mxu0 %vm3664_vm3, %v3094_v45  ;;  %v291_v45 = vld [vmem:[%s6558_s5 + $0x118] sm:$0xff] }
  0x52   :  { %3029 = vmatprep.subr.mxu0 %v6565_v17 }
  0x59   :  { %3030 = vmatpush3.xpose.msk.msra.mxu0 %vm79_vm2, %v62_v47  ;;  %v3150_v47 = vpack.c.bf16 %v291_v45, %v290_v44  ;;  %v928_v45 = vld [vmem:[%s6559_s1 + $0x1e0] sm:$0xff] }
  0x5a   :  { %3166 = vmatprep.subr.bf16.mxu0 %v3165_v52  ;;  %v295_v52 = vld [vmem:[%s6558_s5 + $0x138] sm:$0xff] }
  0x5b   :  { %v3158_v16 = vpack.c.bf16 %v295_v52, %v294_v51  ;;  %v932_v52 = vld [vmem:[%s6559_s1 + $0x200] sm:$0xff] }
  0x5c   :  { %3032 = vmatmul.mubr.msk.f32.vlgmr.msra.gmra.mrb[0].mxu0 %vm79_vm2, %v76_v48  ;;  %v292_v48 = vld [vmem:[%s6558_s5 + $0x120] sm:$0xff] }
  0x5d   :  { %3168 = vmatpush1.bf16.msra.mxu0 %v3167_v55  ;;  %v3154_v50 = vpack.c.bf16 %v293_v49, %v292_v48  ;;  %v3162_v55 = vpack.c.bf16 %v297_v54, %v296_v53  ;;  %v933_v49 = vld [vmem:[%s6559_s1 + $0x208] sm:$0xff] }
  0x5e   :  { %3170 = vmatprep.subr.bf16.mxu0 %v3169_v56  ;;  %v898_v56 = vld [vmem:[%s6559_s1 + $0xf0] sm:$0xff]  ;;  %v937_v54 = vld [vmem:[%s6559_s1 + $0x228] sm:$0xff] }
  0x61   :  { %3172 = vmatpush1.bf16.msra.mxu0 %v3171_v61  ;;  %v902_v61 = vld [vmem:[%s6559_s1 + $0x110] sm:$0xff] }
  0x62   :  { %3174 = vmatprep.subr.bf16.mxu0 %v3173_v62  ;;  %v3199_v62 = vpack.c.bf16 %v902_v61, %v900_v60  ;;  %v940_v61 = vld [vmem:[%s6559_s1 + $0x240] sm:$0xff] }
  0x65   :  { %3176 = vmatpush1.bf16.msra.mxu0 %v3175_v4  ;;  %v906_v4 = vld [vmem:[%s6559_s1 + $0x130] sm:$0xff] }
  0x66   :  { %3178 = vmatprep.subr.bf16.mxu0 %v3177_v5  ;;  %v3203_v5 = vpack.c.bf16 %v906_v4, %v904_v3  ;;  %v944_v4 = vld [vmem:[%s6559_s1 + $0x260] sm:$0xff] }
  0x69   :  { %3180 = vmatpush1.bf16.msra.mxu0 %v3179_v13  ;;  %v910_v13 = vld [vmem:[%s6559_s1 + $0x150] sm:$0xff] }
  0x6a   :  { %3182 = vmatprep.subr.bf16.mxu0 %v3181_v14  ;;  %v3207_v14 = vpack.c.bf16 %v910_v13, %v908_v10  ;;  %v948_v10 = vld [vmem:[%s6559_s1 + $0x280] sm:$0xff] }
  0x6d   :  { %3184 = vmatpush1.bf16.msra.mxu0 %v3183_v21  ;;  %v914_v21 = vld [vmem:[%s6559_s1 + $0x170] sm:$0xff] }
  0x6e   :  { %3186 = vmatprep.subr.bf16.mxu0 %v3185_v22  ;;  %v3211_v22 = vpack.c.bf16 %v914_v21, %v912_v20  ;;  %v307_v20 = vrot.slane %v298_v18, %v71_v11  ;;  %v605_v11 = vld [vmem:[%s6562_s7 + $0x8] sm:$0xff] }
  0x71   :  { %3188 = vmatpush1.bf16.msra.mxu0 %v3187_v28  ;;  %v918_v28 = vld [vmem:[%s6559_s1 + $0x190] sm:$0xff] }
  0x72   :  { %3190 = vmatprep.subr.bf16.mxu0 %v3189_v29  ;;  %v3215_v29 = vpack.c.bf16 %v918_v28, %v916_v27 }
  0x75   :  { %3192 = vmatpush1.bf16.msra.mxu0 %v3191_v34  ;;  %v922_v34 = vld [vmem:[%s6559_s1 + $0x1b0] sm:$0xff] }
  0x76   :  { %3194 = vmatprep.subr.bf16.mxu0 %v3193_v35  ;;  %v3219_v35 = vpack.c.bf16 %v922_v34, %v920_v33 }
 0x12f   :  { %v251_v37 = vpop.f32.mrb[0].mxu0 }
 0x130   :  { %v3249_v40 = vadd.f32 %v251_v37, %v63_v36  ;;  %v3033_v41 = vpop.f32.mrb[1].mxu0  ;;  %v925_v36 = vld [vmem:[%s6559_s1 + $0x1c8] sm:$0xff]  ;;  %v927_v37 = vld [vmem:[%s6559_s1 + $0x1d8] sm:$0xff] }
 0x131   :  { %v3221_v38 = vpack.c.bf16 %v927_v37, %v925_v36  ;;  %v604_v36 = vld [vmem:[%s6562_s7] sm:$0xff] }
 0x132   :  { %v255_v42 = vmax.f32 %v3249_v40, 0.0  ;;  %v926_v40 = vld [vmem:[%s6559_s1 + $0x1d0] sm:$0xff]  ;;  %v608_v37 = vld [vmem:[%s6562_s7 + $0x20] sm:$0xff] }
 0x133   :  { %v3223_v41 = vpack.c.bf16 %v926_v40, %v924_v39  ;;  %v607_v39 = vld [vmem:[%s6562_s7 + $0x18] sm:$0xff]  ;;  %v610_v40 = vld [vmem:[%s6562_s7 + $0x30] sm:$0xff] }
 0x134   :  { %2996 = vmatprep.mubr.msk.f32.mxu1 %vm315_vm0, %v255_v42 }
 0x135   :  { %2997 = vmatmul.mubr.msk.f32.vlgmr.msra.gmra.mrb[0].mxu1 %vm315_vm0, %v255_v42 }
 0x136   :  { %3148 = vmatpush3.bf16.xpose.msk.msra.mxu1 %vm3538_vm1, %v3146_v43  ;;  %3054 = vmatprep.mubr.msk.f32.mxu1 %vm3436_vm4, %v6565_v17  ;;  %v931_v43 = vld [vmem:[%s6559_s1 + $0x1f8] sm:$0xff] }
 0x137   :  { %3149 = vmatprep.subr.bf16.mxu1 %v3435_v12 }
 0x13e   :  { %3152 = vmatpush3.bf16.xpose.msk.msra.mxu1 %vm3538_vm1, %v3150_v47  ;;  %v930_v47 = vld [vmem:[%s6559_s1 + $0x1f0] sm:$0xff] }
 0x13f   :  { %3153 = vmatprep.subr.bf16.mxu1 %v3435_v12  ;;  %v3227_v48 = vpack.c.bf16 %v930_v47, %v928_v45  ;;  %v617_v45 = vld [vmem:[%s6562_s7 + $0x68] sm:$0xff]  ;;  %v616_v47 = vld [vmem:[%s6562_s7 + $0x60] sm:$0xff] }
 0x146   :  { %3156 = vmatpush3.bf16.xpose.msk.msra.mxu1 %vm3538_vm1, %v3154_v50  ;;  %v935_v50 = vld [vmem:[%s6559_s1 + $0x218] sm:$0xff] }
 0x147   :  { %3157 = vmatprep.subr.bf16.mxu1 %v3435_v12  ;;  %v3229_v51 = vpack.c.bf16 %v935_v50, %v933_v49  ;;  %v620_v49 = vld [vmem:[%s6562_s7 + $0x80] sm:$0xff] }
 0x148   :  { %v652_v50 = vld [vmem:[%s6562_s7 + $0x180] sm:$0xff] }
 0x14e   :  { %3160 = vmatpush3.bf16.xpose.msk.msra.mxu1 %vm3538_vm1, %v3158_v16  ;;  %v934_v16 = vld [vmem:[%s6559_s1 + $0x210] sm:$0xff] }
 0x14f   :  { %3161 = vmatprep.subr.bf16.mxu1 %v3435_v12  ;;  %v896_v12 = vld [vmem:[%s6559_s1 + $0xe0] sm:$0xff]  ;;  %v3231_v53 = vpack.c.bf16 %v934_v16, %v932_v52  ;;  %v655_v52 = vld [vmem:[%s6562_s7 + $0x198] sm:$0xff] }
 0x150   :  { %v3195_v57 = vpack.c.bf16 %v898_v56, %v896_v12  ;;  %v936_v56 = vld [vmem:[%s6559_s1 + $0x220] sm:$0xff]  ;;  %v659_v16 = vld [vmem:[%s6562_s7 + $0x1b8] sm:$0xff] }
 0x152   :  { %3196 = vmatpush1.bf16.msra.mxu0 %v3195_v57  ;;  %v938_v57 = vld [vmem:[%s6559_s1 + $0x230] sm:$0xff] }
 0x153   :  { %3198 = vmatprep.subr.bf16.mxu0 %v3197_v59  ;;  %v3235_v58 = vpack.c.bf16 %v938_v57, %v936_v56  ;;  %v943_v59 = vld [vmem:[%s6559_s1 + $0x258] sm:$0xff]  ;;  %v664_v56 = vld [vmem:[%s6562_s7 + $0x1e0] sm:$0xff] }
 0x154   :  { %v3237_v60 = vpack.c.bf16 %v943_v59, %v941_v24  ;;  %v668_v57 = vld [vmem:[%s6562_s7 + $0x200] sm:$0xff] }
 0x156   :  { %3164 = vmatpush3.bf16.xpose.msk.msra.mxu1 %vm3538_vm1, %v3162_v55  ;;  %3200 = vmatpush1.bf16.msra.mxu0 %v3199_v62  ;;  %v939_v55 = vld [vmem:[%s6559_s1 + $0x238] sm:$0xff]  ;;  %v942_v62 = vld [vmem:[%s6559_s1 + $0x250] sm:$0xff] }
 0x157   :  { %3202 = vmatprep.subr.bf16.mxu0 %v3201_v2  ;;  %3230 = vmatprep.subr.bf16.mxu1 %v3229_v51  ;;  %v3233_v12 = vpack.c.bf16 %v939_v55, %v937_v54  ;;  %v3239_v63 = vpack.c.bf16 %v942_v62, %v940_v61  ;;  %v947_v2 = vld [vmem:[%s6559_s1 + $0x278] sm:$0xff]  ;;  %v656_v51 = vld [vmem:[%s6562_s7 + $0x1a0] sm:$0xff]  ;;  %v662_v54 = vld [vmem:[%s6562_s7 + $0x1d0] sm:$0xff] }
 0x158   :  { %v3241_v3 = vpack.c.bf16 %v947_v2, %v945_v1  ;;  %v661_v55 = vld [vmem:[%s6562_s7 + $0x1c8] sm:$0xff]  ;;  %v667_v61 = vld [vmem:[%s6562_s7 + $0x1f8] sm:$0xff] }
 0x159   :  { %v671_v62 = vld [vmem:[%s6562_s7 + $0x218] sm:$0xff] }
 0x15a   :  { %3204 = vmatpush1.bf16.msra.mxu0 %v3203_v5  ;;  %v946_v5 = vld [vmem:[%s6559_s1 + $0x270] sm:$0xff] }
 0x15b   :  { %3206 = vmatprep.subr.bf16.mxu0 %v3205_v9  ;;  %v3243_v6 = vpack.c.bf16 %v946_v5, %v944_v4  ;;  %v951_v9 = vld [vmem:[%s6559_s1 + $0x298] sm:$0xff]  ;;  %v673_v4 = vld [vmem:[%s6562_s7 + $0x228] sm:$0xff] }
 0x15c   :  { %v3245_v13 = vpack.c.bf16 %v951_v9, %v949_v7  ;;  %v677_v5 = vld [vmem:[%s6562_s7 + $0x248] sm:$0xff] }
 0x15d   :  { %3055 = vmatmul.mubr.msk.f32.vlgmr.msra.gmra.mrb[2].mxu1 %vm315_vm0, %v255_v42  ;;  %v929_v42 = vld [vmem:[%s6559_s1 + $0x1e8] sm:$0xff] }
 0x15e   :  { %1459 = vmatprep.mubr.f32.mxu1 %v6565_v17  ;;  %3208 = vmatpush1.bf16.msra.mxu0 %v3207_v14  ;;  %v3225_v44 = vpack.c.bf16 %v931_v43, %v929_v42  ;;  %v950_v14 = vld [vmem:[%s6559_s1 + $0x290] sm:$0xff]  ;;  %v611_v42 = vld [vmem:[%s6562_s7 + $0x38] sm:$0xff] }
 0x15f   :  { %3210 = vmatprep.subr.bf16.mxu0 %v3209_v19  ;;  %3232 = vmatpush1.bf16.msra.mxu1 %v3231_v53  ;;  %v3247_v15 = vpack.c.bf16 %v950_v14, %v948_v10  ;;  %v303_v19 = vrot.slane %v298_v18, %v3632_v0  ;;  %v614_v43 = vld [vmem:[%s6562_s7 + $0x50] sm:$0xff]  ;;  %v680_v14 = vld [vmem:[%s6562_s7 + $0x260] sm:$0xff] }
 0x160   :  { %3234 = vmatprep.subr.bf16.mxu1 %v3233_v12  ;;  %v658_v53 = vld [vmem:[%s6562_s7 + $0x1b0] sm:$0xff]  ;;  %v665_v12 = vld [vmem:[%s6562_s7 + $0x1e8] sm:$0xff] }
 0x162   :  { %3212 = vmatpush1.bf16.msra.mxu0 %v3211_v22 }
 0x163   :  { %3214 = vmatprep.subr.bf16.mxu0 %v3213_v26  ;;  %3236 = vmatpush1.bf16.msra.mxu1 %v3235_v58  ;;  %v311_v58 = vrot.slane %v298_v18, %v75_v46  ;;  %v674_v46 = vld [vmem:[%s6562_s7 + $0x230] sm:$0xff]  ;;  %v683_v18 = vld [vmem:[%s6562_s7 + $0x278] sm:$0xff] }
 0x164   :  { %3238 = vmatprep.subr.bf16.mxu1 %v3237_v60 }
 0x166   :  { %3216 = vmatpush1.bf16.msra.mxu0 %v3215_v29 }
 0x167   :  { %3218 = vmatprep.subr.bf16.mxu0 %v3217_v32  ;;  %3240 = vmatpush1.bf16.msra.mxu1 %v3239_v63 }
 0x168   :  { %3242 = vmatprep.subr.bf16.mxu1 %v3241_v3 }
 0x16a   :  { %3220 = vmatpush1.bf16.msra.mxu0 %v3219_v35 }
 0x16b   :  { %3222 = vmatprep.subr.bf16.mxu0 %v3221_v38  ;;  %3244 = vmatpush1.bf16.msra.mxu1 %v3243_v6  ;;  %v676_v6 = vld [vmem:[%s6562_s7 + $0x240] sm:$0xff] }
 0x16c   :  { %3246 = vmatprep.subr.bf16.mxu1 %v3245_v13 }
 0x16e   :  { %3224 = vmatpush1.bf16.msra.mxu0 %v3223_v41 }
 0x16f   :  { %3226 = vmatprep.subr.bf16.mxu0 %v3225_v44  ;;  %3248 = vmatpush1.bf16.msra.mxu1 %v3247_v15  ;;  %v613_v44 = vld [vmem:[%s6562_s7 + $0x48] sm:$0xff]  ;;  %v679_v15 = vld [vmem:[%s6562_s7 + $0x258] sm:$0xff] }
 0x172   :  { %3228 = vmatpush1.bf16.msra.mxu0 %v3227_v48 }
 0x208   :  { %v511_v21 = vpop.f32.mrb[0].mxu1 }
 0x209   :  { %v512_v22 = vadd.f32 %v511_v21, %v303_v19  ;;  %v513_v23 = vpop.f32.mrb[1].mxu1  ;;  %v682_v19 = vld [vmem:[%s6562_s7 + $0x270] sm:$0xff] }
 0x20a   :  { %v514_v25 = vadd.f32 %v513_v23, %v307_v20 }
 0x20b   :  { %v2907_v26 = vmul.f32 -1.442695, %v512_v22 }
 0x20c   :  { %v2908_v27 = vmul.f32 -1.442695, %v514_v25 }
 0x20d   :  { %3339 = vpow2.f32 %v2907_v26  ;;  %v686_v26 = vld [vmem:[%s6562_s7 + $0x290] sm:$0xff] }
 0x20e   :  { %3341 = vpow2.f32 %v2908_v27  ;;  %v685_v27 = vld [vmem:[%s6562_s7 + $0x288] sm:$0xff] }
 0x217   :  { %v3340_v28 = vpop.eup %3339 }
 0x218   :  { %v3342_v29 = vpop.eup %3341  ;;  %v595_v30 = vadd.f32 1.0, %v3340_v28  ;;  %v689_v28 = vld [vmem:[%s6562_s7 + $0x2a8] sm:$0xff] }
 0x219   :  { %v596_v31 = vadd.f32 1.0, %v3342_v29 }
 0x21a   :  { %3343 = vrcp.f32 %v595_v30 }
 0x21b   :  { %3345 = vrcp.f32 %v596_v31 }
 0x224   :  { %v3344_v32 = vpop.eup %3343 }
 0x225   :  { %v3346_v33 = vpop.eup %3345  ;;  %v4075_v34 = vrot.slane %v3344_v32, %v3632_v0 }
 0x226   :  { %v4081_v35 = vrot.slane %v3346_v33, %v3632_v0 }
 0x227   :  { %v742_v41 = vmul.f32 %v4075_v34, %v604_v36  ;;  %v745_v24 = vmul.f32 %v4075_v34, %v607_v39  ;;  %v748_v59 = vmul.f32 %v4075_v34, %v610_v40  ;;  %v4151_v60 = vmul.f32 %v4075_v34, %v613_v44  ;;  %v692_v36 = vld [vmem:[%s6562_s7 + $0x2c0] sm:$0xff]  ;;  %v698_v44 = vld [vmem:[%s6562_s7 + $0x2f0] sm:$0xff] }
 0x228   :  { %v743_v38 = vmul.f32 %v4081_v35, %v605_v11  ;;  %v746_v48 = vmul.f32 %v4081_v35, %v608_v37  ;;  %v749_v63 = vmul.f32 %v4081_v35, %v611_v42  ;;  %v752_v1 = vmul.f32 %v4081_v35, %v614_v43  ;;  %v688_v11 = vld [vmem:[%s6562_s7 + $0x2a0] sm:$0xff]  ;;  %v691_v37 = vld [vmem:[%s6562_s7 + $0x2b8] sm:$0xff]  ;;  %v694_v43 = vld [vmem:[%s6562_s7 + $0x2d0] sm:$0xff] }
 0x229   :  { %v4168_v2 = vmul.f32 %v4081_v35, %v617_v45  ;;  %v4171_v3 = vmul.f32 %v4075_v34, %v616_v47  ;;  %v4183_v7 = vmul.f32 %v4081_v35, %v620_v49  ;;  %v4186_v9 = vmul.f32 %v4075_v34, %v652_v50  ;;  %v695_v42 = vld [vmem:[%s6562_s7 + $0x2d8] sm:$0xff]  ;;  %v697_v50 = vld [vmem:[%s6562_s7 + $0x2e8] sm:$0xff] }
 0x22a   :  { %1142 = vmatprep.mubr.f32.mxu0 %v743_v38  ;;  %v4189_v10 = vmul.f32 %v4081_v35, %v656_v51  ;;  %v4192_v13 = vmul.f32 %v4075_v34, %v655_v52  ;;  %v4207_v21 = vmul.f32 %v4081_v35, %v659_v16  ;;  %v4210_v22 = vmul.f32 %v4075_v34, %v658_v53  ;;  %v701_v51 = vld [vmem:[%s6562_s7 + $0x308] sm:$0xff]  ;;  %v700_v52 = vld [vmem:[%s6562_s7 + $0x300] sm:$0xff] }
 0x22b   :  { %1143 = vmatmul.mubr.f32.vlgmr.msra.gmra.mrb[2].mxu0 %v742_v41  ;;  %v4213_v23 = vmul.f32 %v4081_v35, %v662_v54  ;;  %v4216_v25 = vmul.f32 %v4075_v34, %v661_v55  ;;  %v4228_v31 = vmul.f32 %v4081_v35, %v665_v12  ;;  %v4231_v32 = vmul.f32 %v4075_v34, %v664_v56  ;;  %v704_v12 = vld [vmem:[%s6562_s7 + $0x320] sm:$0xff]  ;;  %v703_v56 = vld [vmem:[%s6562_s7 + $0x318] sm:$0xff] }
 0x22c   :  { %1148 = vmatprep.mubr.f32.mxu0 %v746_v48  ;;  %v4234_v33 = vmul.f32 %v4081_v35, %v668_v57  ;;  %v4246_v38 = vmul.f32 %v4075_v34, %v667_v61  ;;  %v4249_v39 = vmul.f32 %v4081_v35, %v671_v62  ;;  %v4252_v40 = vmul.f32 %v4075_v34, %v670_v8  ;;  %v707_v57 = vld [vmem:[%s6562_s7 + $0x338] sm:$0xff]  ;;  %v706_v61 = vld [vmem:[%s6562_s7 + $0x330] sm:$0xff]  ;;  %v709_v8 = vld [vmem:[%s6562_s7 + $0x348] sm:$0xff] }
 0x22d   :  { %v4255_v41 = vmul.f32 %v4081_v35, %v674_v46  ;;  %v4267_v47 = vmul.f32 %v4075_v34, %v673_v4  ;;  %v4270_v48 = vmul.f32 %v4081_v35, %v677_v5  ;;  %v4273_v49 = vmul.f32 %v4075_v34, %v676_v6  ;;  %v710_v62 = vld [vmem:[%s6562_s7 + $0x350] sm:$0xff]  ;;  %v713_v5 = vld [vmem:[%s6562_s7 + $0x368] sm:$0xff]  ;;  %v712_v6 = vld [vmem:[%s6562_s7 + $0x360] sm:$0xff] }
 0x22e   :  { %v4285_v16 = vmul.f32 %v4081_v35, %v680_v14  ;;  %v4288_v53 = vmul.f32 %v4075_v34, %v679_v15  ;;  %v4291_v54 = vmul.f32 %v4081_v35, %v683_v18  ;;  %v4294_v55 = vmul.f32 %v4075_v34, %v682_v19  ;;  %v716_v14 = vld [vmem:[%s6562_s7 + $0x380] sm:$0xff] }
 0x22f   :  { %1149 = vmatmul.mubr.f32.gmra.mrb[4].mxu0 %v745_v24  ;;  %v4309_v24 = vmul.f32 %v4075_v34, %v685_v27  ;;  %v4324_v46 = vmul.f32 %v4075_v34, %v688_v11  ;;  %v4333_v4 = vmul.f32 %v4081_v35, %v695_v42  ;;  %v4346_v15 = vmul.f32 %v4075_v34, %v694_v43  ;;  %v718_v27 = vld [vmem:[%s6562_s7 + $0x390] sm:$0xff] }
 0x230   :  { %v582_v20 = vpop.f32.mrb[2].mxu1  ;;  %1154 = vmatprep.mubr.f32.mxu0 %v749_v63  ;;  %v4327_v63 = vmul.f32 %v4081_v35, %v692_v36  ;;  %v4349_v18 = vmul.f32 %v4081_v35, %v698_v44  ;;  %v4352_v19 = vmul.f32 %v4075_v34, %v697_v50  ;;  %v4377_v11 = vmul.f32 %v4081_v35, %v707_v57  ;;  %v722_v36 = vld [vmem:[%s6562_s7 + $0x3b0] sm:$0xff]  ;;  %v724_v50 = vld [vmem:[%s6562_s7 + $0x3c0] sm:$0xff] }
 0x231   :  { %v583_v29 = vadd.f32 %v582_v20, %v311_v58  ;;  %v3056_v30 = vpop.f32.mrb[3].mxu1  ;;  %v4306_v58 = vmul.f32 %v4081_v35, %v686_v26  ;;  %6618 = vst [vmem:[#allocation2_spill] sm:$0xff] %v4324_v46  ;;  %6621 = vst [vmem:[#allocation5_spill] sm:$0xff] %v4333_v4  ;;  %v4355_v20 = vmul.f32 %v4081_v35, %v701_v51  ;;  %v715_v26 = vld [vmem:[%s6562_s7 + $0x378] sm:$0xff]  ;;  %v728_v51 = vld [vmem:[%s6562_s7 + $0x3e0] sm:$0xff] }
 0x232   :  { %6619 = vst [vmem:[#allocation3_spill] sm:$0xff] %v4327_v63  ;;  %6622 = vst [vmem:[#allocation6_spill] sm:$0xff] %v4346_v15  ;;  %v4374_v30 = vmul.f32 %v4075_v34, %v703_v56  ;;  %v4389_v42 = vmul.f32 %v4075_v34, %v706_v61  ;;  %v4392_v43 = vmul.f32 %v4081_v35, %v710_v62  ;;  %v690_v15 = vld [vmem:[%s6562_s7 + $0x2b0] sm:$0xff]  ;;  %v693_v4 = vld [vmem:[%s6562_s7 + $0x2c8] sm:$0xff] }
 0x233   :  { %v2909_v45 = vmul.f32 -1.442695, %v583_v29  ;;  %1155 = vmatmul.mubr.f32.gmra.mrb[6].mxu0 %v748_v59  ;;  %v4312_v59 = vmul.f32 %v4081_v35, %v689_v28  ;;  %6623 = vst [vmem:[#allocation7_spill] sm:$0xff] %v4349_v18  ;;  %6624 = vst [vmem:[#allocation8_spill] sm:$0xff] %v4352_v19  ;;  %v4368_v28 = vmul.f32 %v4075_v34, %v700_v52  ;;  %v727_v52 = vld [vmem:[%s6562_s7 + $0x3d8] sm:$0xff]  ;;  %v708_v46 = vld [vmem:[%s6562_s7 + $0x340] sm:$0xff] }
 0x234   :  { %1160 = vmatprep.mubr.f32.mxu0 %v752_v1  ;;  %v4330_v1 = vmul.f32 %v4075_v34, %v691_v37  ;;  %6625 = vst [vmem:[#allocation9_spill] sm:$0xff] %v4355_v20  ;;  %v4371_v29 = vmul.f32 %v4081_v35, %v704_v12  ;;  %6628 = vst [vmem:[#allocation12_spill] sm:$0xff] %v4374_v30  ;;  %v725_v37 = vld [vmem:[%s6562_s7 + $0x3c8] sm:$0xff]  ;;  %v4395_v44 = vmul.f32 %v4075_v34, %v709_v8  ;;  %v619_v12 = vld [vmem:[%s6562_s7 + $0x78] sm:$0xff] }
 0x235   :  { %3347 = vpow2.f32 %v2909_v45  ;;  %6626 = vst [vmem:[#allocation10_spill] sm:$0xff] %v4368_v28  ;;  %6629 = vst [vmem:[#allocation13_spill] sm:$0xff] %v4377_v11  ;;  %v4398_v45 = vmul.f32 %v4081_v35, %v713_v5  ;;  %v4413_v56 = vmul.f32 %v4075_v34, %v712_v6  ;;  %v4416_v57 = vmul.f32 %v4081_v35, %v716_v14  ;;  %v623_v8 = vld [vmem:[%s6562_s7 + $0x98] sm:$0xff]  ;;  %v666_v30 = vld [vmem:[%s6562_s7 + $0x1f0] sm:$0xff] }
 0x236   :  { %6620 = vst [vmem:[#allocation4_spill] sm:$0xff] %v4330_v1  ;;  %6627 = vst [vmem:[#allocation11_spill] sm:$0xff] %v4371_v29  ;;  %v4419_v61 = vmul.f32 %v4075_v34, %v715_v26  ;;  %v4429_v5 = vmul.f32 %v4075_v34, %v718_v27  ;;  %v4432_v6 = vmul.f32 %v4081_v35, %v722_v36  ;;  %v663_v11 = vld [vmem:[%s6562_s7 + $0x1d8] sm:$0xff]  ;;  %v672_v29 = vld [vmem:[%s6562_s7 + $0x220] sm:$0xff] }
 0x237   :  { %1161 = vmatmul.mubr.f32.gmra.mrb[8].mxu0 %v4151_v60  ;;  %v719_v60 = vld [vmem:[%s6562_s7 + $0x398] sm:$0xff]  ;;  %6630 = vst [vmem:[#allocation14_spill] sm:$0xff] %v4389_v42  ;;  %6631 = vst [vmem:[#allocation15_spill] sm:$0xff] %v4392_v43  ;;  %v4438_v26 = vmul.f32 %v4081_v35, %v725_v37  ;;  %v4448_v27 = vmul.f32 %v4075_v34, %v727_v52  ;;  %v757_v36 = vmul.f32 %v4075_v34, %v619_v12  ;;  %v625_v12 = vld [vmem:[%s6562_s7 + $0xa8] sm:$0xff] }
 0x238   :  { %1166 = vmatprep.mubr.f32.mxu0 %v4168_v2  ;;  %v721_v2 = vld [vmem:[%s6562_s7 + $0x3a8] sm:$0xff]  ;;  %6632 = vst [vmem:[#allocation16_spill] sm:$0xff] %v4395_v44  ;;  %6633 = vst [vmem:[#allocation17_spill] sm:$0xff] %v4398_v45  ;;  %v4422_v62 = vmul.f32 %v4081_v35, %v719_v60  ;;  %v4445_v60 = vmul.f32 %v4081_v35, %v728_v51  ;;  %v761_v17 = vmul.f32 %v4081_v35, %v623_v8  ;;  %v660_v45 = vld [vmem:[%s6562_s7 + $0x1c0] sm:$0xff] }
 0x239   :  { %6634 = vst [vmem:[#allocation18_spill] sm:$0xff] %v4413_v56  ;;  %6635 = vst [vmem:[#allocation19_spill] sm:$0xff] %v4416_v57  ;;  %v4435_v14 = vmul.f32 %v4075_v34, %v721_v2  ;;  %v622_v2 = vld [vmem:[%s6562_s7 + $0x90] sm:$0xff]  ;;  %v629_v8 = vld [vmem:[%s6562_s7 + $0xc8] sm:$0xff] }
 0x23a   :  { %6636 = vst [vmem:[#allocation20_spill] sm:$0xff] %v4419_v61  ;;  %6637 = vst [vmem:[#allocation21_spill] sm:$0xff] %v4422_v62  ;;  %v760_v51 = vmul.f32 %v4075_v34, %v622_v2  ;;  %v632_v2 = vld [vmem:[%s6562_s7 + $0xe0] sm:$0xff]  ;;  %v642_v62 = vld [vmem:[%s6562_s7 + $0x130] sm:$0xff] }
 0x23b   :  { %1167 = vmatmul.mubr.f32.gmra.mrb[10].mxu0 %v4171_v3  ;;  %6638 = vst [vmem:[#allocation22_spill] sm:$0xff] %v4429_v5  ;;  %6639 = vst [vmem:[#allocation23_spill] sm:$0xff] %v4432_v6  ;;  %v4442_v3 = vmul.f32 %v4075_v34, %v724_v50  ;;  %v639_v6 = vld [vmem:[%s6562_s7 + $0x118] sm:$0xff]  ;;  %v645_v61 = vld [vmem:[%s6562_s7 + $0x148] sm:$0xff] }
 0x23c   :  { %6640 = vst [vmem:[#allocation24_spill] sm:$0xff] %v4435_v14  ;;  %6641 = vst [vmem:[#allocation25_spill] sm:$0xff] %v4438_v26  ;;  %1172 = vmatprep.mubr.f32.mxu0 %v4183_v7  ;;  %v626_v7 = vld [vmem:[%s6562_s7 + $0xb0] sm:$0xff]  ;;  %v633_v26 = vld [vmem:[%s6562_s7 + $0xe8] sm:$0xff] }
 0x23d   :  { %6642 = vst [vmem:[#allocation26_spill] sm:$0xff] %v4442_v3  ;;  %6643 = vst [vmem:[#allocation27_spill] sm:$0xff] %v4445_v60  ;;  %v764_v52 = vmul.f32 %v4081_v35, %v626_v7  ;;  %v627_v60 = vld [vmem:[%s6562_s7 + $0xb8] sm:$0xff]  ;;  %v636_v14 = vld [vmem:[%s6562_s7 + $0x100] sm:$0xff] }
 0x23e   :  { %6644 = vst [vmem:[#allocation28_spill] sm:$0xff] %v4448_v27  ;;  %v612_v27 = vld [vmem:[%s6562_s7 + $0x40] sm:$0xff]  ;;  %v651_v56 = vld [vmem:[%s6562_s7 + $0x178] sm:$0xff]  ;;  %v681_v20 = vld [vmem:[%s6562_s7 + $0x268] sm:$0xff] }
 0x23f   :  { %v3348_v37 = vpop.eup %3347  ;;  %1173 = vmatmul.mubr.f32.gmra.mrb[12].mxu0 %v757_v36  ;;  %v763_v36 = vmul.f32 %v4075_v34, %v625_v12  ;;  %v606_v12 = vld [vmem:[%s6562_s7 + $0x10] sm:$0xff]  ;;  %v648_v57 = vld [vmem:[%s6562_s7 + $0x160] sm:$0xff]  ;;  %v675_v28 = vld [vmem:[%s6562_s7 + $0x238] sm:$0xff] }
 0x240   :  { %v597_v50 = vadd.f32 1.0, %v3348_v37  ;;  %1178 = vmatprep.mubr.f32.mxu0 %v761_v17  ;;  %v767_v37 = vmul.f32 %v4081_v35, %v629_v8  ;;  %v628_v17 = vld [vmem:[%s6562_s7 + $0xc0] sm:$0xff]  ;;  %v634_v8 = vld [vmem:[%s6562_s7 + $0xf0] sm:$0xff]  ;;  %v699_v63 = vld [vmem:[%s6562_s7 + $0x2f8] sm:$0xff] }
 0x241   :  { %v766_v7 = vmul.f32 %v4075_v34, %v628_v17  ;;  %v609_v17 = vld [vmem:[%s6562_s7 + $0x28] sm:$0xff]  ;;  %v772_v43 = vmul.f32 %v4075_v34, %v634_v8 }
 0x242   :  { %3349 = vrcp.f32 %v597_v50  ;;  %v631_v50 = vld [vmem:[%s6562_s7 + $0xd8] sm:$0xff] }
 0x243   :  { %1179 = vmatmul.mubr.f32.gmra.mrb[14].mxu0 %v760_v51  ;;  %v635_v51 = vld [vmem:[%s6562_s7 + $0xf8] sm:$0xff] }
 0x244   :  { %1184 = vmatprep.mubr.f32.mxu0 %v764_v52  ;;  %v770_v52 = vmul.f32 %v4081_v35, %v632_v2  ;;  %v641_v2 = vld [vmem:[%s6562_s7 + $0x128] sm:$0xff] }
 0x245   :  { %v779_v8 = vmul.f32 %v4081_v35, %v641_v2 }
 0x247   :  { %1185 = vmatmul.mubr.f32.gmra.mrb[16].mxu0 %v763_v36  ;;  %v638_v36 = vld [vmem:[%s6562_s7 + $0x110] sm:$0xff] }
 0x248   :  { %1190 = vmatprep.mubr.f32.mxu0 %v767_v37  ;;  %v637_v37 = vld [vmem:[%s6562_s7 + $0x108] sm:$0xff]  ;;  %v776_v42 = vmul.f32 %v4081_v35, %v638_v36 }
 0x24b   :  { %1191 = vmatmul.mubr.f32.gmra.mrb[18].mxu0 %v766_v7  ;;  %v630_v7 = vld [vmem:[%s6562_s7 + $0xd0] sm:$0xff] }
 0x24c   :  { %v3350_v3 = vpop.eup %3349  ;;  %1196 = vmatprep.mubr.f32.mxu0 %v770_v52  ;;  %v769_v52 = vmul.f32 %v4075_v34, %v631_v50  ;;  %v657_v50 = vld [vmem:[%s6562_s7 + $0x1a8] sm:$0xff] }
 0x24d   :  { %v4519_v5 = vrot.slane %v3350_v3, %v3632_v0  ;;  %v773_v0 = vmul.f32 %v4081_v35, %v635_v51  ;;  %v654_v3 = vld [vmem:[%s6562_s7 + $0x190] sm:$0xff]  ;;  %v775_v51 = vmul.f32 %v4075_v34, %v637_v37 }
 0x24f   :  { %1197 = vmatmul.mubr.f32.gmra.mrb[20].mxu0 %v769_v52  ;;  %v744_v44 = vmul.f32 %v4519_v5, %v606_v12  ;;  %v669_v52 = vld [vmem:[%s6562_s7 + $0x208] sm:$0xff]  ;;  %v747_v12 = vmul.f32 %v4519_v5, %v609_v17  ;;  %v4560_v36 = vmul.f32 %v4519_v5, %v612_v27  ;;  %v4563_v37 = vmul.f32 %v4519_v5, %v627_v60  ;;  %v678_v17 = vld [vmem:[%s6562_s7 + $0x250] sm:$0xff] }
 0x250   :  { %1202 = vmatprep.mubr.f32.mxu0 %v773_v0  ;;  %v4576_v27 = vmul.f32 %v4519_v5, %v630_v7  ;;  %v4579_v60 = vmul.f32 %v4519_v5, %v633_v26  ;;  %v4582_v2 = vmul.f32 %v4519_v5, %v636_v14  ;;  %v4585_v0 = vmul.f32 %v4519_v5, %v639_v6  ;;  %v687_v7 = vld [vmem:[%s6562_s7 + $0x298] sm:$0xff] }
 0x251   :  { %2910 = vmatmul.mubr.msk.f32.vlgmr.msra.gmra.mrb[4].mxu1 %vm79_vm2, %v744_v44  ;;  %v684_v44 = vld [vmem:[%s6562_s7 + $0x280] sm:$0xff]  ;;  %v6645_v26 = vmov 0.0   ;;  %v4598_v14 = vmul.f32 %v4519_v5, %v642_v62  ;;  %v4601_v6 = vmul.f32 %v4519_v5, %v645_v61  ;;  %v4604_v19 = vmul.f32 %v4519_v5, %v648_v57 }
 0x252   :  { %1465 = vmatprep.mubr.f32.mxu1 %v6645_v26  ;;  %v4607_v18 = vmul.f32 %v4519_v5, %v651_v56  ;;  %v696_v62 = vld [vmem:[%s6562_s7 + $0x2e0] sm:$0xff]  ;;  %v4619_v61 = vmul.f32 %v4519_v5, %v654_v3  ;;  %v4622_v57 = vmul.f32 %v4519_v5, %v657_v50  ;;  %v4625_v56 = vmul.f32 %v4519_v5, %v660_v45  ;;  %v705_v3 = vld [vmem:[%s6562_s7 + $0x328] sm:$0xff] }
 0x253   :  { %1203 = vmatmul.mubr.f32.gmra.mrb[22].mxu0 %v772_v43  ;;  %v4628_v1 = vmul.f32 %v4519_v5, %v663_v11  ;;  %v702_v43 = vld [vmem:[%s6562_s7 + $0x310] sm:$0xff]  ;;  %v4640_v50 = vmul.f32 %v4519_v5, %v666_v30  ;;  %v4643_v45 = vmul.f32 %v4519_v5, %v669_v52  ;;  %v4646_v11 = vmul.f32 %v4519_v5, %v672_v29 }
 0x254   :  { %1208 = vmatprep.mubr.f32.mxu0 %v776_v42  ;;  %v711_v42 = vld [vmem:[%s6562_s7 + $0x358] sm:$0xff]  ;;  %v714_v30 = vld [vmem:[%s6562_s7 + $0x370] sm:$0xff]  ;;  %v4662_v29 = vmul.f32 %v4519_v5, %v678_v17  ;;  %v4668_v52 = vmul.f32 %v4519_v5, %v684_v44  ;;  %v4687_v44 = vmul.f32 %v4519_v5, %v690_v15  ;;  %v4708_v15 = vmul.f32 %v4519_v5, %v702_v43 }
 0x255   :  { %6646 = vst [vmem:[#allocation29_spill] sm:$0xff] %v4628_v1  ;;  %6647 = vst [vmem:[#allocation30_spill] sm:$0xff] %v4646_v11  ;;  %v4649_v1 = vmul.f32 %v4519_v5, %v675_v28  ;;  %2911 = vmatmul.mubr.msk.f32.gmra.mrb[6].mxu1 %vm79_vm2, %v747_v12  ;;  %v4665_v28 = vmul.f32 %v4519_v5, %v681_v20  ;;  %v717_v11 = vld [vmem:[%s6562_s7 + $0x388] sm:$0xff]  ;;  %v720_v12 = vld [vmem:[%s6562_s7 + $0x3a0] sm:$0xff] }
 0x256   :  { %6649 = vst [vmem:[#allocation32_spill] sm:$0xff] %v4662_v29  ;;  %6651 = vst [vmem:[#allocation34_spill] sm:$0xff] %v4668_v52  ;;  %v723_v17 = vld [vmem:[%s6562_s7 + $0x3b8] sm:$0xff]  ;;  %1471 = vmatprep.mubr.f32.mxu1 %v6645_v26  ;;  %v640_v20 = vld [vmem:[%s6562_s7 + $0x120] sm:$0xff]  ;;  %v4696_v52 = vmul.f32 %v4519_v5, %v699_v63  ;;  %v4714_v63 = vmul.f32 %v4519_v5, %v708_v46  ;;  %v4726_v43 = vmul.f32 %v4519_v5, %v717_v11 }
 0x257   :  { %6648 = vst [vmem:[#allocation31_spill] sm:$0xff] %v4649_v1  ;;  %6650 = vst [vmem:[#allocation33_spill] sm:$0xff] %v4665_v28  ;;  %v4671_v1 = vmul.f32 %v4519_v5, %v687_v7  ;;  %v4690_v7 = vmul.f32 %v4519_v5, %v693_v4  ;;  %v726_v28 = vld [vmem:[%s6562_s7 + $0x3d0] sm:$0xff]  ;;  %v729_v29 = vld [vmem:[%s6562_s7 + $0x3e8] sm:$0xff]  ;;  %1209 = vmatmul.mubr.f32.gmra.mrb[24].mxu0 %v775_v51  ;;  %v4732_v46 = vmul.f32 %v4519_v5, %v723_v17 }
 0x258   :  { %6654 = vst [vmem:[#allocation37_spill] sm:$0xff] %v4696_v52  ;;  %v644_v4 = vld [vmem:[%s6562_s7 + $0x140] sm:$0xff]  ;;  %v4717_v52 = vmul.f32 %v4519_v5, %v711_v42  ;;  %1214 = vmatprep.mubr.f32.mxu0 %v779_v8  ;;  %v615_v51 = vld [vmem:[%s6562_s7 + $0x58] sm:$0xff]  ;;  %v778_v8 = vmul.f32 %v4075_v34, %v640_v20  ;;  %v4738_v42 = vmul.f32 %v4519_v5, %v726_v28 }
 0x259   :  { %6652 = vst [vmem:[#allocation35_spill] sm:$0xff] %v4671_v1  ;;  %v4693_v1 = vmul.f32 %v4519_v5, %v696_v62  ;;  %v4711_v62 = vmul.f32 %v4519_v5, %v705_v3  ;;  %v4729_v3 = vmul.f32 %v4519_v5, %v720_v12  ;;  %2912 = vmatmul.mubr.msk.f32.gmra.mrb[8].mxu1 %vm79_vm2, %v4560_v36  ;;  %v643_v12 = vld [vmem:[%s6562_s7 + $0x138] sm:$0xff] }
 0x25a   :  { %1477 = vmatprep.mubr.f32.mxu1 %v6645_v26  ;;  %v782_v11 = vmul.f32 %v4081_v35, %v644_v4  ;;  %v753_v17 = vmul.f32 %v4519_v5, %v615_v51  ;;  %v647_v36 = vld [vmem:[%s6562_s7 + $0x158] sm:$0xff]  ;;  %v781_v28 = vmul.f32 %v4075_v34, %v643_v12  ;;  %v646_v4 = vld [vmem:[%s6562_s7 + $0x150] sm:$0xff] }
 0x25b   :  { %6653 = vst [vmem:[#allocation36_spill] sm:$0xff] %v4693_v1  ;;  %v4723_v1 = vmul.f32 %v4519_v5, %v714_v30  ;;  %v4741_v30 = vmul.f32 %v4519_v5, %v729_v29  ;;  %1215 = vmatmul.mubr.f32.gmra.mrb[26].mxu0 %v778_v8  ;;  %v618_v29 = vld [vmem:[%s6562_s7 + $0x70] sm:$0xff]  ;;  %v785_v20 = vmul.f32 %v4081_v35, %v647_v36  ;;  %v649_v36 = vld [vmem:[%s6562_s7 + $0x168] sm:$0xff] }
 0x25c   :  { %1220 = vmatprep.mubr.f32.mxu0 %v782_v11  ;;  %v756_v51 = vmul.f32 %v4519_v5, %v618_v29  ;;  %v650_v8 = vld [vmem:[%s6562_s7 + $0x170] sm:$0xff]  ;;  %v621_v11 = vld [vmem:[%s6562_s7 + $0x88] sm:$0xff]  ;;  %v784_v12 = vmul.f32 %v4075_v34, %v646_v4  ;;  %v787_v4 = vmul.f32 %v4075_v34, %v649_v36  ;;  %v6655_v34 = vld [vmem:[#allocation2_spill] sm:$0xff] }
 0x25d   :  { %2913 = vmatmul.mubr.msk.f32.gmra.mrb[10].mxu1 %vm79_vm2, %v753_v17  ;;  %v788_v17 = vmul.f32 %v4081_v35, %v650_v8  ;;  %v759_v29 = vmul.f32 %v4519_v5, %v621_v11 }
 0x25e   :  { %1483 = vmatprep.mubr.f32.mxu1 %v6645_v26 }
 0x25f   :  { %1221 = vmatmul.mubr.f32.gmra.mrb[28].mxu0 %v781_v28  ;;  %v653_v28 = vld [vmem:[%s6562_s7 + $0x188] sm:$0xff] }
 0x260   :  { %1226 = vmatprep.mubr.f32.mxu0 %v785_v20  ;;  %v624_v20 = vld [vmem:[%s6562_s7 + $0xa0] sm:$0xff] }
 0x261   :  { %2914 = vmatmul.mubr.msk.f32.gmra.mrb[12].mxu1 %vm79_vm2, %v756_v51  ;;  %v791_v51 = vmul.f32 %v4081_v35, %v653_v28  ;;  %v762_v8 = vmul.f32 %v4519_v5, %v624_v20  ;;  %v6656_v35 = vld [vmem:[#allocation3_spill] sm:$0xff] }
 0x262   :  { %1489 = vmatprep.mubr.f32.mxu1 %v6645_v26  ;;  %v6683_v5 = vld [vmem:[#allocation23_spill] sm:$0xff] }
 0x263   :  { %1227 = vmatmul.mubr.f32.gmra.mrb[30].mxu0 %v784_v12 }
 0x264   :  { %1232 = vmatprep.mubr.f32.mxu0 %v788_v17 }
 0x265   :  { %2915 = vmatmul.mubr.msk.f32.gmra.mrb[14].mxu1 %vm79_vm2, %v759_v29 }
 0x266   :  { %1495 = vmatprep.mubr.f32.mxu1 %v6645_v26 }
 0x267   :  { %1233 = vmatmul.mubr.f32.gmra.mrb[32].mxu0 %v787_v4 }
 0x268   :  { %1238 = vmatprep.mubr.f32.mxu0 %v791_v51 }
 0x269   :  { %2916 = vmatmul.mubr.msk.f32.gmra.mrb[16].mxu1 %vm79_vm2, %v762_v8 }
 0x26a   :  { %1501 = vmatprep.mubr.f32.mxu1 %v6645_v26 }
 0x26b   :  { %1239 = vmatmul.mubr.f32.gmra.mrb[34].mxu0 %v4186_v9  ;;  %v6657_v9 = vld [vmem:[#allocation29_spill] sm:$0xff] }
 0x26c   :  { %1244 = vmatprep.mubr.f32.mxu0 %v4189_v10  ;;  %v6658_v10 = vld [vmem:[#allocation4_spill] sm:$0xff] }
 0x26d   :  { %2917 = vmatmul.mubr.msk.f32.gmra.mrb[18].mxu1 %vm79_vm2, %v4563_v37  ;;  %v6684_v37 = vld [vmem:[#allocation24_spill] sm:$0xff] }
 0x26e   :  { %1507 = vmatprep.mubr.f32.mxu1 %v6645_v26 }
 0x26f   :  { %1245 = vmatmul.mubr.f32.gmra.mrb[36].mxu0 %v4192_v13  ;;  %v6659_v13 = vld [vmem:[#allocation5_spill] sm:$0xff] }
 0x270   :  { %1250 = vmatprep.mubr.f32.mxu0 %v4207_v21  ;;  %v6660_v21 = vld [vmem:[#allocation6_spill] sm:$0xff] }
 0x271   :  { %2918 = vmatmul.mubr.msk.f32.gmra.mrb[20].mxu1 %vm79_vm2, %v4576_v27  ;;  %v6685_v27 = vld [vmem:[#allocation25_spill] sm:$0xff] }
 0x272   :  { %1513 = vmatprep.mubr.f32.mxu1 %v6645_v26 }
 0x273   :  { %1251 = vmatmul.mubr.f32.gmra.mrb[38].mxu0 %v4210_v22  ;;  %v6661_v22 = vld [vmem:[#allocation7_spill] sm:$0xff] }
 0x274   :  { %1256 = vmatprep.mubr.f32.mxu0 %v4213_v23  ;;  %v6662_v23 = vld [vmem:[#allocation8_spill] sm:$0xff] }
 0x275   :  { %2919 = vmatmul.mubr.msk.f32.gmra.mrb[22].mxu1 %vm79_vm2, %v4579_v60  ;;  %v6686_v60 = vld [vmem:[#allocation36_spill] sm:$0xff] }
 0x276   :  { %1519 = vmatprep.mubr.f32.mxu1 %v6645_v26 }
 0x277   :  { %1257 = vmatmul.mubr.f32.gmra.mrb[40].mxu0 %v4216_v25  ;;  %v6663_v25 = vld [vmem:[#allocation9_spill] sm:$0xff] }
 0x278   :  { %1262 = vmatprep.mubr.f32.mxu0 %v4228_v31  ;;  %v6664_v31 = vld [vmem:[#allocation30_spill] sm:$0xff] }
 0x279   :  { %2920 = vmatmul.mubr.msk.f32.gmra.mrb[24].mxu1 %vm79_vm2, %v4582_v2  ;;  %v6687_v2 = vld [vmem:[#allocation26_spill] sm:$0xff] }
 0x27a   :  { %1525 = vmatprep.mubr.f32.mxu1 %v6645_v26 }
 0x27b   :  { %1263 = vmatmul.mubr.f32.gmra.mrb[42].mxu0 %v4231_v32  ;;  %v6665_v32 = vld [vmem:[#allocation10_spill] sm:$0xff] }
 0x27c   :  { %1268 = vmatprep.mubr.f32.mxu0 %v4234_v33  ;;  %v6666_v33 = vld [vmem:[#allocation11_spill] sm:$0xff] }
 0x27d   :  { %2921 = vmatmul.mubr.msk.f32.gmra.mrb[26].mxu1 %vm79_vm2, %v4585_v0  ;;  %v6688_v0 = vld [vmem:[#allocation27_spill] sm:$0xff] }
 0x27e   :  { %1531 = vmatprep.mubr.f32.mxu1 %v6645_v26 }
 0x27f   :  { %1269 = vmatmul.mubr.f32.gmra.mrb[44].mxu0 %v4246_v38  ;;  %v6667_v38 = vld [vmem:[#allocation31_spill] sm:$0xff] }
 0x280   :  { %1274 = vmatprep.mubr.f32.mxu0 %v4249_v39  ;;  %v6668_v39 = vld [vmem:[#allocation12_spill] sm:$0xff] }
 0x281   :  { %2922 = vmatmul.mubr.msk.f32.gmra.mrb[28].mxu1 %vm79_vm2, %v4598_v14  ;;  %v6689_v14 = vld [vmem:[#allocation37_spill] sm:$0xff] }
 0x282   :  { %1537 = vmatprep.mubr.f32.mxu1 %v6645_v26 }
 0x283   :  { %1275 = vmatmul.mubr.f32.gmra.mrb[46].mxu0 %v4252_v40  ;;  %v6669_v40 = vld [vmem:[#allocation13_spill] sm:$0xff] }
 0x284   :  { %1280 = vmatprep.mubr.f32.mxu0 %v4255_v41  ;;  %v6670_v41 = vld [vmem:[#allocation32_spill] sm:$0xff] }
 0x285   :  { %2923 = vmatmul.mubr.msk.f32.gmra.mrb[30].mxu1 %vm79_vm2, %v4601_v6  ;;  %v6690_v6 = vld [vmem:[#allocation28_spill] sm:$0xff] }
 0x286   :  { %1543 = vmatprep.mubr.f32.mxu1 %v6645_v26 }
 0x287   :  { %1281 = vmatmul.mubr.f32.gmra.mrb[48].mxu0 %v4267_v47  ;;  %v6671_v47 = vld [vmem:[#allocation14_spill] sm:$0xff] }
 0x288   :  { %1286 = vmatprep.mubr.f32.mxu0 %v4270_v48  ;;  %v6672_v48 = vld [vmem:[#allocation15_spill] sm:$0xff] }
 0x289   :  { %2924 = vmatmul.mubr.msk.f32.gmra.mrb[32].mxu1 %vm79_vm2, %v4604_v19  ;;  %v6682_v19 = vld [vmem:[#allocation22_spill] sm:$0xff] }
 0x28a   :  { %1549 = vmatprep.mubr.f32.mxu1 %v6645_v26 }
 0x28b   :  { %1287 = vmatmul.mubr.f32.gmra.mrb[50].mxu0 %v4273_v49  ;;  %v6673_v49 = vld [vmem:[#allocation33_spill] sm:$0xff] }
 0x28c   :  { %1292 = vmatprep.mubr.f32.mxu0 %v4285_v16  ;;  %v6674_v16 = vld [vmem:[#allocation16_spill] sm:$0xff] }
 0x28d   :  { %2925 = vmatmul.mubr.msk.f32.gmra.mrb[34].mxu1 %vm79_vm2, %v4607_v18  ;;  %v6681_v18 = vld [vmem:[#allocation21_spill] sm:$0xff] }
 0x28e   :  { %1555 = vmatprep.mubr.f32.mxu1 %v6645_v26 }
 0x28f   :  { %1293 = vmatmul.mubr.f32.gmra.mrb[52].mxu0 %v4288_v53  ;;  %v6675_v53 = vld [vmem:[#allocation17_spill] sm:$0xff] }
 0x290   :  { %1298 = vmatprep.mubr.f32.mxu0 %v4291_v54  ;;  %v6676_v54 = vld [vmem:[#allocation34_spill] sm:$0xff] }
 0x291   :  { %2926 = vmatmul.mubr.msk.f32.gmra.mrb[36].mxu1 %vm79_vm2, %v4619_v61 }
 0x292   :  { %1561 = vmatprep.mubr.f32.mxu1 %v6645_v26 }
 0x293   :  { %1299 = vmatmul.mubr.f32.gmra.mrb[54].mxu0 %v4294_v55  ;;  %v6677_v55 = vld [vmem:[#allocation18_spill] sm:$0xff] }
 0x294   :  { %1304 = vmatprep.mubr.f32.mxu0 %v4306_v58  ;;  %v6678_v58 = vld [vmem:[#allocation19_spill] sm:$0xff] }
 0x295   :  { %2927 = vmatmul.mubr.msk.f32.gmra.mrb[38].mxu1 %vm79_vm2, %v4622_v57 }
 0x296   :  { %1567 = vmatprep.mubr.f32.mxu1 %v6645_v26 }
 0x297   :  { %1305 = vmatmul.mubr.f32.gmra.mrb[56].mxu0 %v4309_v24  ;;  %v6679_v24 = vld [vmem:[#allocation35_spill] sm:$0xff] }
 0x298   :  { %1310 = vmatprep.mubr.f32.mxu0 %v4312_v59  ;;  %v6680_v59 = vld [vmem:[#allocation20_spill] sm:$0xff] }
 0x299   :  { %2928 = vmatmul.mubr.msk.f32.gmra.mrb[40].mxu1 %vm79_vm2, %v4625_v56 }
 0x29a   :  { %1573 = vmatprep.mubr.f32.mxu1 %v6645_v26 }
 0x29b   :  { %1311 = vmatmul.mubr.f32.gmra.mrb[58].mxu0 %v6655_v34 }
 0x29c   :  { %1316 = vmatprep.mubr.f32.mxu0 %v6656_v35 }
 0x29d   :  { %2929 = vmatmul.mubr.msk.f32.gmra.mrb[42].mxu1 %vm79_vm2, %v6657_v9 }
 0x29e   :  { %1579 = vmatprep.mubr.f32.mxu1 %v6645_v26 }
 0x29f   :  { %1317 = vmatmul.mubr.f32.gmra.mrb[60].mxu0 %v6658_v10 }
 0x2a0   :  { %1322 = vmatprep.mubr.f32.mxu0 %v6659_v13 }
 0x2a1   :  { %2930 = vmatmul.mubr.msk.f32.gmra.mrb[44].mxu1 %vm79_vm2, %v4640_v50 }
 0x2a2   :  { %1585 = vmatprep.mubr.f32.mxu1 %v6645_v26 }
 0x2a3   :  { %1323 = vmatmul.mubr.f32.gmra.mrb[62].mxu0 %v6660_v21 }
 0x2a4   :  { %1328 = vmatprep.mubr.f32.mxu0 %v6661_v22 }
 0x2a5   :  { %2931 = vmatmul.mubr.msk.f32.gmra.mrb[46].mxu1 %vm79_vm2, %v4643_v45 }
 0x2a6   :  { %1591 = vmatprep.mubr.f32.mxu1 %v6645_v26 }
 0x2a7   :  { %1329 = vmatmul.mubr.f32.gmra.mrb[64].mxu0 %v6662_v23 }
 0x2a8   :  { %1334 = vmatprep.mubr.f32.mxu0 %v6663_v25 }
 0x2a9   :  { %2932 = vmatmul.mubr.msk.f32.gmra.mrb[48].mxu1 %vm79_vm2, %v6664_v31 }
 0x2aa   :  { %1597 = vmatprep.mubr.f32.mxu1 %v6645_v26 }
 0x2ab   :  { %1335 = vmatmul.mubr.f32.gmra.mrb[66].mxu0 %v6665_v32 }
 0x2ac   :  { %1340 = vmatprep.mubr.f32.mxu0 %v6666_v33 }
 0x2ad   :  { %2933 = vmatmul.mubr.msk.f32.gmra.mrb[50].mxu1 %vm79_vm2, %v6667_v38 }
 0x2ae   :  { %1603 = vmatprep.mubr.f32.mxu1 %v6645_v26 }
 0x2af   :  { %1341 = vmatmul.mubr.f32.gmra.mrb[68].mxu0 %v6668_v39 }
 0x2b0   :  { %1346 = vmatprep.mubr.f32.mxu0 %v6669_v40 }
 0x2b1   :  { %2934 = vmatmul.mubr.msk.f32.gmra.mrb[52].mxu1 %vm79_vm2, %v6670_v41 }
 0x2b2   :  { %1609 = vmatprep.mubr.f32.mxu1 %v6645_v26 }
 0x2b3   :  { %1347 = vmatmul.mubr.f32.gmra.mrb[70].mxu0 %v6671_v47 }
 0x2b4   :  { %1352 = vmatprep.mubr.f32.mxu0 %v6672_v48 }
 0x2b5   :  { %2935 = vmatmul.mubr.msk.f32.gmra.mrb[54].mxu1 %vm79_vm2, %v6673_v49 }
 0x2b6   :  { %1615 = vmatprep.mubr.f32.mxu1 %v6645_v26 }
 0x2b7   :  { %1353 = vmatmul.mubr.f32.gmra.mrb[72].mxu0 %v6674_v16 }
 0x2b8   :  { %1358 = vmatprep.mubr.f32.mxu0 %v6675_v53 }
 0x2b9   :  { %2936 = vmatmul.mubr.msk.f32.gmra.mrb[56].mxu1 %vm79_vm2, %v6676_v54 }
 0x2ba   :  { %1621 = vmatprep.mubr.f32.mxu1 %v6645_v26 }
 0x2bb   :  { %1359 = vmatmul.mubr.f32.gmra.mrb[74].mxu0 %v6677_v55 }
 0x2bc   :  { %1364 = vmatprep.mubr.f32.mxu0 %v6678_v58 }
 0x2bd   :  { %2937 = vmatmul.mubr.msk.f32.gmra.mrb[58].mxu1 %vm79_vm2, %v6679_v24 }
 0x2be   :  { %1627 = vmatprep.mubr.f32.mxu1 %v6645_v26 }
 0x2bf   :  { %1365 = vmatmul.mubr.f32.gmra.mrb[76].mxu0 %v6680_v59 }
 0x2c0   :  { %1370 = vmatprep.mubr.f32.mxu0 %v6681_v18 }
 0x2c1   :  { %2938 = vmatmul.mubr.msk.f32.gmra.mrb[60].mxu1 %vm79_vm2, %v4687_v44 }
 0x2c2   :  { %1633 = vmatprep.mubr.f32.mxu1 %v6645_v26 }
 0x2c3   :  { %1371 = vmatmul.mubr.f32.gmra.mrb[78].mxu0 %v6682_v19 }
 0x2c4   :  { %1376 = vmatprep.mubr.f32.mxu0 %v6683_v5 }
 0x2c5   :  { %2939 = vmatmul.mubr.msk.f32.gmra.mrb[62].mxu1 %vm79_vm2, %v4690_v7 }
 0x2c6   :  { %1639 = vmatprep.mubr.f32.mxu1 %v6645_v26 }
 0x2c7   :  { %1377 = vmatmul.mubr.f32.gmra.mrb[80].mxu0 %v6684_v37 }
 0x2c8   :  { %1382 = vmatprep.mubr.f32.mxu0 %v6685_v27 }
 0x2c9   :  { %2940 = vmatmul.mubr.msk.f32.gmra.mrb[64].mxu1 %vm79_vm2, %v6686_v60 }
 0x2ca   :  { %1645 = vmatprep.mubr.f32.mxu1 %v6645_v26 }
 0x2cb   :  { %1383 = vmatmul.mubr.f32.gmra.mrb[82].mxu0 %v6687_v2 }
 0x2cc   :  { %1388 = vmatprep.mubr.f32.mxu0 %v6688_v0 }
 0x2cd   :  { %2941 = vmatmul.mubr.msk.f32.gmra.mrb[66].mxu1 %vm79_vm2, %v6689_v14 }
 0x2ce   :  { %1651 = vmatprep.mubr.f32.mxu1 %v6645_v26 }
 0x2cf   :  { %1389 = vmatmul.mubr.f32.gmra.mrb[84].mxu0 %v6690_v6 }
 0x2d1   :  { %2942 = vmatmul.mubr.msk.f32.gmra.mrb[68].mxu1 %vm79_vm2, %v4708_v15 }
 0x2d2   :  { %1657 = vmatprep.mubr.f32.mxu1 %v6645_v26 }
 0x2d5   :  { %2943 = vmatmul.mubr.msk.f32.gmra.mrb[70].mxu1 %vm79_vm2, %v4711_v62 }
 0x2d6   :  { %1663 = vmatprep.mubr.f32.mxu1 %v6645_v26 }
 0x2d9   :  { %2944 = vmatmul.mubr.msk.f32.gmra.mrb[72].mxu1 %vm79_vm2, %v4714_v63 }
 0x2da   :  { %1669 = vmatprep.mubr.f32.mxu1 %v6645_v26 }
 0x2dd   :  { %2945 = vmatmul.mubr.msk.f32.gmra.mrb[74].mxu1 %vm79_vm2, %v4717_v52 }
 0x2de   :  { %1675 = vmatprep.mubr.f32.mxu1 %v6645_v26 }
 0x2e1   :  { %2946 = vmatmul.mubr.msk.f32.gmra.mrb[76].mxu1 %vm79_vm2, %v4723_v1 }
 0x2e2   :  { %1681 = vmatprep.mubr.f32.mxu1 %v6645_v26 }
 0x2e5   :  { %2947 = vmatmul.mubr.msk.f32.gmra.mrb[78].mxu1 %vm79_vm2, %v4726_v43 }
 0x2e6   :  { %1687 = vmatprep.mubr.f32.mxu1 %v6645_v26 }
 0x2e9   :  { %2948 = vmatmul.mubr.msk.f32.gmra.mrb[80].mxu1 %vm79_vm2, %v4729_v3 }
 0x2ea   :  { %1693 = vmatprep.mubr.f32.mxu1 %v6645_v26 }
 0x2ed   :  { %2949 = vmatmul.mubr.msk.f32.gmra.mrb[82].mxu1 %vm79_vm2, %v4732_v46 }
 0x2ee   :  { %1699 = vmatprep.mubr.f32.mxu1 %v6645_v26 }
 0x2f1   :  { %2950 = vmatmul.mubr.msk.f32.gmra.mrb[84].mxu1 %vm79_vm2, %v4738_v42 }
 0x2f2   :  { %1705 = vmatprep.mubr.f32.mxu1 %v6645_v26 }
 0x2f5   :  { %2951 = vmatmul.mubr.msk.f32.gmra.mrb[86].mxu1 %vm79_vm2, %v4741_v30 }
 0x2fe   :  { %v1144_v1 = vpop.f32.mrb[2].mxu0 }
 0x2ff   :  { %v1146_v61 = vpop.f32.mrb[3].mxu0 }
 0x302   :  { %v1150_v57 = vpop.f32.mrb[4].mxu0 }
 0x303   :  { %v1152_v56 = vpop.f32.mrb[5].mxu0 }
 0x306   :  { %v1156_v50 = vpop.f32.mrb[6].mxu0 }
 0x307   :  { %v1158_v45 = vpop.f32.mrb[7].mxu0 }
 0x30a   :  { %v1162_v52 = vpop.f32.mrb[8].mxu0 }
 0x30b   :  { %v1164_v44 = vpop.f32.mrb[9].mxu0 }
 0x30e   :  { %v1168_v7 = vpop.f32.mrb[10].mxu0 }
 0x30f   :  { %v4945_v15 = vpop.f32.mrb[11].mxu0 }
 0x312   :  { %v4947_v62 = vpop.f32.mrb[12].mxu0 }
 0x313   :  { %v4949_v63 = vpop.f32.mrb[13].mxu0 }
 0x316   :  { %v4951_v43 = vpop.f32.mrb[14].mxu0 }
 0x317   :  { %v4953_v26 = vpop.f32.mrb[15].mxu0 }
 0x31a   :  { %v4955_v3 = vpop.f32.mrb[16].mxu0 }
 0x31b   :  { %v4957_v46 = vpop.f32.mrb[17].mxu0 }
 0x31e   :  { %v4959_v42 = vpop.f32.mrb[18].mxu0 }
 0x31f   :  { %v4961_v30 = vpop.f32.mrb[19].mxu0 }
 0x322   :  { %v4963_v11 = vpop.f32.mrb[20].mxu0 }
 0x323   :  { %v4965_v12 = vpop.f32.mrb[21].mxu0 }
 0x324   :  { %v1461_v17 = vpop.f32.mrb[4].mxu1 }
 0x325   :  { %v4967_v36 = vadd.f32 %v1461_v17, %v1144_v1  ;;  %v1463_v29 = vpop.f32.mrb[5].mxu1 }
 0x326   :  { %v4969_v28 = vadd.f32 %v1463_v29, %v1146_v61  ;;  %v4971_v20 = vpop.f32.mrb[22].mxu0 }
 0x327   :  { %v4973_v4 = vpop.f32.mrb[23].mxu0  ;;  %v1923_v25 = vmul.f32 %v4967_v36, %v4967_v36 }
 0x328   :  { %v1467_v51 = vpop.f32.mrb[6].mxu1  ;;  %v1713_v8 = vsel %vm1712_vm5, %v4969_v28, 0.0  ;;  %v1924_v34 = vmul.f32 %v4969_v28, %v4969_v28 }
 0x329   :  { %v4979_v35 = vadd.f32 %v1467_v51, %v1150_v57  ;;  %v1469_v9 = vpop.f32.mrb[7].mxu1  ;;  %v1714_v10 = vadd.f32 %v1713_v8, %v4967_v36 }
 0x32a   :  { %v4982_v13 = vadd.f32 %v1469_v9, %v1152_v56  ;;  %v4984_v21 = vpop.f32.mrb[24].mxu0  ;;  %v2007_v22 = vsel %vm1712_vm5, %v1924_v34, 0.0 }
 0x32b   :  { %1715 = vadd.xlane.f32.xlu0 %v1714_v10  ;;  %v4987_v23 = vpop.f32.mrb[25].mxu0  ;;  %v2008_v39 = vadd.f32 %v2007_v22, %v1923_v25  ;;  %v1925_v40 = vmul.f32 %v4979_v35, %v4979_v35 }
 0x32c   :  { %v1473_v31 = vpop.f32.mrb[8].mxu1  ;;  %v1926_v32 = vmul.f32 %v4982_v13, %v4982_v13  ;;  %v1717_v49 = vsel %vm1712_vm5, %v4982_v13, 0.0 }
 0x32d   :  { %v4993_v33 = vadd.f32 %v1473_v31, %v1156_v50  ;;  %v1475_v38 = vpop.f32.mrb[9].mxu1  ;;  %v1718_v18 = vadd.f32 %v1717_v49, %v4979_v35 }
 0x32e   :  { %v4997_v41 = vadd.f32 %v1475_v38, %v1158_v45  ;;  %v4999_v47 = vpop.f32.mrb[26].mxu0  ;;  %v2011_v48 = vsel %vm1712_vm5, %v1926_v32, 0.0 }
 0x32f   :  { %2009 = vadd.xlane.f32.xlu0 %v2008_v39  ;;  %v5004_v16 = vpop.f32.mrb[27].mxu0  ;;  %v2012_v53 = vadd.f32 %v2011_v48, %v1925_v40  ;;  %v1927_v2 = vmul.f32 %v4993_v33, %v4993_v33 }
 0x330   :  { %v1479_v54 = vpop.f32.mrb[10].mxu1  ;;  %v1721_v55 = vsel %vm1712_vm5, %v4997_v41, 0.0  ;;  %v1928_v58 = vmul.f32 %v4997_v41, %v4997_v41 }
 0x331   :  { %v5010_v24 = vadd.f32 %v1479_v54, %v1162_v52  ;;  %v1481_v59 = vpop.f32.mrb[11].mxu1  ;;  %2013 = vadd.xlane.f32.xlu1 %v2012_v53  ;;  %v1722_v60 = vadd.f32 %v1721_v55, %v4993_v33 }
 0x332   :  { %v5013_v19 = vadd.f32 %v1481_v59, %v1164_v44  ;;  %v5015_v5 = vpop.f32.mrb[28].mxu0  ;;  %v2015_v37 = vsel %vm1712_vm5, %v1928_v58, 0.0 }
 0x333   :  { %1719 = vadd.xlane.f32.xlu0 %v1718_v18  ;;  %v5018_v27 = vpop.f32.mrb[29].mxu0  ;;  %v2016_v57 = vadd.f32 %v2015_v37, %v1927_v2  ;;  %v1929_v34 = vmul.f32 %v5010_v24, %v5010_v24 }
 0x334   :  { %v1485_v0 = vpop.f32.mrb[12].mxu1  ;;  %v1725_v14 = vsel %vm1712_vm5, %v5013_v19, 0.0  ;;  %v1930_v6 = vmul.f32 %v5013_v19, %v5013_v19 }
 0x335   :  { %v5027_v1 = vadd.f32 %v1485_v0, %v1168_v7  ;;  %v1487_v61 = vpop.f32.mrb[13].mxu1  ;;  %1723 = vadd.xlane.f32.xlu1 %v1722_v60  ;;  %v1726_v52 = vadd.f32 %v1725_v14, %v5010_v24 }
 0x336   :  { %v5030_v56 = vadd.f32 %v1487_v61, %v4945_v15  ;;  %v5032_v50 = vpop.f32.mrb[30].mxu0  ;;  %v2019_v7 = vsel %vm1712_vm5, %v1930_v6, 0.0 }
 0x337   :  { %2017 = vadd.xlane.f32.xlu0 %v2016_v57  ;;  %v5034_v45 = vpop.f32.mrb[31].mxu0  ;;  %v2020_v31 = vadd.f32 %v2019_v7, %v1929_v34 }
 0x338   :  { %v1491_v44 = vpop.f32.mrb[14].mxu1  ;;  %v1729_v17 = vsel %vm1712_vm5, %v5030_v56, 0.0  ;;  %v1932_v29 = vmul.f32 %v5030_v56, %v5030_v56 }
 0x339   :  { %v5043_v51 = vadd.f32 %v1491_v44, %v4947_v62  ;;  %v1493_v15 = vpop.f32.mrb[15].mxu1  ;;  %1727 = vadd.xlane.f32.xlu1 %v1726_v52  ;;  %v1730_v8 = vadd.f32 %v1729_v17, %v5027_v1  ;;  %v1931_v62 = vmul.f32 %v5027_v1, %v5027_v1 }
 0x33a   :  { %v5049_v9 = vadd.f32 %v1493_v15, %v4949_v63  ;;  %v5051_v10 = vpop.f32.mrb[32].mxu0  ;;  %v2023_v22 = vsel %vm1712_vm5, %v1932_v29, 0.0 }
 0x33b   :  { %1731 = vadd.xlane.f32.xlu0 %v1730_v8  ;;  %v5054_v25 = vpop.f32.mrb[33].mxu0  ;;  %v2024_v48 = vadd.f32 %v2023_v22, %v1931_v62  ;;  %v1933_v2 = vmul.f32 %v5043_v51, %v5043_v51 }
 0x33c   :  { %v1497_v32 = vpop.f32.mrb[16].mxu1  ;;  %v1733_v38 = vsel %vm1712_vm5, %v5049_v9, 0.0  ;;  %v1934_v39 = vmul.f32 %v5049_v9, %v5049_v9 }
 0x33d   :  { %v5063_v63 = vadd.f32 %v1497_v32, %v4951_v43  ;;  %v1499_v40 = vpop.f32.mrb[17].mxu1  ;;  %2021 = vadd.xlane.f32.xlu1 %v2020_v31  ;;  %v1734_v55 = vadd.f32 %v1733_v38, %v5043_v51 }
 0x33e   :  { %v5066_v49 = vadd.f32 %v1499_v40, %v4953_v26  ;;  %v5068_v53 = vpop.f32.mrb[34].mxu0  ;;  %v2027_v43 = vsel %vm1712_vm5, %v1934_v39, 0.0 }
 0x33f   :  { %2025 = vadd.xlane.f32.xlu0 %v2024_v48  ;;  %v5070_v54 = vpop.f32.mrb[35].mxu0  ;;  %v2028_v57 = vadd.f32 %v2027_v43, %v1933_v2 }
 0x340   :  { %v1503_v58 = vpop.f32.mrb[18].mxu1  ;;  %v1737_v59 = vsel %vm1712_vm5, %v5066_v49, 0.0  ;;  %v1936_v18 = vmul.f32 %v5066_v49, %v5066_v49 }
 0x341   :  { %v5079_v37 = vadd.f32 %v1503_v58, %v4955_v3  ;;  %v1505_v26 = vpop.f32.mrb[19].mxu1  ;;  %1735 = vadd.xlane.f32.xlu1 %v1734_v55  ;;  %v1738_v60 = vadd.f32 %v1737_v59, %v5063_v63  ;;  %v1935_v3 = vmul.f32 %v5063_v63, %v5063_v63 }
 0x342   :  { %v5085_v0 = vadd.f32 %v1505_v26, %v4957_v46  ;;  %v5087_v14 = vpop.f32.mrb[36].mxu0  ;;  %v2031_v6 = vsel %vm1712_vm5, %v1936_v18, 0.0 }
 0x343   :  { %1739 = vadd.xlane.f32.xlu0 %v1738_v60  ;;  %v5090_v61 = vpop.f32.mrb[37].mxu0  ;;  %v2032_v29 = vadd.f32 %v2031_v6, %v1935_v3  ;;  %v1937_v40 = vmul.f32 %v5079_v37, %v5079_v37 }
 0x344   :  { %v1509_v52 = vpop.f32.mrb[20].mxu1  ;;  %v1741_v44 = vsel %vm1712_vm5, %v5085_v0, 0.0  ;;  %v1938_v17 = vmul.f32 %v5085_v0, %v5085_v0 }
 0x345   :  { %v5099_v46 = vadd.f32 %v1509_v52, %v4959_v42  ;;  %v1511_v7 = vpop.f32.mrb[21].mxu1  ;;  %2029 = vadd.xlane.f32.xlu1 %v2028_v57  ;;  %v1742_v22 = vadd.f32 %v1741_v44, %v5079_v37 }
 0x346   :  { %v5102_v15 = vadd.f32 %v1511_v7, %v4961_v30  ;;  %v5104_v8 = vpop.f32.mrb[38].mxu0  ;;  %v2035_v42 = vsel %vm1712_vm5, %v1938_v17, 0.0 }
 0x347   :  { %2033 = vadd.xlane.f32.xlu0 %v2032_v29  ;;  %v5106_v34 = vpop.f32.mrb[39].mxu0  ;;  %v2036_v43 = vadd.f32 %v2035_v42, %v1937_v40 }
 0x348   :  { %v1515_v31 = vpop.f32.mrb[22].mxu1  ;;  %v1745_v62 = vsel %vm1712_vm5, %v5102_v15, 0.0  ;;  %v1940_v32 = vmul.f32 %v5102_v15, %v5102_v15 }
 0x349   :  { %v5115_v38 = vadd.f32 %v1515_v31, %v4963_v11  ;;  %v1517_v30 = vpop.f32.mrb[23].mxu1  ;;  %1743 = vadd.xlane.f32.xlu1 %v1742_v22  ;;  %v1746_v39 = vadd.f32 %v1745_v62, %v5099_v46  ;;  %v1939_v11 = vmul.f32 %v5099_v46, %v5099_v46 }
 0x34a   :  { %v5121_v48 = vadd.f32 %v1517_v30, %v4965_v12  ;;  %v5123_v55 = vpop.f32.mrb[40].mxu0  ;;  %v2039_v58 = vsel %vm1712_vm5, %v1940_v32, 0.0 }
 0x34b   :  { %1747 = vadd.xlane.f32.xlu0 %v1746_v39  ;;  %v5126_v59 = vpop.f32.mrb[41].mxu0  ;;  %v2040_v6 = vadd.f32 %v2039_v58, %v1939_v11  ;;  %v1941_v62 = vmul.f32 %v5115_v38, %v5115_v38 }
 0x34c   :  { %v1521_v18 = vpop.f32.mrb[24].mxu1  ;;  %v1749_v26 = vsel %vm1712_vm5, %v5121_v48, 0.0  ;;  %v1942_v60 = vmul.f32 %v5121_v48, %v5121_v48 }
 0x34d   :  { %v5135_v12 = vadd.f32 %v1521_v18, %v4971_v20  ;;  %v1523_v2 = vpop.f32.mrb[25].mxu1  ;;  %2037 = vadd.xlane.f32.xlu1 %v2036_v43  ;;  %v1750_v44 = vadd.f32 %v1749_v26, %v5115_v38 }
 0x34e   :  { %v5138_v57 = vadd.f32 %v1523_v2, %v4973_v4  ;;  %v5140_v3 = vpop.f32.mrb[42].mxu0  ;;  %v2043_v20 = vsel %vm1712_vm5, %v1942_v60, 0.0 }
 0x34f   :  { %2041 = vadd.xlane.f32.xlu0 %v2040_v6  ;;  %v5142_v52 = vpop.f32.mrb[43].mxu0  ;;  %v2044_v40 = vadd.f32 %v2043_v20, %v1941_v62 }
 0x350   :  { %v1527_v17 = vpop.f32.mrb[26].mxu1  ;;  %v1753_v7 = vsel %vm1712_vm5, %v5138_v57, 0.0  ;;  %v1944_v29 = vmul.f32 %v5138_v57, %v5138_v57 }
 0x351   :  { %v5151_v22 = vadd.f32 %v1527_v17, %v4984_v21  ;;  %v1529_v4 = vpop.f32.mrb[27].mxu1  ;;  %1751 = vadd.xlane.f32.xlu1 %v1750_v44  ;;  %v1754_v31 = vadd.f32 %v1753_v7, %v5135_v12  ;;  %v1943_v21 = vmul.f32 %v5135_v12, %v5135_v12 }
 0x352   :  { %v5157_v42 = vadd.f32 %v1529_v4, %v4987_v23  ;;  %v5159_v32 = vpop.f32.mrb[44].mxu0  ;;  %v2047_v30 = vsel %vm1712_vm5, %v1944_v29, 0.0 }
 0x353   :  { %1755 = vadd.xlane.f32.xlu0 %v1754_v31  ;;  %v5162_v39 = vpop.f32.mrb[45].mxu0  ;;  %v2048_v26 = vadd.f32 %v2047_v30, %v1943_v21  ;;  %v1945_v31 = vmul.f32 %v5151_v22, %v5151_v22 }
 0x354   :  { %v1533_v58 = vpop.f32.mrb[28].mxu1  ;;  %v1757_v43 = vsel %vm1712_vm5, %v5157_v42, 0.0  ;;  %v1946_v11 = vmul.f32 %v5157_v42, %v5157_v42 }
 0x355   :  { %v5171_v23 = vadd.f32 %v1533_v58, %v4999_v47  ;;  %v1535_v18 = vpop.f32.mrb[29].mxu1  ;;  %2045 = vadd.xlane.f32.xlu1 %v2044_v40  ;;  %v1758_v44 = vadd.f32 %v1757_v43, %v5151_v22 }
 0x356   :  { %v5174_v60 = vadd.f32 %v1535_v18, %v5004_v16  ;;  %v5176_v2 = vpop.f32.mrb[46].mxu0  ;;  %v2051_v47 = vsel %vm1712_vm5, %v1946_v11, 0.0 }
 0x357   :  { %2049 = vadd.xlane.f32.xlu0 %v2048_v26  ;;  %v5178_v6 = vpop.f32.mrb[47].mxu0  ;;  %v2052_v58 = vadd.f32 %v2051_v47, %v1945_v31 }
 0x358   :  { %v1539_v17 = vpop.f32.mrb[30].mxu1  ;;  %v1761_v7 = vsel %vm1712_vm5, %v5174_v60, 0.0  ;;  %v1948_v20 = vmul.f32 %v5174_v60, %v5174_v60 }
 0x359   :  { %v5187_v29 = vadd.f32 %v1539_v17, %v5015_v5  ;;  %v1541_v16 = vpop.f32.mrb[31].mxu1  ;;  %1759 = vadd.xlane.f32.xlu1 %v1758_v44  ;;  %v1762_v4 = vadd.f32 %v1761_v7, %v5171_v23  ;;  %v1947_v5 = vmul.f32 %v5171_v23, %v5171_v23 }
 0x35a   :  { %v5193_v62 = vadd.f32 %v1541_v16, %v5018_v27  ;;  %v5195_v30 = vpop.f32.mrb[48].mxu0  ;;  %v2055_v40 = vsel %vm1712_vm5, %v1948_v20, 0.0 }
 0x35b   :  { %1763 = vadd.xlane.f32.xlu0 %v1762_v4  ;;  %v5198_v21 = vpop.f32.mrb[49].mxu0  ;;  %v2056_v44 = vadd.f32 %v2055_v40, %v1947_v5  ;;  %v1949_v5 = vmul.f32 %v5187_v29, %v5187_v29 }
 0x35c   :  { %v1545_v43 = vpop.f32.mrb[32].mxu1  ;;  %v1765_v11 = vsel %vm1712_vm5, %v5193_v62, 0.0  ;;  %v1950_v18 = vmul.f32 %v5193_v62, %v5193_v62 }
 0x35d   :  { %v5207_v27 = vadd.f32 %v1545_v43, %v5032_v50  ;;  %v1547_v26 = vpop.f32.mrb[33].mxu1  ;;  %2053 = vadd.xlane.f32.xlu1 %v2052_v58  ;;  %v1766_v20 = vadd.f32 %v1765_v11, %v5187_v29 }
 0x35e   :  { %v5210_v17 = vadd.f32 %v1547_v26, %v5034_v45  ;;  %v5212_v7 = vpop.f32.mrb[50].mxu0  ;;  %v2059_v50 = vsel %vm1712_vm5, %v1950_v18, 0.0 }
 0x35f   :  { %6691 = vst [vmem:[#allocation2_spill] sm:$0xff] %v5207_v27  ;;  %2057 = vadd.xlane.f32.xlu0 %v2056_v44  ;;  %v5214_v47 = vpop.f32.mrb[51].mxu0  ;;  %v2060_v44 = vadd.f32 %v2059_v50, %v1949_v5 }
 0x360   :  { %6692 = vst [vmem:[#allocation3_spill] sm:$0xff] %v5210_v17  ;;  %v1551_v16 = vpop.f32.mrb[34].mxu1  ;;  %v1769_v4 = vsel %vm1712_vm5, %v5210_v17, 0.0  ;;  %v1952_v31 = vmul.f32 %v5210_v17, %v5210_v17 }
 0x361   :  { %v5223_v40 = vadd.f32 %v1551_v16, %v5051_v10  ;;  %v1553_v45 = vpop.f32.mrb[35].mxu1  ;;  %1767 = vadd.xlane.f32.xlu1 %v1766_v20  ;;  %v1770_v58 = vadd.f32 %v1769_v4, %v5207_v27  ;;  %v1951_v10 = vmul.f32 %v5207_v27, %v5207_v27 }
 0x362   :  { %v5229_v43 = vadd.f32 %v1553_v45, %v5054_v25  ;;  %v5231_v11 = vpop.f32.mrb[52].mxu0  ;;  %v2063_v18 = vsel %vm1712_vm5, %v1952_v31, 0.0 }
 0x363   :  { %6693 = vst [vmem:[#allocation29_spill] sm:$0xff] %v5223_v40  ;;  %1771 = vadd.xlane.f32.xlu0 %v1770_v58  ;;  %v5234_v26 = vpop.f32.mrb[53].mxu0  ;;  %v2064_v31 = vadd.f32 %v2063_v18, %v1951_v10 }
 0x364   :  { %6694 = vst [vmem:[#allocation4_spill] sm:$0xff] %v5229_v43  ;;  %v1557_v20 = vpop.f32.mrb[36].mxu1  ;;  %v1773_v16 = vsel %vm1712_vm5, %v5229_v43, 0.0  ;;  %v1954_v4 = vmul.f32 %v5229_v43, %v5229_v43 }
 0x365   :  { %v5243_v25 = vadd.f32 %v1557_v20, %v5068_v53  ;;  %v1559_v45 = vpop.f32.mrb[37].mxu1  ;;  %2061 = vadd.xlane.f32.xlu1 %v2060_v44  ;;  %v1774_v17 = vadd.f32 %v1773_v16, %v5223_v40  ;;  %v1953_v20 = vmul.f32 %v5223_v40, %v5223_v40 }
 0x366   :  { %v5246_v58 = vadd.f32 %v1559_v45, %v5070_v54  ;;  %v5248_v50 = vpop.f32.mrb[54].mxu0  ;;  %v2067_v53 = vsel %vm1712_vm5, %v1954_v4, 0.0 }
 0x367   :  { %6695 = vst [vmem:[#allocation5_spill] sm:$0xff] %v5243_v25  ;;  %2065 = vadd.xlane.f32.xlu0 %v2064_v31  ;;  %v5250_v5 = vpop.f32.mrb[55].mxu0 }
 0x368   :  { %6696 = vst [vmem:[#allocation6_spill] sm:$0xff] %v5246_v58  ;;  %v1563_v27 = vpop.f32.mrb[38].mxu1  ;;  %v1777_v43 = vsel %vm1712_vm5, %v5246_v58, 0.0  ;;  %v1956_v44 = vmul.f32 %v5246_v58, %v5246_v58  ;;  %v2068_v58 = vadd.f32 %v2067_v53, %v1953_v20 }
 0x369   :  { %v5259_v18 = vadd.f32 %v1563_v27, %v5087_v14  ;;  %v1565_v54 = vpop.f32.mrb[39].mxu1  ;;  %1775 = vadd.xlane.f32.xlu1 %v1774_v17  ;;  %v1778_v10 = vadd.f32 %v1777_v43, %v5243_v25  ;;  %v1955_v14 = vmul.f32 %v5243_v25, %v5243_v25 }
 0x36a   :  { %v5265_v16 = vadd.f32 %v1565_v54, %v5090_v61  ;;  %v5267_v45 = vpop.f32.mrb[56].mxu0  ;;  %v2071_v4 = vsel %vm1712_vm5, %v1956_v44, 0.0 }
 0x36b   :  { %6697 = vst [vmem:[#allocation7_spill] sm:$0xff] %v5259_v18  ;;  %1779 = vadd.xlane.f32.xlu0 %v1778_v10  ;;  %v5270_v31 = vpop.f32.mrb[57].mxu0  ;;  %v2072_v44 = vadd.f32 %v2071_v4, %v1955_v14 }
 0x36c   :  { %6698 = vst [vmem:[#allocation8_spill] sm:$0xff] %v5265_v16  ;;  %v1569_v27 = vpop.f32.mrb[40].mxu1  ;;  %v1781_v17 = vsel %vm1712_vm5, %v5265_v16, 0.0  ;;  %v1958_v43 = vmul.f32 %v5265_v16, %v5265_v16 }
 0x36d   :  { %v5279_v61 = vadd.f32 %v1569_v27, %v5104_v8  ;;  %v1571_v54 = vpop.f32.mrb[41].mxu1  ;;  %2069 = vadd.xlane.f32.xlu1 %v2068_v58  ;;  %v1782_v25 = vadd.f32 %v1781_v17, %v5259_v18  ;;  %v1957_v27 = vmul.f32 %v5259_v18, %v5259_v18 }
 0x36e   :  { %v5282_v10 = vadd.f32 %v1571_v54, %v5106_v34  ;;  %v5284_v53 = vpop.f32.mrb[58].mxu0  ;;  %v2075_v8 = vsel %vm1712_vm5, %v1958_v43, 0.0 }
 0x36f   :  { %6699 = vst [vmem:[#allocation9_spill] sm:$0xff] %v5279_v61  ;;  %2073 = vadd.xlane.f32.xlu0 %v2072_v44  ;;  %v5286_v20 = vpop.f32.mrb[59].mxu0 }
 0x370   :  { %6700 = vst [vmem:[#allocation30_spill] sm:$0xff] %v5282_v10  ;;  %v1575_v40 = vpop.f32.mrb[42].mxu1  ;;  %v1785_v16 = vsel %vm1712_vm5, %v5282_v10, 0.0  ;;  %v1960_v58 = vmul.f32 %v5282_v10, %v5282_v10  ;;  %v2076_v10 = vadd.f32 %v2075_v8, %v1957_v27 }
 0x371   :  { %v5295_v4 = vadd.f32 %v1575_v40, %v5123_v55  ;;  %v1577_v34 = vpop.f32.mrb[43].mxu1  ;;  %1783 = vadd.xlane.f32.xlu1 %v1782_v25  ;;  %v1786_v14 = vadd.f32 %v1785_v16, %v5279_v61  ;;  %v1959_v55 = vmul.f32 %v5279_v61, %v5279_v61 }
 0x372   :  { %v5301_v17 = vadd.f32 %v1577_v34, %v5126_v59  ;;  %v5303_v54 = vpop.f32.mrb[60].mxu0  ;;  %v2079_v43 = vsel %vm1712_vm5, %v1960_v58, 0.0 }
 0x373   :  { %6701 = vst [vmem:[#allocation10_spill] sm:$0xff] %v5295_v4  ;;  %1787 = vadd.xlane.f32.xlu0 %v1786_v14  ;;  %v5306_v44 = vpop.f32.mrb[61].mxu0  ;;  %v2080_v58 = vadd.f32 %v2079_v43, %v1959_v55 }
 0x374   :  { %6702 = vst [vmem:[#allocation11_spill] sm:$0xff] %v5301_v17  ;;  %v1581_v40 = vpop.f32.mrb[44].mxu1  ;;  %v1789_v25 = vsel %vm1712_vm5, %v5301_v17, 0.0  ;;  %v1962_v16 = vmul.f32 %v5301_v17, %v5301_v17 }
 0x375   :  { %v5315_v59 = vadd.f32 %v1581_v40, %v5140_v3  ;;  %v1583_v34 = vpop.f32.mrb[45].mxu1  ;;  %2077 = vadd.xlane.f32.xlu1 %v2076_v10  ;;  %v1790_v61 = vadd.f32 %v1789_v25, %v5295_v4  ;;  %v1961_v40 = vmul.f32 %v5295_v4, %v5295_v4 }
 0x376   :  { %v5318_v14 = vadd.f32 %v1583_v34, %v5142_v52  ;;  %v5320_v8 = vpop.f32.mrb[62].mxu0  ;;  %v2083_v3 = vsel %vm1712_vm5, %v1962_v16, 0.0 }
 0x377   :  { %6703 = vst [vmem:[#allocation31_spill] sm:$0xff] %v5315_v59  ;;  %2081 = vadd.xlane.f32.xlu0 %v2080_v58  ;;  %v5322_v27 = vpop.f32.mrb[63].mxu0 }
 0x378   :  { %6704 = vst [vmem:[#allocation12_spill] sm:$0xff] %v5318_v14  ;;  %v1587_v18 = vpop.f32.mrb[46].mxu1  ;;  %v1793_v17 = vsel %vm1712_vm5, %v5318_v14, 0.0  ;;  %v1964_v10 = vmul.f32 %v5318_v14, %v5318_v14  ;;  %v2084_v14 = vadd.f32 %v2083_v3, %v1961_v40 }
 0x379   :  { %v5331_v43 = vadd.f32 %v1587_v18, %v5159_v32  ;;  %v1589_v52 = vpop.f32.mrb[47].mxu1  ;;  %1791 = vadd.xlane.f32.xlu1 %v1790_v61  ;;  %v1794_v55 = vadd.f32 %v1793_v17, %v5315_v59  ;;  %v1963_v32 = vmul.f32 %v5315_v59, %v5315_v59 }
 0x37a   :  { %v5337_v25 = vadd.f32 %v1589_v52, %v5162_v39  ;;  %v5339_v34 = vpop.f32.mrb[64].mxu0  ;;  %v2087_v16 = vsel %vm1712_vm5, %v1964_v10, 0.0 }
 0x37b   :  { %6705 = vst [vmem:[#allocation13_spill] sm:$0xff] %v5331_v43  ;;  %1795 = vadd.xlane.f32.xlu0 %v1794_v55  ;;  %v5342_v58 = vpop.f32.mrb[65].mxu0  ;;  %v2088_v10 = vadd.f32 %v2087_v16, %v1963_v32 }
 0x37c   :  { %6706 = vst [vmem:[#allocation32_spill] sm:$0xff] %v5337_v25  ;;  %v1593_v18 = vpop.f32.mrb[48].mxu1  ;;  %v1797_v61 = vsel %vm1712_vm5, %v5337_v25, 0.0  ;;  %v1966_v17 = vmul.f32 %v5337_v25, %v5337_v25 }
 0x37d   :  { %v5351_v39 = vadd.f32 %v1593_v18, %v5176_v2  ;;  %v1595_v52 = vpop.f32.mrb[49].mxu1  ;;  %2085 = vadd.xlane.f32.xlu1 %v2084_v14  ;;  %v1798_v59 = vadd.f32 %v1797_v61, %v5331_v43  ;;  %v1965_v18 = vmul.f32 %v5331_v43, %v5331_v43 }
 0x37e   :  { %v5354_v55 = vadd.f32 %v1595_v52, %v5178_v6  ;;  %v5356_v3 = vpop.f32.mrb[66].mxu0  ;;  %v2091_v2 = vsel %vm1712_vm5, %v1966_v17, 0.0 }
 0x37f   :  { %6707 = vst [vmem:[#allocation14_spill] sm:$0xff] %v5351_v39  ;;  %2089 = vadd.xlane.f32.xlu0 %v2088_v10  ;;  %v5358_v40 = vpop.f32.mrb[67].mxu0 }
 0x380   :  { %6708 = vst [vmem:[#allocation15_spill] sm:$0xff] %v5354_v55  ;;  %v1599_v4 = vpop.f32.mrb[50].mxu1  ;;  %v1801_v25 = vsel %vm1712_vm5, %v5354_v55, 0.0  ;;  %v1968_v14 = vmul.f32 %v5354_v55, %v5354_v55  ;;  %v2092_v55 = vadd.f32 %v2091_v2, %v1965_v18 }
 0x381   :  { %v5367_v16 = vadd.f32 %v1599_v4, %v5195_v30  ;;  %v1601_v6 = vpop.f32.mrb[51].mxu1  ;;  %1799 = vadd.xlane.f32.xlu1 %v1798_v59  ;;  %v1802_v32 = vadd.f32 %v1801_v25, %v5351_v39  ;;  %v1967_v30 = vmul.f32 %v5351_v39, %v5351_v39 }
 0x382   :  { %v5373_v61 = vadd.f32 %v1601_v6, %v5198_v21  ;;  %v5375_v52 = vpop.f32.mrb[68].mxu0  ;;  %v2095_v17 = vsel %vm1712_vm5, %v1968_v14, 0.0 }
 0x383   :  { %6709 = vst [vmem:[#allocation33_spill] sm:$0xff] %v5367_v16  ;;  %1803 = vadd.xlane.f32.xlu0 %v1802_v32  ;;  %v5378_v10 = vpop.f32.mrb[69].mxu0  ;;  %v2096_v14 = vadd.f32 %v2095_v17, %v1967_v30 }
 0x384   :  { %6710 = vst [vmem:[#allocation16_spill] sm:$0xff] %v5373_v61  ;;  %v1605_v4 = vpop.f32.mrb[52].mxu1  ;;  %v1805_v59 = vsel %vm1712_vm5, %v5373_v61, 0.0  ;;  %v1970_v25 = vmul.f32 %v5373_v61, %v5373_v61 }
 0x385   :  { %v5387_v21 = vadd.f32 %v1605_v4, %v5212_v7  ;;  %v1607_v6 = vpop.f32.mrb[53].mxu1  ;;  %2093 = vadd.xlane.f32.xlu1 %v2092_v55  ;;  %v1806_v39 = vadd.f32 %v1805_v59, %v5367_v16  ;;  %v1969_v4 = vmul.f32 %v5367_v16, %v5367_v16 }
 0x386   :  { %v5390_v32 = vadd.f32 %v1607_v6, %v5214_v47  ;;  %v5392_v2 = vpop.f32.mrb[70].mxu0  ;;  %v2099_v7 = vsel %vm1712_vm5, %v1970_v25, 0.0 }
 0x387   :  { %6711 = vst [vmem:[#allocation17_spill] sm:$0xff] %v5387_v21  ;;  %2097 = vadd.xlane.f32.xlu0 %v2096_v14  ;;  %v5394_v18 = vpop.f32.mrb[71].mxu0 }
 0x388   :  { %6712 = vst [vmem:[#allocation34_spill] sm:$0xff] %v5390_v32  ;;  %v1611_v43 = vpop.f32.mrb[54].mxu1  ;;  %v1809_v61 = vsel %vm1712_vm5, %v5390_v32, 0.0  ;;  %v1972_v55 = vmul.f32 %v5390_v32, %v5390_v32  ;;  %v2100_v32 = vadd.f32 %v2099_v7, %v1969_v4 }
 0x389   :  { %v5403_v17 = vadd.f32 %v1611_v43, %v5231_v11  ;;  %v1613_v47 = vpop.f32.mrb[55].mxu1  ;;  %1807 = vadd.xlane.f32.xlu1 %v1806_v39  ;;  %v1810_v30 = vadd.f32 %v1809_v61, %v5387_v21  ;;  %v1971_v11 = vmul.f32 %v5387_v21, %v5387_v21 }
 0x38a   :  { %v5409_v59 = vadd.f32 %v1613_v47, %v5234_v26  ;;  %v5411_v6 = vpop.f32.mrb[72].mxu0  ;;  %v2103_v25 = vsel %vm1712_vm5, %v1972_v55, 0.0 }
 0x38b   :  { %6713 = vst [vmem:[#allocation18_spill] sm:$0xff] %v5403_v17  ;;  %1811 = vadd.xlane.f32.xlu0 %v1810_v30  ;;  %v5414_v14 = vpop.f32.mrb[73].mxu0  ;;  %v2104_v55 = vadd.f32 %v2103_v25, %v1971_v11 }
 0x38c   :  { %6714 = vst [vmem:[#allocation19_spill] sm:$0xff] %v5409_v59  ;;  %v1617_v43 = vpop.f32.mrb[56].mxu1  ;;  %v1813_v39 = vsel %vm1712_vm5, %v5409_v59, 0.0  ;;  %v1974_v61 = vmul.f32 %v5409_v59, %v5409_v59 }
 0x38d   :  { %v5423_v26 = vadd.f32 %v1617_v43, %v5248_v50  ;;  %v1619_v47 = vpop.f32.mrb[57].mxu1  ;;  %2101 = vadd.xlane.f32.xlu1 %v2100_v32  ;;  %v1814_v21 = vadd.f32 %v1813_v39, %v5403_v17  ;;  %v1973_v43 = vmul.f32 %v5403_v17, %v5403_v17 }
 0x38e   :  { %v5426_v30 = vadd.f32 %v1619_v47, %v5250_v5  ;;  %v5428_v7 = vpop.f32.mrb[74].mxu0  ;;  %v2107_v50 = vsel %vm1712_vm5, %v1974_v61, 0.0 }
 0x38f   :  { %6715 = vst [vmem:[#allocation35_spill] sm:$0xff] %v5423_v26  ;;  %2105 = vadd.xlane.f32.xlu0 %v2104_v55  ;;  %v5430_v4 = vpop.f32.mrb[75].mxu0 }
 0x390   :  { %6716 = vst [vmem:[#allocation20_spill] sm:$0xff] %v5426_v30  ;;  %v1623_v16 = vpop.f32.mrb[58].mxu1  ;;  %v1817_v59 = vsel %vm1712_vm5, %v5426_v30, 0.0  ;;  %v1976_v32 = vmul.f32 %v5426_v30, %v5426_v30  ;;  %v2108_v30 = vadd.f32 %v2107_v50, %v1973_v43 }
 0x391   :  { %v5439_v25 = vadd.f32 %v1623_v16, %v5267_v45  ;;  %v1625_v5 = vpop.f32.mrb[59].mxu1  ;;  %1815 = vadd.xlane.f32.xlu1 %v1814_v21  ;;  %v1818_v11 = vadd.f32 %v1817_v59, %v5423_v26  ;;  %v1975_v45 = vmul.f32 %v5423_v26, %v5423_v26 }
 0x392   :  { %v5445_v39 = vadd.f32 %v1625_v5, %v5270_v31  ;;  %v5447_v47 = vpop.f32.mrb[76].mxu0  ;;  %v2111_v61 = vsel %vm1712_vm5, %v1976_v32, 0.0 }
 0x393   :  { %6717 = vst [vmem:[#allocation21_spill] sm:$0xff] %v5439_v25  ;;  %1819 = vadd.xlane.f32.xlu0 %v1818_v11  ;;  %v5450_v55 = vpop.f32.mrb[77].mxu0  ;;  %v2112_v32 = vadd.f32 %v2111_v61, %v1975_v45 }
 0x394   :  { %6718 = vst [vmem:[#allocation22_spill] sm:$0xff] %v5445_v39  ;;  %v1629_v16 = vpop.f32.mrb[60].mxu1  ;;  %v1821_v21 = vsel %vm1712_vm5, %v5445_v39, 0.0  ;;  %v1978_v59 = vmul.f32 %v5445_v39, %v5445_v39 }
 0x395   :  { %v5459_v31 = vadd.f32 %v1629_v16, %v5284_v53  ;;  %v1631_v5 = vpop.f32.mrb[61].mxu1  ;;  %2109 = vadd.xlane.f32.xlu1 %v2108_v30  ;;  %v1822_v26 = vadd.f32 %v1821_v21, %v5439_v25  ;;  %v1977_v16 = vmul.f32 %v5439_v25, %v5439_v25 }
 0x396   :  { %v5462_v11 = vadd.f32 %v1631_v5, %v5286_v20  ;;  %v5464_v50 = vpop.f32.mrb[78].mxu0  ;;  %v2115_v53 = vsel %vm1712_vm5, %v1978_v59, 0.0 }
 0x397   :  { %6719 = vst [vmem:[#allocation23_spill] sm:$0xff] %v5459_v31  ;;  %2113 = vadd.xlane.f32.xlu0 %v2112_v32  ;;  %v5466_v43 = vpop.f32.mrb[79].mxu0 }
 0x398   :  { %6720 = vst [vmem:[#allocation24_spill] sm:$0xff] %v5462_v11  ;;  %v1635_v17 = vpop.f32.mrb[62].mxu1  ;;  %v1825_v39 = vsel %vm1712_vm5, %v5462_v11, 0.0  ;;  %v1980_v30 = vmul.f32 %v5462_v11, %v5462_v11  ;;  %v2116_v11 = vadd.f32 %v2115_v53, %v1977_v16 }
 0x399   :  { %v5475_v61 = vadd.f32 %v1635_v17, %v5303_v54  ;;  %v1637_v20 = vpop.f32.mrb[63].mxu1  ;;  %1823 = vadd.xlane.f32.xlu1 %v1822_v26  ;;  %v1826_v45 = vadd.f32 %v1825_v39, %v5459_v31  ;;  %v1979_v54 = vmul.f32 %v5459_v31, %v5459_v31 }
 0x39a   :  { %v5481_v21 = vadd.f32 %v1637_v20, %v5306_v44  ;;  %v5483_v5 = vpop.f32.mrb[80].mxu0  ;;  %v2119_v59 = vsel %vm1712_vm5, %v1980_v30, 0.0 }
 0x39b   :  { %6721 = vst [vmem:[#allocation25_spill] sm:$0xff] %v5475_v61  ;;  %1827 = vadd.xlane.f32.xlu0 %v1826_v45  ;;  %v5486_v32 = vpop.f32.mrb[81].mxu0  ;;  %v2120_v30 = vadd.f32 %v2119_v59, %v1979_v54 }
 0x39c   :  { %6722 = vst [vmem:[#allocation36_spill] sm:$0xff] %v5481_v21  ;;  %v1641_v17 = vpop.f32.mrb[64].mxu1  ;;  %v1829_v26 = vsel %vm1712_vm5, %v5481_v21, 0.0  ;;  %v1982_v39 = vmul.f32 %v5481_v21, %v5481_v21 }
 0x39d   :  { %v5495_v44 = vadd.f32 %v1641_v17, %v5320_v8  ;;  %v1643_v20 = vpop.f32.mrb[65].mxu1  ;;  %2117 = vadd.xlane.f32.xlu1 %v2116_v11  ;;  %v1830_v31 = vadd.f32 %v1829_v26, %v5475_v61  ;;  %v1981_v17 = vmul.f32 %v5475_v61, %v5475_v61 }
 0x39e   :  { %v5498_v45 = vadd.f32 %v1643_v20, %v5322_v27  ;;  %v5500_v53 = vpop.f32.mrb[82].mxu0  ;;  %v2123_v8 = vsel %vm1712_vm5, %v1982_v39, 0.0 }
 0x39f   :  { %6723 = vst [vmem:[#allocation26_spill] sm:$0xff] %v5495_v44  ;;  %2121 = vadd.xlane.f32.xlu0 %v2120_v30  ;;  %v5502_v16 = vpop.f32.mrb[83].mxu0 }
 0x3a0   :  { %6724 = vst [vmem:[#allocation27_spill] sm:$0xff] %v5498_v45  ;;  %v1647_v25 = vpop.f32.mrb[66].mxu1  ;;  %v1833_v21 = vsel %vm1712_vm5, %v5498_v45, 0.0  ;;  %v1984_v11 = vmul.f32 %v5498_v45, %v5498_v45  ;;  %v2124_v45 = vadd.f32 %v2123_v8, %v1981_v17 }
 0x3a1   :  { %v5511_v59 = vadd.f32 %v1647_v25, %v5339_v34  ;;  %v1649_v27 = vpop.f32.mrb[67].mxu1  ;;  %1831 = vadd.xlane.f32.xlu1 %v1830_v31  ;;  %v1834_v54 = vadd.f32 %v1833_v21, %v5495_v44  ;;  %v1983_v34 = vmul.f32 %v5495_v44, %v5495_v44 }
 0x3a2   :  { %v5517_v26 = vadd.f32 %v1649_v27, %v5342_v58  ;;  %v5519_v20 = vpop.f32.mrb[84].mxu0  ;;  %v2127_v39 = vsel %vm1712_vm5, %v1984_v11, 0.0 }
 0x3a3   :  { %1835 = vadd.xlane.f32.xlu0 %v1834_v54  ;;  %v5522_v30 = vpop.f32.mrb[85].mxu0  ;;  %v2128_v11 = vadd.f32 %v2127_v39, %v1983_v34  ;;  %v1985_v39 = vmul.f32 %v5511_v59, %v5511_v59 }
 0x3a4   :  { %6725 = vst [vmem:[#allocation37_spill] sm:$0xff] %v5517_v26  ;;  %v1653_v25 = vpop.f32.mrb[68].mxu1  ;;  %v1837_v31 = vsel %vm1712_vm5, %v5517_v26, 0.0  ;;  %v1986_v21 = vmul.f32 %v5517_v26, %v5517_v26 }
 0x3a5   :  { %v5531_v58 = vadd.f32 %v1653_v25, %v5356_v3  ;;  %v1655_v27 = vpop.f32.mrb[69].mxu1  ;;  %2125 = vadd.xlane.f32.xlu1 %v2124_v45  ;;  %v1838_v8 = vadd.f32 %v1837_v31, %v5511_v59 }
 0x3a6   :  { %v5534_v54 = vadd.f32 %v1655_v27, %v5358_v40  ;;  %v2131_v61 = vsel %vm1712_vm5, %v1986_v21, 0.0 }
 0x3a7   :  { %2129 = vadd.xlane.f32.xlu0 %v2128_v11  ;;  %v2132_v31 = vadd.f32 %v2131_v61, %v1985_v39  ;;  %v1987_v21 = vmul.f32 %v5531_v58, %v5531_v58 }
 0x3a8   :  { %v1659_v17 = vpop.f32.mrb[70].mxu1  ;;  %v1841_v44 = vsel %vm1712_vm5, %v5534_v54, 0.0  ;;  %v1988_v26 = vmul.f32 %v5534_v54, %v5534_v54 }
 0x3a9   :  { %v5543_v3 = vadd.f32 %v1659_v17, %v5375_v52  ;;  %v1661_v45 = vpop.f32.mrb[71].mxu1  ;;  %1839 = vadd.xlane.f32.xlu1 %v1838_v8  ;;  %v1842_v40 = vadd.f32 %v1841_v44, %v5531_v58 }
 0x3aa   :  { %v5549_v34 = vadd.f32 %v1661_v45, %v5378_v10  ;;  %v2135_v25 = vsel %vm1712_vm5, %v1988_v26, 0.0 }
 0x3ab   :  { %1843 = vadd.xlane.f32.xlu0 %v1842_v40  ;;  %v2136_v10 = vadd.f32 %v2135_v25, %v1987_v21  ;;  %v1989_v25 = vmul.f32 %v5543_v3, %v5543_v3 }
 0x3ac   :  { %v1665_v27 = vpop.f32.mrb[72].mxu1  ;;  %v1845_v52 = vsel %vm1712_vm5, %v5549_v34, 0.0  ;;  %v1990_v44 = vmul.f32 %v5549_v34, %v5549_v34 }
 0x3ad   :  { %v5559_v11 = vadd.f32 %v1665_v27, %v5392_v2  ;;  %v1667_v8 = vpop.f32.mrb[73].mxu1  ;;  %2133 = vadd.xlane.f32.xlu1 %v2132_v31  ;;  %v1846_v61 = vadd.f32 %v1845_v52, %v5543_v3 }
 0x3ae   :  { %v5562_v26 = vadd.f32 %v1667_v8, %v5394_v18  ;;  %v2139_v40 = vsel %vm1712_vm5, %v1990_v44, 0.0 }
 0x3af   :  { %2137 = vadd.xlane.f32.xlu0 %v2136_v10  ;;  %v2140_v52 = vadd.f32 %v2139_v40, %v1989_v25  ;;  %v1991_v44 = vmul.f32 %v5559_v11, %v5559_v11 }
 0x3b0   :  { %v1671_v17 = vpop.f32.mrb[74].mxu1  ;;  %v1849_v45 = vsel %vm1712_vm5, %v5562_v26, 0.0  ;;  %v1992_v39 = vmul.f32 %v5562_v26, %v5562_v26 }
 0x3b1   :  { %v5571_v2 = vadd.f32 %v1671_v17, %v5411_v6  ;;  %v1673_v31 = vpop.f32.mrb[75].mxu1  ;;  %1847 = vadd.xlane.f32.xlu1 %v1846_v61  ;;  %v1850_v18 = vadd.f32 %v1849_v45, %v5559_v11 }
 0x3b2   :  { %v5577_v21 = vadd.f32 %v1673_v31, %v5414_v14  ;;  %v2143_v27 = vsel %vm1712_vm5, %v1992_v39, 0.0 }
 0x3b3   :  { %6726 = vst [vmem:[#allocation28_spill] sm:$0xff] %v5571_v2  ;;  %1851 = vadd.xlane.f32.xlu0 %v1850_v18  ;;  %v2144_v14 = vadd.f32 %v2143_v27, %v1991_v44  ;;  %v1993_v44 = vmul.f32 %v5571_v2, %v5571_v2 }
 0x3b4   :  { %6727 = vst [vmem:[#allocation38_spill] sm:$0xff] %v5577_v21  ;;  %v1677_v8 = vpop.f32.mrb[76].mxu1  ;;  %v1853_v6 = vsel %vm1712_vm5, %v5577_v21, 0.0  ;;  %v1994_v10 = vmul.f32 %v5577_v21, %v5577_v21 }
 0x3b5   :  { %v5587_v61 = vadd.f32 %v1677_v8, %v5428_v7  ;;  %v1679_v17 = vpop.f32.mrb[77].mxu1  ;;  %2141 = vadd.xlane.f32.xlu1 %v2140_v52  ;;  %v1854_v40 = vadd.f32 %v1853_v6, %v5571_v2 }
 0x3b6   :  { %v5590_v45 = vadd.f32 %v1679_v17, %v5430_v4  ;;  %v2147_v25 = vsel %vm1712_vm5, %v1994_v10, 0.0 }
 0x3b7   :  { %6728 = vst [vmem:[#allocation39_spill] sm:$0xff] %v5587_v61  ;;  %2145 = vadd.xlane.f32.xlu0 %v2144_v14  ;;  %v2148_v17 = vadd.f32 %v2147_v25, %v1993_v44 }
 0x3b8   :  { %6729 = vst [vmem:[#allocation40_spill] sm:$0xff] %v5590_v45  ;;  %v1683_v39 = vpop.f32.mrb[78].mxu1  ;;  %v1716_v31 = vpop.xlane.xlu0 %1715  ;;  %v1857_v18 = vsel %vm1712_vm5, %v5590_v45, 0.0  ;;  %v1996_v7 = vmul.f32 %v5590_v45, %v5590_v45 }
 0x3b9   :  { %v5599_v8 = vadd.f32 %v1683_v39, %v5447_v47  ;;  %v5601_v27 = vmul.f32 0.0051020407, %v1716_v31  ;;  %v1685_v4 = vpop.f32.mrb[79].mxu1  ;;  %1855 = vadd.xlane.f32.xlu1 %v1854_v40  ;;  %v1858_v52 = vadd.f32 %v1857_v18, %v5587_v61  ;;  %v1995_v47 = vmul.f32 %v5587_v61, %v5587_v61 }
 0x3ba   :  { %v5607_v6 = vadd.f32 %v1685_v4, %v5450_v55  ;;  %v2151_v10 = vsel %vm1712_vm5, %v1996_v7, 0.0 }
 0x3bb   :  { %6730 = vst [vmem:[#allocation41_spill] sm:$0xff] %v5599_v8  ;;  %1859 = vadd.xlane.f32.xlu0 %v1858_v52  ;;  %v2217_v55 = vmul.f32 %v5601_v27, %v5601_v27  ;;  %v2152_v25 = vadd.f32 %v2151_v10, %v1995_v47 }
 0x3bc   :  { %6731 = vst [vmem:[#allocation42_spill] sm:$0xff] %v5607_v6  ;;  %v1689_v14 = vpop.f32.mrb[80].mxu1  ;;  %v2010_v39 = vpop.xlane.xlu0 %2009  ;;  %v1861_v40 = vsel %vm1712_vm5, %v5607_v6, 0.0  ;;  %v1998_v31 = vmul.f32 %v5607_v6, %v5607_v6 }
 0x3bd   :  { %v5617_v18 = vadd.f32 %v1689_v14, %v5464_v50  ;;  %v2175_v7 = vmul.f32 0.0051020407, %v2010_v39  ;;  %v1691_v4 = vpop.f32.mrb[81].mxu1  ;;  %2149 = vadd.xlane.f32.xlu1 %v2148_v17  ;;  %v1862_v61 = vadd.f32 %v1861_v40, %v5599_v8  ;;  %v1997_v14 = vmul.f32 %v5599_v8, %v5599_v8 }
 0x3be   :  { %v5622_v52 = vadd.f32 %v1691_v4, %v5466_v43  ;;  %v2014_v44 = vpop.xlane.xlu1 %2013  ;;  %v2155_v39 = vsel %vm1712_vm5, %v1998_v31, 0.0 }
 0x3bf   :  { %6732 = vst [vmem:[#allocation43_spill] sm:$0xff] %v5617_v18  ;;  %v2259_v45 = vsub.f32 %v2175_v7, %v2217_v55  ;;  %2153 = vadd.xlane.f32.xlu0 %v2152_v25  ;;  %v1999_v31 = vmul.f32 %v5617_v18, %v5617_v18 }
 0x3c0   :  { %6733 = vst [vmem:[#allocation44_spill] sm:$0xff] %v5622_v52  ;;  %v1695_v21 = vpop.f32.mrb[82].mxu1  ;;  %v1720_v6 = vpop.xlane.xlu0 %1719  ;;  %v1865_v50 = vsel %vm1712_vm5, %v5622_v52, 0.0  ;;  %v2000_v10 = vmul.f32 %v5622_v52, %v5622_v52 }
 0x3c1   :  { %v2301_v43 = vmax.f32 %v2259_v45, 0.0  ;;  %v5633_v17 = vadd.f32 %v1695_v21, %v5483_v5  ;;  %v5635_v47 = vmul.f32 0.0051020407, %v1720_v6  ;;  %v1697_v40 = vpop.f32.mrb[83].mxu1  ;;  %1863 = vadd.xlane.f32.xlu1 %v1862_v61  ;;  %v1866_v55 = vadd.f32 %v1865_v50, %v5617_v18 }
 0x3c2   :  { %v5639_v7 = vadd.f32 %v1697_v40, %v5486_v32  ;;  %v1724_v4 = vpop.xlane.xlu1 %1723  ;;  %v2159_v25 = vsel %vm1712_vm5, %v2000_v10, 0.0  ;;  %v2176_v45 = vmul.f32 0.0051020407, %v2014_v44  ;;  %v2156_v21 = vadd.f32 %v2155_v39, %v1997_v14 }
 0x3c3   :  { %6734 = vst [vmem:[#allocation45_spill] sm:$0xff] %v5633_v17  ;;  %v2343_v52 = vadd.f32 1e-05, %v2301_v43  ;;  %v2218_v5 = vmul.f32 %v5635_v47, %v5635_v47  ;;  %1867 = vadd.xlane.f32.xlu0 %v1866_v55  ;;  %v5646_v6 = vmul.f32 0.0051020407, %v1724_v4  ;;  %v2160_v8 = vadd.f32 %v2159_v25, %v1999_v31 }
 0x3c4   :  { %6735 = vst [vmem:[#allocation46_spill] sm:$0xff] %v5639_v7  ;;  %v1701_v61 = vpop.f32.mrb[84].mxu1  ;;  %v2018_v50 = vpop.xlane.xlu0 %2017  ;;  %v1869_v32 = vsel %vm1712_vm5, %v5639_v7, 0.0 }
 0x3c5   :  { %3351 = vrsqrt.f32 %v2343_v52  ;;  %v2260_v40 = vsub.f32 %v2176_v45, %v2218_v5  ;;  %v5651_v18 = vadd.f32 %v1701_v61, %v5500_v53  ;;  %v2177_v10 = vmul.f32 0.0051020407, %v2018_v50  ;;  %v1703_v44 = vpop.f32.mrb[85].mxu1  ;;  %2157 = vadd.xlane.f32.xlu1 %v2156_v21 }
 0x3c6   :  { %v2219_v43 = vmul.f32 %v5646_v6, %v5646_v6  ;;  %v5656_v14 = vadd.f32 %v1703_v44, %v5502_v16  ;;  %v1728_v39 = vpop.xlane.xlu1 %1727  ;;  %v1870_v52 = vadd.f32 %v1869_v32, %v5633_v17  ;;  %v2002_v53 = vmul.f32 %v5639_v7, %v5639_v7 }
 0x3c7   :  { %6736 = vst [vmem:[#allocation47_spill] sm:$0xff] %v5651_v18  ;;  %v2302_v55 = vmax.f32 %v2260_v40, 0.0  ;;  %v5658_v4 = vmul.f32 0.0051020407, %v1728_v39  ;;  %2161 = vadd.xlane.f32.xlu0 %v2160_v8  ;;  %v2001_v8 = vmul.f32 %v5633_v17, %v5633_v17 }
 0x3c8   :  { %6737 = vst [vmem:[#allocation48_spill] sm:$0xff] %v5656_v14  ;;  %v2261_v31 = vsub.f32 %v2177_v10, %v2219_v43  ;;  %v1707_v25 = vpop.f32.mrb[86].mxu1  ;;  %v1732_v45 = vpop.xlane.xlu0 %1731  ;;  %v1873_v5 = vsel %vm1712_vm5, %v5656_v14, 0.0  ;;  %v2004_v50 = vmul.f32 %v5656_v14, %v5656_v14 }
 0x3c9   :  { %v2344_v21 = vadd.f32 1e-05, %v2302_v55  ;;  %v5666_v16 = vadd.f32 %v1707_v25, %v5519_v20  ;;  %v1709_v61 = vpop.f32.mrb[87].mxu1  ;;  %1871 = vadd.xlane.f32.xlu1 %v1870_v52  ;;  %v5672_v40 = vmul.f32 0.0051020407, %v1732_v45  ;;  %v2220_v44 = vmul.f32 %v5658_v4, %v5658_v4 }
 0x3ca   :  { %v2303_v32 = vmax.f32 %v2261_v31, 0.0  ;;  %v5675_v10 = vadd.f32 %v1709_v61, %v5522_v30  ;;  %v2022_v43 = vpop.xlane.xlu1 %2021  ;;  %v1874_v39 = vadd.f32 %v1873_v5, %v5651_v18  ;;  %v2163_v55 = vsel %vm1712_vm5, %v2002_v53, 0.0 }
 0x3cb   :  { %3353 = vrsqrt.f32 %v2344_v21  ;;  %v2178_v20 = vmul.f32 0.0051020407, %v2022_v43  ;;  %v2221_v25 = vmul.f32 %v5672_v40, %v5672_v40  ;;  %v2003_v45 = vmul.f32 %v5651_v18, %v5651_v18 }
 0x3cc   :  { %v2345_v52 = vadd.f32 1e-05, %v2303_v32  ;;  %v2026_v31 = vpop.xlane.xlu0 %2025  ;;  %1875 = vadd.xlane.f32.xlu0 %v1874_v39  ;;  %v2164_v14 = vadd.f32 %v2163_v55, %v2001_v8  ;;  %v2167_v7 = vsel %vm1712_vm5, %v2004_v50, 0.0  ;;  %v2511_v21 = vsub.f32 %v4967_v36, %v5601_v27  ;;  %v2428_v8 = vld [vmem:[%s6563_s2 + $0x8] sm:$0xff] }
 0x3cd   :  { %v2262_v30 = vsub.f32 %v2178_v20, %v2220_v44  ;;  %v2179_v61 = vmul.f32 0.0051020407, %v2026_v31  ;;  %v2512_v53 = vsub.f32 %v4969_v28, %v5601_v27  ;;  %v1877_v32 = vsel %vm1712_vm5, %v5675_v10, 0.0  ;;  %v2427_v44 = vld [vmem:[%s6563_s2] sm:$0xff] }
 0x3ce   :  { %3355 = vrsqrt.f32 %v2345_v52  ;;  %v1736_v5 = vpop.xlane.xlu1 %1735  ;;  %2165 = vadd.xlane.f32.xlu1 %v2164_v14  ;;  %v2168_v28 = vadd.f32 %v2167_v7, %v2003_v45  ;;  %v2006_v52 = vmul.f32 %v5675_v10, %v5675_v10  ;;  %v1878_v17 = vadd.f32 %v1877_v32, %v5666_v16 }
 0x3cf   :  { %v3352_v43 = vpop.eup %3351  ;;  %v2304_v50 = vmax.f32 %v2262_v30, 0.0  ;;  %v2263_v20 = vsub.f32 %v2179_v61, %v2221_v25  ;;  %v5698_v36 = vmul.f32 0.0051020407, %v1736_v5  ;;  %v2005_v2 = vmul.f32 %v5666_v16, %v5666_v16 }
 0x3d0   :  { %v2595_v27 = vmul.f32 %v3352_v43, %v2511_v21  ;;  %v2596_v39 = vmul.f32 %v3352_v43, %v2512_v53  ;;  %v1740_v55 = vpop.xlane.xlu0 %1739  ;;  %2169 = vadd.xlane.f32.xlu0 %v2168_v28  ;;  %v2171_v53 = vsel %vm1712_vm5, %v2006_v52, 0.0  ;;  %v2513_v5 = vsub.f32 %v4979_v35, %v5635_v47 }
 0x3d1   :  { %v2346_v31 = vadd.f32 1e-05, %v2304_v50  ;;  %v2305_v18 = vmax.f32 %v2263_v20, 0.0  ;;  %v5705_v14 = vmul.f32 0.0051020407, %v1740_v55  ;;  %v2222_v7 = vmul.f32 %v5698_v36, %v5698_v36 }
 0x3d2   :  { %v2679_v30 = vadd.f32 %v2595_v27, %v2427_v44  ;;  %v2680_v25 = vadd.f32 %v2596_v39, %v2428_v8  ;;  %v2030_v45 = vpop.xlane.xlu1 %2029  ;;  %1879 = vadd.xlane.f32.xlu1 %v1878_v17  ;;  %v2514_v32 = vsub.f32 %v4982_v13, %v5635_v47  ;;  %v2429_v44 = vld [vmem:[%s6563_s2 + $0x10] sm:$0xff]  ;;  %v2430_v8 = vld [vmem:[%s6563_s2 + $0x18] sm:$0xff]  ;;  %v2172_v35 = vadd.f32 %v2171_v53, %v2005_v2  ;;  %v2432_v2 = vld [vmem:[%s6563_s2 + $0x28] sm:$0xff] }
 0x3d3   :  { %3357 = vrsqrt.f32 %v2346_v31  ;;  %v2347_v61 = vadd.f32 1e-05, %v2305_v18  ;;  %v2180_v21 = vmul.f32 0.0051020407, %v2030_v45  ;;  %v2223_v18 = vmul.f32 %v5705_v14, %v5705_v14 }
 0x3d4   :  { %2763 = vst [vmem:[%s6564_s8] sm:$0xff] %v2679_v30  ;;  %2764 = vst.msk [vmem:[%s6564_s8 + $0x8] sm:$0xff] %vm1712_vm5, %v2680_v25  ;;  %v2034_v17 = vpop.xlane.xlu0 %2033  ;;  %v2515_v47 = vsub.f32 %v4993_v33, %v5646_v6  ;;  %v2516_v39 = vsub.f32 %v4997_v41, %v5646_v6 }
 0x3d5   :  { %v3354_v43 = vpop.eup %3353  ;;  %3359 = vrsqrt.f32 %v2347_v61  ;;  %v2264_v50 = vsub.f32 %v2180_v21, %v2222_v7  ;;  %v2181_v20 = vmul.f32 0.0051020407, %v2034_v17  ;;  %v2431_v7 = vld [vmem:[%s6563_s2 + $0x20] sm:$0xff] }
 0x3d6   :  { %v2597_v28 = vmul.f32 %v3354_v43, %v2513_v5  ;;  %v2598_v27 = vmul.f32 %v3354_v43, %v2514_v32  ;;  %v1744_v13 = vpop.xlane.xlu1 %1743  ;;  %2173 = vadd.xlane.f32.xlu1 %v2172_v35  ;;  %v2517_v43 = vsub.f32 %v5010_v24, %v5658_v4  ;;  %v2519_v24 = vsub.f32 %v5027_v1, %v5672_v40 }
 0x3d7   :  { %v2306_v55 = vmax.f32 %v2264_v50, 0.0  ;;  %v2265_v52 = vsub.f32 %v2181_v20, %v2223_v18  ;;  %v5739_v45 = vmul.f32 0.0051020407, %v1744_v13  ;;  %v2520_v13 = vsub.f32 %v5030_v56, %v5672_v40 }
 0x3d8   :  { %v3356_v31 = vpop.eup %3355  ;;  %v2681_v30 = vadd.f32 %v2597_v28, %v2429_v44  ;;  %v2682_v25 = vadd.f32 %v2598_v27, %v2430_v8  ;;  %v1748_v33 = vpop.xlane.xlu0 %1747  ;;  %v2518_v44 = vsub.f32 %v5013_v19, %v5658_v4  ;;  %v2433_v19 = vld [vmem:[%s6563_s2 + $0x30] sm:$0xff]  ;;  %v2434_v4 = vld [vmem:[%s6563_s2 + $0x38] sm:$0xff] }
 0x3d9   :  { %v2599_v61 = vmul.f32 %v3356_v31, %v2515_v47  ;;  %v2600_v21 = vmul.f32 %v3356_v31, %v2516_v39  ;;  %v2348_v41 = vadd.f32 1e-05, %v2306_v55  ;;  %v2307_v6 = vmax.f32 %v2265_v52, 0.0  ;;  %v2435_v31 = vld [vmem:[%s6563_s2 + $0x40] sm:$0xff] }
 0x3da   :  { %2765 = vst [vmem:[%s6564_s8 + $0x10] sm:$0xff] %v2681_v30  ;;  %2766 = vst.msk [vmem:[%s6564_s8 + $0x18] sm:$0xff] %vm1712_vm5, %v2682_v25  ;;  %v5748_v53 = vmul.f32 0.0051020407, %v1748_v33  ;;  %v2038_v5 = vpop.xlane.xlu1 %2037  ;;  %v2224_v8 = vmul.f32 %v5739_v45, %v5739_v45  ;;  %v2436_v30 = vld [vmem:[%s6563_s2 + $0x48] sm:$0xff] }
 0x3db   :  { %v2683_v32 = vadd.f32 %v2599_v61, %v2431_v7  ;;  %v2684_v18 = vadd.f32 %v2600_v21, %v2432_v2  ;;  %3361 = vrsqrt.f32 %v2348_v41  ;;  %v2349_v17 = vadd.f32 1e-05, %v2307_v6 }
 0x3dc   :  { %v2182_v50 = vmul.f32 0.0051020407, %v2038_v5  ;;  %v2042_v20 = vpop.xlane.xlu0 %2041  ;;  %v2225_v28 = vmul.f32 %v5748_v53, %v5748_v53 }
 0x3dd   :  { %v3358_v35 = vpop.eup %3357  ;;  %2767 = vst [vmem:[%s6564_s8 + $0x20] sm:$0xff] %v2683_v32  ;;  %2768 = vst.msk [vmem:[%s6564_s8 + $0x28] sm:$0xff] %vm1712_vm5, %v2684_v18  ;;  %3363 = vrsqrt.f32 %v2349_v17  ;;  %v2183_v27 = vmul.f32 0.0051020407, %v2042_v20  ;;  %v2522_v20 = vsub.f32 %v5049_v9, %v5698_v36  ;;  %v2524_v9 = vsub.f32 %v5066_v49, %v5705_v14 }
 0x3de   :  { %v2601_v47 = vmul.f32 %v3358_v35, %v2517_v43  ;;  %v2602_v39 = vmul.f32 %v3358_v35, %v2518_v44  ;;  %v2266_v55 = vsub.f32 %v2182_v50, %v2224_v8  ;;  %v1752_v1 = vpop.xlane.xlu1 %1751  ;;  %v2521_v50 = vsub.f32 %v5043_v51, %v5698_v36 }
 0x3df   :  { %v3360_v52 = vpop.eup %3359  ;;  %v2267_v25 = vsub.f32 %v2183_v27, %v2225_v28  ;;  %v5781_v7 = vmul.f32 0.0051020407, %v1752_v1  ;;  %v2523_v35 = vsub.f32 %v5063_v63, %v5705_v14  ;;  %v2438_v28 = vld [vmem:[%s6563_s2 + $0x58] sm:$0xff]  ;;  %v2440_v1 = vld [vmem:[%s6563_s2 + $0x68] sm:$0xff] }
 0x3e0   :  { %v2685_v2 = vadd.f32 %v2601_v47, %v2433_v19  ;;  %v2686_v33 = vadd.f32 %v2602_v39, %v2434_v4  ;;  %v2603_v61 = vmul.f32 %v3360_v52, %v2519_v24  ;;  %v2604_v56 = vmul.f32 %v3360_v52, %v2520_v13  ;;  %v1756_v40 = vpop.xlane.xlu0 %1755  ;;  %v2437_v4 = vld [vmem:[%s6563_s2 + $0x50] sm:$0xff] }
 0x3e1   :  { %v2308_v21 = vmax.f32 %v2266_v55, 0.0  ;;  %v2309_v41 = vmax.f32 %v2267_v25, 0.0  ;;  %v5790_v32 = vmul.f32 0.0051020407, %v1756_v40  ;;  %v2226_v44 = vmul.f32 %v5781_v7, %v5781_v7  ;;  %v2439_v55 = vld [vmem:[%s6563_s2 + $0x60] sm:$0xff] }
 0x3e2   :  { %2769 = vst [vmem:[%s6564_s8 + $0x30] sm:$0xff] %v2685_v2  ;;  %2770 = vst.msk [vmem:[%s6564_s8 + $0x38] sm:$0xff] %vm1712_vm5, %v2686_v33  ;;  %v2687_v6 = vadd.f32 %v2603_v61, %v2435_v31  ;;  %v2688_v5 = vadd.f32 %v2604_v56, %v2436_v30  ;;  %v2046_v18 = vpop.xlane.xlu1 %2045 }
 0x3e3   :  { %v2350_v17 = vadd.f32 1e-05, %v2308_v21  ;;  %v2351_v43 = vadd.f32 1e-05, %v2309_v41  ;;  %v2184_v8 = vmul.f32 0.0051020407, %v2046_v18  ;;  %v2227_v51 = vmul.f32 %v5790_v32, %v5790_v32 }
 0x3e4   :  { %2771 = vst [vmem:[%s6564_s8 + $0x40] sm:$0xff] %v2687_v6  ;;  %2772 = vst.msk [vmem:[%s6564_s8 + $0x48] sm:$0xff] %vm1712_vm5, %v2688_v5  ;;  %v2050_v24 = vpop.xlane.xlu0 %2049 }
 0x3e5   :  { %v3362_v19 = vpop.eup %3361  ;;  %3365 = vrsqrt.f32 %v2350_v17  ;;  %v2268_v27 = vsub.f32 %v2184_v8, %v2226_v44  ;;  %v2185_v13 = vmul.f32 0.0051020407, %v2050_v24 }
 0x3e6   :  { %v2605_v63 = vmul.f32 %v3362_v19, %v2521_v50  ;;  %v2606_v36 = vmul.f32 %v3362_v19, %v2522_v20  ;;  %3367 = vrsqrt.f32 %v2351_v43  ;;  %v1760_v47 = vpop.xlane.xlu1 %1759  ;;  %v2525_v20 = vsub.f32 %v5079_v37, %v5739_v45 }
 0x3e7   :  { %v3364_v39 = vpop.eup %3363  ;;  %v2310_v52 = vmax.f32 %v2268_v27, 0.0  ;;  %v2269_v31 = vsub.f32 %v2185_v13, %v2227_v51  ;;  %v5823_v30 = vmul.f32 0.0051020407, %v1760_v47  ;;  %v2441_v27 = vld [vmem:[%s6563_s2 + $0x70] sm:$0xff]  ;;  %v2442_v51 = vld [vmem:[%s6563_s2 + $0x78] sm:$0xff] }
 0x3e8   :  { %v2689_v25 = vadd.f32 %v2605_v63, %v2437_v4  ;;  %v2690_v2 = vadd.f32 %v2606_v36, %v2438_v28  ;;  %v2607_v49 = vmul.f32 %v3364_v39, %v2523_v35  ;;  %v2608_v14 = vmul.f32 %v3364_v39, %v2524_v9  ;;  %v1764_v33 = vpop.xlane.xlu0 %1763 }
 0x3e9   :  { %v2352_v61 = vadd.f32 1e-05, %v2310_v52  ;;  %v2311_v56 = vmax.f32 %v2269_v31, 0.0  ;;  %v5832_v41 = vmul.f32 0.0051020407, %v1764_v33  ;;  %v2228_v18 = vmul.f32 %v5823_v30, %v5823_v30 }
 0x3ea   :  { %2773 = vst [vmem:[%s6564_s8 + $0x50] sm:$0xff] %v2689_v25  ;;  %2774 = vst.msk [vmem:[%s6564_s8 + $0x58] sm:$0xff] %vm1712_vm5, %v2690_v2  ;;  %v2691_v40 = vadd.f32 %v2607_v49, %v2439_v55  ;;  %v2692_v21 = vadd.f32 %v2608_v14, %v2440_v1  ;;  %v2054_v6 = vpop.xlane.xlu1 %2053  ;;  %v2526_v35 = vsub.f32 %v5085_v0, %v5739_v45 }
 0x3eb   :  { %3369 = vrsqrt.f32 %v2352_v61  ;;  %v2353_v5 = vadd.f32 1e-05, %v2311_v56  ;;  %v2186_v17 = vmul.f32 0.0051020407, %v2054_v6  ;;  %v2229_v8 = vmul.f32 %v5832_v41, %v5832_v41 }
 0x3ec   :  { %2775 = vst [vmem:[%s6564_s8 + $0x60] sm:$0xff] %v2691_v40  ;;  %2776 = vst.msk [vmem:[%s6564_s8 + $0x68] sm:$0xff] %vm1712_vm5, %v2692_v21  ;;  %v2058_v43 = vpop.xlane.xlu0 %2057  ;;  %v2527_v4 = vsub.f32 %v5099_v46, %v5748_v53  ;;  %v2528_v28 = vsub.f32 %v5102_v15, %v5748_v53  ;;  %v2443_v46 = vld [vmem:[%s6563_s2 + $0x80] sm:$0xff]  ;;  %v2444_v15 = vld [vmem:[%s6563_s2 + $0x88] sm:$0xff]  ;;  %v2529_v14 = vsub.f32 %v5115_v38, %v5781_v7 }
 0x3ed   :  { %3371 = vrsqrt.f32 %v2353_v5  ;;  %v2270_v44 = vsub.f32 %v2186_v17, %v2228_v18  ;;  %v2187_v50 = vmul.f32 0.0051020407, %v2058_v43  ;;  %v2530_v33 = vsub.f32 %v5121_v48, %v5781_v7  ;;  %v2445_v38 = vld [vmem:[%s6563_s2 + $0x90] sm:$0xff]  ;;  %v2446_v48 = vld [vmem:[%s6563_s2 + $0x98] sm:$0xff] }
 0x3ee   :  { %v1768_v24 = vpop.xlane.xlu1 %1767  ;;  %v2531_v5 = vsub.f32 %v5135_v12, %v5790_v32  ;;  %v2532_v18 = vsub.f32 %v5138_v57, %v5790_v32 }
 0x3ef   :  { %v3366_v19 = vpop.eup %3365  ;;  %v2312_v37 = vmax.f32 %v2270_v44, 0.0  ;;  %v2271_v13 = vsub.f32 %v2187_v50, %v2229_v8  ;;  %v5865_v53 = vmul.f32 0.0051020407, %v1768_v24  ;;  %v2447_v50 = vld [vmem:[%s6563_s2 + $0xa0] sm:$0xff] }
 0x3f0   :  { %v3368_v9 = vpop.eup %3367  ;;  %v2609_v0 = vmul.f32 %v3366_v19, %v2525_v20  ;;  %v2610_v45 = vmul.f32 %v3366_v19, %v2526_v35  ;;  %v1772_v63 = vpop.xlane.xlu0 %1771  ;;  %v2448_v20 = vld [vmem:[%s6563_s2 + $0xa8] sm:$0xff] }
 0x3f1   :  { %v2611_v36 = vmul.f32 %v3368_v9, %v2527_v4  ;;  %v2612_v47 = vmul.f32 %v3368_v9, %v2528_v28  ;;  %v2354_v39 = vadd.f32 1e-05, %v2312_v37  ;;  %v2313_v55 = vmax.f32 %v2271_v13, 0.0 }
 0x3f2   :  { %v2693_v1 = vadd.f32 %v2609_v0, %v2441_v27  ;;  %v2694_v52 = vadd.f32 %v2610_v45, %v2442_v51  ;;  %v2062_v31 = vpop.xlane.xlu1 %2061  ;;  %v5878_v61 = vmul.f32 0.0051020407, %v1772_v63  ;;  %v2230_v7 = vmul.f32 %v5865_v53, %v5865_v53 }
 0x3f3   :  { %v2695_v25 = vadd.f32 %v2611_v36, %v2443_v46  ;;  %v2696_v2 = vadd.f32 %v2612_v47, %v2444_v15  ;;  %3373 = vrsqrt.f32 %v2354_v39  ;;  %v2355_v49 = vadd.f32 1e-05, %v2313_v55 }
 0x3f4   :  { %2777 = vst [vmem:[%s6564_s8 + $0x70] sm:$0xff] %v2693_v1  ;;  %2778 = vst.msk [vmem:[%s6564_s8 + $0x78] sm:$0xff] %vm1712_vm5, %v2694_v52  ;;  %v2188_v56 = vmul.f32 0.0051020407, %v2062_v31  ;;  %v2066_v40 = vpop.xlane.xlu0 %2065  ;;  %v2231_v24 = vmul.f32 %v5878_v61, %v5878_v61  ;;  %v2533_v36 = vsub.f32 %v5151_v22, %v5823_v30  ;;  %v2534_v47 = vsub.f32 %v5157_v42, %v5823_v30  ;;  %v2449_v52 = vld [vmem:[%s6563_s2 + $0xb0] sm:$0xff]  ;;  %v2450_v31 = vld [vmem:[%s6563_s2 + $0xb8] sm:$0xff] }
 0x3f5   :  { %v3370_v21 = vpop.eup %3369  ;;  %2779 = vst [vmem:[%s6564_s8 + $0x80] sm:$0xff] %v2695_v25  ;;  %2780 = vst.msk [vmem:[%s6564_s8 + $0x88] sm:$0xff] %vm1712_vm5, %v2696_v2  ;;  %3375 = vrsqrt.f32 %v2355_v49  ;;  %v2189_v6 = vmul.f32 0.0051020407, %v2066_v40  ;;  %v2535_v42 = vsub.f32 %v5171_v23, %v5832_v41  ;;  %v2536_v30 = vsub.f32 %v5174_v60, %v5832_v41  ;;  %v2451_v40 = vld [vmem:[%s6563_s2 + $0xc0] sm:$0xff] }
 0x3f6   :  { %v2613_v17 = vmul.f32 %v3370_v21, %v2529_v14  ;;  %v2614_v43 = vmul.f32 %v3370_v21, %v2530_v33  ;;  %v1776_v44 = vpop.xlane.xlu1 %1775  ;;  %v2272_v35 = vsub.f32 %v2188_v56, %v2230_v7  ;;  %v2452_v21 = vld [vmem:[%s6563_s2 + $0xc8] sm:$0xff] }
 0x3f7   :  { %v3372_v8 = vpop.eup %3371  ;;  %v5907_v12 = vmul.f32 0.0051020407, %v1776_v44  ;;  %v2273_v51 = vsub.f32 %v2189_v6, %v2231_v24 }
 0x3f8   :  { %v2697_v19 = vadd.f32 %v2613_v17, %v2445_v38  ;;  %v2698_v57 = vadd.f32 %v2614_v43, %v2446_v48  ;;  %v2615_v32 = vmul.f32 %v3372_v8, %v2531_v5  ;;  %v2616_v4 = vmul.f32 %v3372_v8, %v2532_v18  ;;  %v1780_v28 = vpop.xlane.xlu0 %1779 }
 0x3f9   :  { %v2314_v27 = vmax.f32 %v2272_v35, 0.0  ;;  %v5916_v9 = vmul.f32 0.0051020407, %v1780_v28  ;;  %v2315_v46 = vmax.f32 %v2273_v51, 0.0  ;;  %v2232_v15 = vmul.f32 %v5907_v12, %v5907_v12 }
 0x3fa   :  { %2781 = vst [vmem:[%s6564_s8 + $0x90] sm:$0xff] %v2697_v19  ;;  %2782 = vst.msk [vmem:[%s6564_s8 + $0x98] sm:$0xff] %vm1712_vm5, %v2698_v57  ;;  %v2699_v37 = vadd.f32 %v2615_v32, %v2447_v50  ;;  %v2700_v13 = vadd.f32 %v2616_v4, %v2448_v20  ;;  %v2070_v0 = vpop.xlane.xlu1 %2069  ;;  %v2537_v28 = vsub.f32 %v5187_v29, %v5865_v53  ;;  %v6739_v29 = vld [vmem:[#allocation3_spill] sm:$0xff] }
 0x3fb   :  { %v2356_v45 = vadd.f32 1e-05, %v2314_v27  ;;  %v2190_v63 = vmul.f32 0.0051020407, %v2070_v0  ;;  %v2233_v39 = vmul.f32 %v5916_v9, %v5916_v9  ;;  %v2357_v25 = vadd.f32 1e-05, %v2315_v46 }
 0x3fc   :  { %2783 = vst [vmem:[%s6564_s8 + $0xa0] sm:$0xff] %v2699_v37  ;;  %2784 = vst.msk [vmem:[%s6564_s8 + $0xa8] sm:$0xff] %vm1712_vm5, %v2700_v13  ;;  %v2074_v55 = vpop.xlane.xlu0 %2073  ;;  %v2538_v27 = vsub.f32 %v5193_v62, %v5865_v53  ;;  %v6738_v13 = vld [vmem:[#allocation2_spill] sm:$0xff]  ;;  %v2454_v46 = vld [vmem:[%s6563_s2 + $0xd8] sm:$0xff] }
 0x3fd   :  { %v3374_v1 = vpop.eup %3373  ;;  %3377 = vrsqrt.f32 %v2356_v45  ;;  %v2274_v2 = vsub.f32 %v2190_v63, %v2232_v15  ;;  %v2191_v22 = vmul.f32 0.0051020407, %v2074_v55  ;;  %v2539_v0 = vsub.f32 %v6738_v13, %v5878_v61  ;;  %v2453_v45 = vld [vmem:[%s6563_s2 + $0xd0] sm:$0xff] }
 0x3fe   :  { %v2617_v49 = vmul.f32 %v3374_v1, %v2533_v36  ;;  %v2618_v14 = vmul.f32 %v3374_v1, %v2534_v47  ;;  %v1784_v33 = vpop.xlane.xlu1 %1783  ;;  %3379 = vrsqrt.f32 %v2357_v25  ;;  %v2540_v36 = vsub.f32 %v6739_v29, %v5878_v61  ;;  %v2455_v1 = vld [vmem:[%s6563_s2 + $0xe0] sm:$0xff] }
 0x3ff   :  { %v3376_v56 = vpop.eup %3375  ;;  %v2316_v38 = vmax.f32 %v2274_v2, 0.0  ;;  %v2275_v48 = vsub.f32 %v2191_v22, %v2233_v39  ;;  %v5949_v7 = vmul.f32 0.0051020407, %v1784_v33  ;;  %v6741_v33 = vld [vmem:[#allocation4_spill] sm:$0xff] }
 0x400   :  { %v2701_v23 = vadd.f32 %v2617_v49, %v2449_v52  ;;  %v2702_v6 = vadd.f32 %v2618_v14, %v2450_v31  ;;  %v2619_v60 = vmul.f32 %v3376_v56, %v2535_v42  ;;  %v2620_v41 = vmul.f32 %v3376_v56, %v2536_v30  ;;  %v1788_v5 = vpop.xlane.xlu0 %1787  ;;  %v2456_v52 = vld [vmem:[%s6563_s2 + $0xe8] sm:$0xff]  ;;  %v6740_v31 = vld [vmem:[#allocation29_spill] sm:$0xff] }
 0x401   :  { %v2358_v18 = vadd.f32 1e-05, %v2316_v38  ;;  %v2317_v17 = vmax.f32 %v2275_v48, 0.0  ;;  %v5958_v8 = vmul.f32 0.0051020407, %v1788_v5  ;;  %v2234_v35 = vmul.f32 %v5949_v7, %v5949_v7 }
 0x402   :  { %2785 = vst [vmem:[%s6564_s8 + $0xb0] sm:$0xff] %v2701_v23  ;;  %2786 = vst.msk [vmem:[%s6564_s8 + $0xb8] sm:$0xff] %vm1712_vm5, %v2702_v6  ;;  %v2703_v43 = vadd.f32 %v2619_v60, %v2451_v40  ;;  %v2704_v44 = vadd.f32 %v2620_v41, %v2452_v21  ;;  %v2078_v50 = vpop.xlane.xlu1 %2077  ;;  %v2541_v25 = vsub.f32 %v6740_v31, %v5907_v12  ;;  %v6742_v41 = vld [vmem:[#allocation5_spill] sm:$0xff]  ;;  %v6745_v31 = vld [vmem:[#allocation8_spill] sm:$0xff] }
 0x403   :  { %3381 = vrsqrt.f32 %v2358_v18  ;;  %v2359_v20 = vadd.f32 1e-05, %v2317_v17  ;;  %v2192_v24 = vmul.f32 0.0051020407, %v2078_v50  ;;  %v2235_v32 = vmul.f32 %v5958_v8, %v5958_v8  ;;  %v6743_v18 = vld [vmem:[#allocation6_spill] sm:$0xff] }
 0x404   :  { %2787 = vst [vmem:[%s6564_s8 + $0xc0] sm:$0xff] %v2703_v43  ;;  %2788 = vst.msk [vmem:[%s6564_s8 + $0xc8] sm:$0xff] %vm1712_vm5, %v2704_v44  ;;  %v2082_v19 = vpop.xlane.xlu0 %2081  ;;  %v2542_v56 = vsub.f32 %v6741_v33, %v5907_v12  ;;  %v2543_v5 = vsub.f32 %v6742_v41, %v5916_v9  ;;  %v2544_v17 = vsub.f32 %v6743_v18, %v5916_v9  ;;  %v2457_v43 = vld [vmem:[%s6563_s2 + $0xf0] sm:$0xff]  ;;  %v2458_v44 = vld [vmem:[%s6563_s2 + $0xf8] sm:$0xff] }
 0x405   :  { %3383 = vrsqrt.f32 %v2359_v20  ;;  %v2276_v57 = vsub.f32 %v2192_v24, %v2234_v35  ;;  %v2193_v4 = vmul.f32 0.0051020407, %v2082_v19  ;;  %v2464_v41 = vld [vmem:[%s6563_s2 + $0x128] sm:$0xff] }
 0x406   :  { %v1792_v51 = vpop.xlane.xlu1 %1791 }
 0x407   :  { %v3378_v37 = vpop.eup %3377  ;;  %v2318_v15 = vmax.f32 %v2276_v57, 0.0  ;;  %v2277_v63 = vsub.f32 %v2193_v4, %v2235_v32  ;;  %v5985_v53 = vmul.f32 0.0051020407, %v1792_v51  ;;  %v2459_v57 = vld [vmem:[%s6563_s2 + $0x100] sm:$0xff]  ;;  %v2460_v32 = vld [vmem:[%s6563_s2 + $0x108] sm:$0xff] }
 0x408   :  { %v2621_v47 = vmul.f32 %v3378_v37, %v2537_v28  ;;  %v2622_v62 = vmul.f32 %v3378_v37, %v2538_v27  ;;  %v1796_v39 = vpop.xlane.xlu0 %1795  ;;  %v3380_v55 = vpop.eup %3379 }
 0x409   :  { %v2360_v2 = vadd.f32 1e-05, %v2318_v15  ;;  %v2319_v22 = vmax.f32 %v2277_v63, 0.0  ;;  %v2623_v30 = vmul.f32 %v3380_v55, %v2539_v0  ;;  %v2624_v49 = vmul.f32 %v3380_v55, %v2540_v36 }
 0x40a   :  { %v2705_v61 = vadd.f32 %v2621_v47, %v2453_v45  ;;  %v2706_v42 = vadd.f32 %v2622_v62, %v2454_v46  ;;  %v2086_v14 = vpop.xlane.xlu1 %2085  ;;  %v5997_v21 = vmul.f32 0.0051020407, %v1796_v39  ;;  %v2236_v23 = vmul.f32 %v5985_v53, %v5985_v53 }
 0x40b   :  { %3385 = vrsqrt.f32 %v2360_v2  ;;  %v2361_v40 = vadd.f32 1e-05, %v2319_v22  ;;  %v2707_v38 = vadd.f32 %v2623_v30, %v2455_v1  ;;  %v2708_v48 = vadd.f32 %v2624_v49, %v2456_v52  ;;  %v6744_v1 = vld [vmem:[#allocation7_spill] sm:$0xff]  ;;  %v2462_v30 = vld [vmem:[%s6563_s2 + $0x118] sm:$0xff] }
 0x40c   :  { %2789 = vst [vmem:[%s6564_s8 + $0xd0] sm:$0xff] %v2705_v61  ;;  %2790 = vst.msk [vmem:[%s6564_s8 + $0xd8] sm:$0xff] %vm1712_vm5, %v2706_v42  ;;  %v2194_v6 = vmul.f32 0.0051020407, %v2086_v14  ;;  %v2090_v12 = vpop.xlane.xlu0 %2089  ;;  %v2237_v4 = vmul.f32 %v5997_v21, %v5997_v21  ;;  %v2545_v52 = vsub.f32 %v6744_v1, %v5949_v7  ;;  %v2461_v42 = vld [vmem:[%s6563_s2 + $0x110] sm:$0xff] }
 0x40d   :  { %v3382_v60 = vpop.eup %3381  ;;  %3387 = vrsqrt.f32 %v2361_v40  ;;  %2791 = vst [vmem:[%s6564_s8 + $0xe0] sm:$0xff] %v2707_v38  ;;  %2792 = vst.msk [vmem:[%s6564_s8 + $0xe8] sm:$0xff] %vm1712_vm5, %v2708_v48  ;;  %v2195_v35 = vmul.f32 0.0051020407, %v2090_v12  ;;  %v6747_v40 = vld [vmem:[#allocation30_spill] sm:$0xff]  ;;  %v2465_v1 = vld [vmem:[%s6563_s2 + $0x130] sm:$0xff] }
 0x40e   :  { %v2625_v50 = vmul.f32 %v3382_v60, %v2541_v25  ;;  %v2626_v9 = vmul.f32 %v3382_v60, %v2542_v56  ;;  %v2278_v20 = vsub.f32 %v2194_v6, %v2236_v23  ;;  %v1800_v24 = vpop.xlane.xlu1 %1799  ;;  %v2546_v25 = vsub.f32 %v6745_v31, %v5949_v7  ;;  %v6746_v56 = vld [vmem:[#allocation9_spill] sm:$0xff]  ;;  %v2463_v60 = vld [vmem:[%s6563_s2 + $0x120] sm:$0xff] }
 0x40f   :  { %v3384_v19 = vpop.eup %3383  ;;  %v6033_v28 = vmul.f32 0.0051020407, %v1800_v24  ;;  %v2279_v46 = vsub.f32 %v2195_v35, %v2237_v4  ;;  %v2547_v7 = vsub.f32 %v6746_v56, %v5958_v8  ;;  %v2548_v38 = vsub.f32 %v6747_v40, %v5958_v8  ;;  %v6752_v56 = vld [vmem:[#allocation13_spill] sm:$0xff] }
 0x410   :  { %v2709_v27 = vadd.f32 %v2625_v50, %v2457_v43  ;;  %v2710_v51 = vadd.f32 %v2626_v9, %v2458_v44  ;;  %v2627_v37 = vmul.f32 %v3384_v19, %v2543_v5  ;;  %v2628_v13 = vmul.f32 %v3384_v19, %v2544_v17  ;;  %v1804_v0 = vpop.xlane.xlu0 %1803 }
 0x411   :  { %v2320_v45 = vmax.f32 %v2278_v20, 0.0  ;;  %v6042_v29 = vmul.f32 0.0051020407, %v1804_v0  ;;  %v2321_v62 = vmax.f32 %v2279_v46, 0.0  ;;  %v2238_v39 = vmul.f32 %v6033_v28, %v6033_v28  ;;  %v6748_v46 = vld [vmem:[#allocation10_spill] sm:$0xff] }
 0x412   :  { %2793 = vst [vmem:[%s6564_s8 + $0xf0] sm:$0xff] %v2709_v27  ;;  %2794 = vst.msk [vmem:[%s6564_s8 + $0xf8] sm:$0xff] %vm1712_vm5, %v2710_v51  ;;  %v2711_v15 = vadd.f32 %v2627_v37, %v2459_v57  ;;  %v2712_v63 = vadd.f32 %v2628_v13, %v2460_v32  ;;  %v2094_v36 = vpop.xlane.xlu1 %2093 }
 0x413   :  { %v2362_v47 = vadd.f32 1e-05, %v2320_v45  ;;  %v2196_v55 = vmul.f32 0.0051020407, %v2094_v36  ;;  %v2239_v2 = vmul.f32 %v6042_v29, %v6042_v29  ;;  %v2363_v49 = vadd.f32 1e-05, %v2321_v62 }
 0x414   :  { %2795 = vst [vmem:[%s6564_s8 + $0x100] sm:$0xff] %v2711_v15  ;;  %2796 = vst.msk [vmem:[%s6564_s8 + $0x108] sm:$0xff] %vm1712_vm5, %v2712_v63  ;;  %v2098_v22 = vpop.xlane.xlu0 %2097  ;;  %v2549_v15 = vsub.f32 %v6748_v46, %v5985_v53  ;;  %v6749_v63 = vld [vmem:[#allocation11_spill] sm:$0xff] }
 0x415   :  { %v3386_v61 = vpop.eup %3385  ;;  %3389 = vrsqrt.f32 %v2362_v47  ;;  %v2280_v14 = vsub.f32 %v2196_v55, %v2238_v39  ;;  %v2197_v33 = vmul.f32 0.0051020407, %v2098_v22  ;;  %v2550_v36 = vsub.f32 %v6749_v63, %v5985_v53  ;;  %v6750_v39 = vld [vmem:[#allocation31_spill] sm:$0xff] }
 0x416   :  { %v2629_v48 = vmul.f32 %v3386_v61, %v2545_v52  ;;  %v2630_v23 = vmul.f32 %v3386_v61, %v2546_v25  ;;  %v1808_v6 = vpop.xlane.xlu1 %1807  ;;  %3391 = vrsqrt.f32 %v2363_v49  ;;  %v2551_v55 = vsub.f32 %v6750_v39, %v5997_v21  ;;  %v2466_v52 = vld [vmem:[%s6563_s2 + $0x138] sm:$0xff]  ;;  %v2472_v46 = vld [vmem:[%s6563_s2 + $0x168] sm:$0xff] }
 0x417   :  { %v3388_v12 = vpop.eup %3387  ;;  %v2322_v5 = vmax.f32 %v2280_v14, 0.0  ;;  %v2281_v18 = vsub.f32 %v2197_v33, %v2239_v2  ;;  %v6075_v17 = vmul.f32 0.0051020407, %v1808_v6  ;;  %v6751_v2 = vld [vmem:[#allocation12_spill] sm:$0xff]  ;;  %v2467_v14 = vld [vmem:[%s6563_s2 + $0x140] sm:$0xff]  ;;  %v2468_v33 = vld [vmem:[%s6563_s2 + $0x148] sm:$0xff] }
 0x418   :  { %v2713_v43 = vadd.f32 %v2629_v48, %v2461_v42  ;;  %v2714_v44 = vadd.f32 %v2630_v23, %v2462_v30  ;;  %v2631_v8 = vmul.f32 %v3388_v12, %v2547_v7  ;;  %v2632_v50 = vmul.f32 %v3388_v12, %v2548_v38  ;;  %v1812_v9 = vpop.xlane.xlu0 %1811 }
 0x419   :  { %v2364_v20 = vadd.f32 1e-05, %v2322_v5  ;;  %v2323_v35 = vmax.f32 %v2281_v18, 0.0  ;;  %v6084_v57 = vmul.f32 0.0051020407, %v1812_v9  ;;  %v2240_v27 = vmul.f32 %v6075_v17, %v6075_v17 }
 0x41a   :  { %2797 = vst [vmem:[%s6564_s8 + $0x110] sm:$0xff] %v2713_v43  ;;  %2798 = vst.msk [vmem:[%s6564_s8 + $0x118] sm:$0xff] %vm1712_vm5, %v2714_v44  ;;  %v2715_v24 = vadd.f32 %v2631_v8, %v2463_v60  ;;  %v2716_v19 = vadd.f32 %v2632_v50, %v2464_v41  ;;  %v2102_v32 = vpop.xlane.xlu1 %2101  ;;  %v2552_v22 = vsub.f32 %v6751_v2, %v5997_v21  ;;  %v6753_v60 = vld [vmem:[#allocation32_spill] sm:$0xff] }
 0x41b   :  { %3393 = vrsqrt.f32 %v2364_v20  ;;  %v2365_v4 = vadd.f32 1e-05, %v2323_v35  ;;  %v2198_v51 = vmul.f32 0.0051020407, %v2102_v32  ;;  %v2241_v0 = vmul.f32 %v6084_v57, %v6084_v57  ;;  %v6754_v20 = vld [vmem:[#allocation14_spill] sm:$0xff]  ;;  %v2469_v32 = vld [vmem:[%s6563_s2 + $0x150] sm:$0xff] }
 0x41c   :  { %2799 = vst [vmem:[%s6564_s8 + $0x120] sm:$0xff] %v2715_v24  ;;  %2800 = vst.msk [vmem:[%s6564_s8 + $0x128] sm:$0xff] %vm1712_vm5, %v2716_v19  ;;  %v2106_v37 = vpop.xlane.xlu0 %2105  ;;  %v2553_v7 = vsub.f32 %v6752_v56, %v6033_v28  ;;  %v2554_v41 = vsub.f32 %v6753_v60, %v6033_v28  ;;  %v2555_v35 = vsub.f32 %v6754_v20, %v6042_v29  ;;  %v6755_v24 = vld [vmem:[#allocation15_spill] sm:$0xff]  ;;  %v6757_v56 = vld [vmem:[#allocation16_spill] sm:$0xff] }
 0x41d   :  { %3395 = vrsqrt.f32 %v2365_v4  ;;  %v2282_v13 = vsub.f32 %v2198_v51, %v2240_v27  ;;  %v2199_v45 = vmul.f32 0.0051020407, %v2106_v37  ;;  %v2556_v19 = vsub.f32 %v6755_v24, %v6042_v29  ;;  %v2470_v4 = vld [vmem:[%s6563_s2 + $0x158] sm:$0xff]  ;;  %v2476_v20 = vld [vmem:[%s6563_s2 + $0x188] sm:$0xff] }
 0x41e   :  { %v1816_v47 = vpop.xlane.xlu1 %1815 }
 0x41f   :  { %v3390_v62 = vpop.eup %3389  ;;  %v2324_v31 = vmax.f32 %v2282_v13, 0.0  ;;  %v2283_v25 = vsub.f32 %v2199_v45, %v2241_v0  ;;  %v6111_v42 = vmul.f32 0.0051020407, %v1816_v47  ;;  %v2471_v45 = vld [vmem:[%s6563_s2 + $0x160] sm:$0xff] }
 0x420   :  { %v2633_v61 = vmul.f32 %v3390_v62, %v2549_v15  ;;  %v2634_v53 = vmul.f32 %v3390_v62, %v2550_v36  ;;  %v1820_v30 = vpop.xlane.xlu0 %1819  ;;  %v3392_v49 = vpop.eup %3391 }
 0x421   :  { %v2366_v40 = vadd.f32 1e-05, %v2324_v31  ;;  %v2325_v38 = vmax.f32 %v2283_v25, 0.0  ;;  %v2635_v23 = vmul.f32 %v3392_v49, %v2551_v55  ;;  %v2636_v6 = vmul.f32 %v3392_v49, %v2552_v22 }
 0x422   :  { %v2717_v21 = vadd.f32 %v2633_v61, %v2465_v1  ;;  %v2718_v48 = vadd.f32 %v2634_v53, %v2466_v52  ;;  %v2110_v12 = vpop.xlane.xlu1 %2109  ;;  %v6123_v18 = vmul.f32 0.0051020407, %v1820_v30  ;;  %v2242_v8 = vmul.f32 %v6111_v42, %v6111_v42 }
 0x423   :  { %3397 = vrsqrt.f32 %v2366_v40  ;;  %v2367_v5 = vadd.f32 1e-05, %v2325_v38  ;;  %v2719_v43 = vadd.f32 %v2635_v23, %v2467_v14  ;;  %v2720_v44 = vadd.f32 %v2636_v6, %v2468_v33  ;;  %v6756_v14 = vld [vmem:[#allocation33_spill] sm:$0xff] }
 0x424   :  { %2801 = vst [vmem:[%s6564_s8 + $0x130] sm:$0xff] %v2717_v21  ;;  %2802 = vst.msk [vmem:[%s6564_s8 + $0x138] sm:$0xff] %vm1712_vm5, %v2718_v48  ;;  %v2200_v50 = vmul.f32 0.0051020407, %v2110_v12  ;;  %v2114_v28 = vpop.xlane.xlu0 %2113  ;;  %v2243_v15 = vmul.f32 %v6123_v18, %v6123_v18  ;;  %v2557_v33 = vsub.f32 %v6756_v14, %v6075_v17  ;;  %v2473_v48 = vld [vmem:[%s6563_s2 + $0x170] sm:$0xff]  ;;  %v2474_v23 = vld [vmem:[%s6563_s2 + $0x178] sm:$0xff] }
 0x425   :  { %v3394_v9 = vpop.eup %3393  ;;  %3399 = vrsqrt.f32 %v2367_v5  ;;  %2803 = vst [vmem:[%s6564_s8 + $0x140] sm:$0xff] %v2719_v43  ;;  %2804 = vst.msk [vmem:[%s6564_s8 + $0x148] sm:$0xff] %vm1712_vm5, %v2720_v44  ;;  %v2201_v37 = vmul.f32 0.0051020407, %v2114_v28  ;;  %v6759_v5 = vld [vmem:[#allocation34_spill] sm:$0xff]  ;;  %v2477_v14 = vld [vmem:[%s6563_s2 + $0x190] sm:$0xff] }
 0x426   :  { %v2637_v27 = vmul.f32 %v3394_v9, %v2553_v7  ;;  %v2638_v29 = vmul.f32 %v3394_v9, %v2554_v41  ;;  %v2284_v51 = vsub.f32 %v2200_v50, %v2242_v8  ;;  %v1824_v13 = vpop.xlane.xlu1 %1823  ;;  %v2558_v7 = vsub.f32 %v6757_v56, %v6075_v17  ;;  %v6758_v41 = vld [vmem:[#allocation17_spill] sm:$0xff]  ;;  %v2475_v9 = vld [vmem:[%s6563_s2 + $0x180] sm:$0xff] }
 0x427   :  { %v3396_v0 = vpop.eup %3395  ;;  %v6159_v63 = vmul.f32 0.0051020407, %v1824_v13  ;;  %v2285_v52 = vsub.f32 %v2201_v37, %v2243_v15  ;;  %v2559_v17 = vsub.f32 %v6758_v41, %v6084_v57  ;;  %v2560_v43 = vsub.f32 %v6759_v5, %v6084_v57  ;;  %v6764_v41 = vld [vmem:[#allocation21_spill] sm:$0xff] }
 0x428   :  { %v2721_v36 = vadd.f32 %v2637_v27, %v2469_v32  ;;  %v2722_v47 = vadd.f32 %v2638_v29, %v2470_v4  ;;  %v2639_v62 = vmul.f32 %v3396_v0, %v2555_v35  ;;  %v2640_v39 = vmul.f32 %v3396_v0, %v2556_v19  ;;  %v1828_v55 = vpop.xlane.xlu0 %1827 }
 0x429   :  { %v2326_v1 = vmax.f32 %v2284_v51, 0.0  ;;  %v6168_v2 = vmul.f32 0.0051020407, %v1828_v55  ;;  %v2327_v53 = vmax.f32 %v2285_v52, 0.0  ;;  %v2244_v30 = vmul.f32 %v6159_v63, %v6159_v63  ;;  %v6760_v52 = vld [vmem:[#allocation18_spill] sm:$0xff] }
 0x42a   :  { %2805 = vst [vmem:[%s6564_s8 + $0x150] sm:$0xff] %v2721_v36  ;;  %2806 = vst.msk [vmem:[%s6564_s8 + $0x158] sm:$0xff] %vm1712_vm5, %v2722_v47  ;;  %v2723_v31 = vadd.f32 %v2639_v62, %v2471_v45  ;;  %v2724_v25 = vadd.f32 %v2640_v39, %v2472_v46  ;;  %v2118_v22 = vpop.xlane.xlu1 %2117 }
 0x42b   :  { %v2368_v61 = vadd.f32 1e-05, %v2326_v1  ;;  %v2202_v49 = vmul.f32 0.0051020407, %v2118_v22  ;;  %v2245_v40 = vmul.f32 %v6168_v2, %v6168_v2  ;;  %v2369_v6 = vadd.f32 1e-05, %v2327_v53 }
 0x42c   :  { %2807 = vst [vmem:[%s6564_s8 + $0x160] sm:$0xff] %v2723_v31  ;;  %2808 = vst.msk [vmem:[%s6564_s8 + $0x168] sm:$0xff] %vm1712_vm5, %v2724_v25  ;;  %v2122_v38 = vpop.xlane.xlu0 %2121  ;;  %v2561_v31 = vsub.f32 %v6760_v52, %v6111_v42  ;;  %v6761_v25 = vld [vmem:[#allocation19_spill] sm:$0xff] }
 0x42d   :  { %v3398_v21 = vpop.eup %3397  ;;  %3401 = vrsqrt.f32 %v2368_v61  ;;  %v2286_v12 = vsub.f32 %v2202_v49, %v2244_v30  ;;  %v2203_v60 = vmul.f32 0.0051020407, %v2122_v38  ;;  %v2562_v22 = vsub.f32 %v6761_v25, %v6111_v42  ;;  %v6762_v30 = vld [vmem:[#allocation35_spill] sm:$0xff] }
 0x42e   :  { %v2641_v44 = vmul.f32 %v3398_v21, %v2557_v33  ;;  %v2642_v8 = vmul.f32 %v3398_v21, %v2558_v7  ;;  %v1832_v50 = vpop.xlane.xlu1 %1831  ;;  %3403 = vrsqrt.f32 %v2369_v6  ;;  %v2563_v49 = vsub.f32 %v6762_v30, %v6123_v18  ;;  %v2478_v33 = vld [vmem:[%s6563_s2 + $0x198] sm:$0xff]  ;;  %v2484_v52 = vld [vmem:[%s6563_s2 + $0x1c8] sm:$0xff] }
 0x42f   :  { %v3400_v28 = vpop.eup %3399  ;;  %v2328_v35 = vmax.f32 %v2286_v12, 0.0  ;;  %v2287_v24 = vsub.f32 %v2203_v60, %v2245_v40  ;;  %v6201_v19 = vmul.f32 0.0051020407, %v1832_v50  ;;  %v6763_v40 = vld [vmem:[#allocation20_spill] sm:$0xff]  ;;  %v2479_v12 = vld [vmem:[%s6563_s2 + $0x1a0] sm:$0xff]  ;;  %v2480_v60 = vld [vmem:[%s6563_s2 + $0x1a8] sm:$0xff] }
 0x430   :  { %v2725_v32 = vadd.f32 %v2641_v44, %v2473_v48  ;;  %v2726_v4 = vadd.f32 %v2642_v8, %v2474_v23  ;;  %v2643_v57 = vmul.f32 %v3400_v28, %v2559_v17  ;;  %v2644_v27 = vmul.f32 %v3400_v28, %v2560_v43  ;;  %v1836_v29 = vpop.xlane.xlu0 %1835 }
 0x431   :  { %v2370_v51 = vadd.f32 1e-05, %v2328_v35  ;;  %v2329_v37 = vmax.f32 %v2287_v24, 0.0  ;;  %v6210_v45 = vmul.f32 0.0051020407, %v1836_v29  ;;  %v2246_v36 = vmul.f32 %v6201_v19, %v6201_v19 }
 0x432   :  { %2809 = vst [vmem:[%s6564_s8 + $0x170] sm:$0xff] %v2725_v32  ;;  %2810 = vst.msk [vmem:[%s6564_s8 + $0x178] sm:$0xff] %vm1712_vm5, %v2726_v4  ;;  %v2727_v13 = vadd.f32 %v2643_v57, %v2475_v9  ;;  %v2728_v0 = vadd.f32 %v2644_v27, %v2476_v20  ;;  %v2126_v46 = vpop.xlane.xlu1 %2125  ;;  %v2564_v38 = vsub.f32 %v6763_v40, %v6123_v18  ;;  %v6765_v9 = vld [vmem:[#allocation22_spill] sm:$0xff] }
 0x433   :  { %3405 = vrsqrt.f32 %v2370_v51  ;;  %v2371_v15 = vadd.f32 1e-05, %v2329_v37  ;;  %v2204_v47 = vmul.f32 0.0051020407, %v2126_v46  ;;  %v2247_v55 = vmul.f32 %v6210_v45, %v6210_v45  ;;  %v6766_v51 = vld [vmem:[#allocation23_spill] sm:$0xff]  ;;  %v2481_v46 = vld [vmem:[%s6563_s2 + $0x1b0] sm:$0xff] }
 0x434   :  { %2811 = vst [vmem:[%s6564_s8 + $0x180] sm:$0xff] %v2727_v13  ;;  %2812 = vst.msk [vmem:[%s6564_s8 + $0x188] sm:$0xff] %vm1712_vm5, %v2728_v0  ;;  %v2130_v62 = vpop.xlane.xlu0 %2129  ;;  %v2565_v17 = vsub.f32 %v6764_v41, %v6159_v63  ;;  %v2566_v20 = vsub.f32 %v6765_v9, %v6159_v63  ;;  %v2567_v37 = vsub.f32 %v6766_v51, %v6168_v2  ;;  %v6767_v13 = vld [vmem:[#allocation24_spill] sm:$0xff]  ;;  %v2488_v51 = vld [vmem:[%s6563_s2 + $0x1e8] sm:$0xff] }
 0x435   :  { %3407 = vrsqrt.f32 %v2371_v15  ;;  %v2288_v39 = vsub.f32 %v2204_v47, %v2246_v36  ;;  %v2205_v1 = vmul.f32 0.0051020407, %v2130_v62  ;;  %v2568_v0 = vsub.f32 %v6767_v13, %v6168_v2  ;;  %v2482_v15 = vld [vmem:[%s6563_s2 + $0x1b8] sm:$0xff]  ;;  %v6769_v41 = vld [vmem:[#allocation36_spill] sm:$0xff] }
 0x436   :  { %v1840_v61 = vpop.xlane.xlu1 %1839 }
 0x437   :  { %v3402_v53 = vpop.eup %3401  ;;  %v2330_v56 = vmax.f32 %v2288_v39, 0.0  ;;  %v2289_v7 = vsub.f32 %v2205_v1, %v2247_v55  ;;  %v6237_v48 = vmul.f32 0.0051020407, %v1840_v61  ;;  %v2483_v1 = vld [vmem:[%s6563_s2 + $0x1c0] sm:$0xff] }
 0x438   :  { %v2645_v21 = vmul.f32 %v3402_v53, %v2561_v31  ;;  %v2646_v42 = vmul.f32 %v3402_v53, %v2562_v22  ;;  %v1844_v23 = vpop.xlane.xlu0 %1843  ;;  %v3404_v6 = vpop.eup %3403 }
 0x439   :  { %v2372_v5 = vadd.f32 1e-05, %v2330_v56  ;;  %v2331_v43 = vmax.f32 %v2289_v7, 0.0  ;;  %v2647_v8 = vmul.f32 %v3404_v6, %v2563_v49  ;;  %v2648_v50 = vmul.f32 %v3404_v6, %v2564_v38 }
 0x43a   :  { %v2729_v18 = vadd.f32 %v2645_v21, %v2477_v14  ;;  %v2730_v44 = vadd.f32 %v2646_v42, %v2478_v33  ;;  %v2134_v28 = vpop.xlane.xlu1 %2133  ;;  %v6249_v24 = vmul.f32 0.0051020407, %v1844_v23  ;;  %v2248_v57 = vmul.f32 %v6237_v48, %v6237_v48 }
 0x43b   :  { %3409 = vrsqrt.f32 %v2372_v5  ;;  %v2373_v35 = vadd.f32 1e-05, %v2331_v43  ;;  %v2731_v32 = vadd.f32 %v2647_v8, %v2479_v12  ;;  %v2732_v4 = vadd.f32 %v2648_v50, %v2480_v60  ;;  %v6768_v12 = vld [vmem:[#allocation25_spill] sm:$0xff] }
 0x43c   :  { %2813 = vst [vmem:[%s6564_s8 + $0x190] sm:$0xff] %v2729_v18  ;;  %2814 = vst.msk [vmem:[%s6564_s8 + $0x198] sm:$0xff] %vm1712_vm5, %v2730_v44  ;;  %v2206_v27 = vmul.f32 0.0051020407, %v2134_v28  ;;  %v2138_v63 = vpop.xlane.xlu0 %2137  ;;  %v2249_v31 = vmul.f32 %v6249_v24, %v6249_v24  ;;  %v2569_v60 = vsub.f32 %v6768_v12, %v6201_v19  ;;  %v2485_v44 = vld [vmem:[%s6563_s2 + $0x1d0] sm:$0xff]  ;;  %v2486_v8 = vld [vmem:[%s6563_s2 + $0x1d8] sm:$0xff] }
 0x43d   :  { %v3406_v29 = vpop.eup %3405  ;;  %3411 = vrsqrt.f32 %v2373_v35  ;;  %2815 = vst [vmem:[%s6564_s8 + $0x1a0] sm:$0xff] %v2731_v32  ;;  %2816 = vst.msk [vmem:[%s6564_s8 + $0x1a8] sm:$0xff] %vm1712_vm5, %v2732_v4  ;;  %v2207_v62 = vmul.f32 0.0051020407, %v2138_v63  ;;  %v6771_v35 = vld [vmem:[#allocation27_spill] sm:$0xff] }
 0x43e   :  { %v2649_v36 = vmul.f32 %v3406_v29, %v2565_v17  ;;  %v2650_v2 = vmul.f32 %v3406_v29, %v2566_v20  ;;  %v2290_v47 = vsub.f32 %v2206_v27, %v2248_v57  ;;  %v1848_v39 = vpop.xlane.xlu1 %1847  ;;  %v2570_v17 = vsub.f32 %v6769_v41, %v6201_v19  ;;  %v6770_v20 = vld [vmem:[#allocation26_spill] sm:$0xff] }
 0x43f   :  { %v3408_v55 = vpop.eup %3407  ;;  %v6285_v25 = vmul.f32 0.0051020407, %v1848_v39  ;;  %v2291_v33 = vsub.f32 %v2207_v62, %v2249_v31  ;;  %v2571_v19 = vsub.f32 %v6770_v20, %v6210_v45  ;;  %v2572_v32 = vsub.f32 %v6771_v35, %v6210_v45  ;;  %v2487_v29 = vld [vmem:[%s6563_s2 + $0x1e0] sm:$0xff] }
 0x440   :  { %v2733_v22 = vadd.f32 %v2649_v36, %v2481_v46  ;;  %v2734_v61 = vadd.f32 %v2650_v2, %v2482_v15  ;;  %v2651_v53 = vmul.f32 %v3408_v55, %v2567_v37  ;;  %v2652_v30 = vmul.f32 %v3408_v55, %v2568_v0  ;;  %v1852_v49 = vpop.xlane.xlu0 %1851 }
 0x441   :  { %v2332_v14 = vmax.f32 %v2290_v47, 0.0  ;;  %v6294_v40 = vmul.f32 0.0051020407, %v1852_v49  ;;  %v2333_v42 = vmax.f32 %v2291_v33, 0.0  ;;  %v2250_v23 = vmul.f32 %v6285_v25, %v6285_v25 }
 0x442   :  { %2817 = vst [vmem:[%s6564_s8 + $0x1b0] sm:$0xff] %v2733_v22  ;;  %2818 = vst.msk [vmem:[%s6564_s8 + $0x1b8] sm:$0xff] %vm1712_vm5, %v2734_v61  ;;  %v2735_v56 = vadd.f32 %v2651_v53, %v2483_v1  ;;  %v2736_v7 = vadd.f32 %v2652_v30, %v2484_v52  ;;  %v2142_v38 = vpop.xlane.xlu1 %2141  ;;  %v2573_v33 = vsub.f32 %v5511_v59, %v6237_v48 }
 0x443   :  { %v2374_v21 = vadd.f32 1e-05, %v2332_v14  ;;  %v2208_v6 = vmul.f32 0.0051020407, %v2142_v38  ;;  %v2251_v5 = vmul.f32 %v6294_v40, %v6294_v40  ;;  %v2375_v50 = vadd.f32 1e-05, %v2333_v42 }
 0x444   :  { %2819 = vst [vmem:[%s6564_s8 + $0x1c0] sm:$0xff] %v2735_v56  ;;  %2820 = vst.msk [vmem:[%s6564_s8 + $0x1c8] sm:$0xff] %vm1712_vm5, %v2736_v7  ;;  %v2146_v43 = vpop.xlane.xlu0 %2145  ;;  %v6772_v56 = vld [vmem:[#allocation37_spill] sm:$0xff]  ;;  %v2575_v42 = vsub.f32 %v5531_v58, %v6249_v24  ;;  %v2576_v59 = vsub.f32 %v5534_v54, %v6249_v24  ;;  %v2491_v58 = vld [vmem:[%s6563_s2 + $0x200] sm:$0xff] }
 0x445   :  { %v3410_v18 = vpop.eup %3409  ;;  %3413 = vrsqrt.f32 %v2374_v21  ;;  %v2292_v28 = vsub.f32 %v2208_v6, %v2250_v23  ;;  %v2209_v9 = vmul.f32 0.0051020407, %v2146_v43  ;;  %v2574_v7 = vsub.f32 %v6772_v56, %v6237_v48  ;;  %v2489_v23 = vld [vmem:[%s6563_s2 + $0x1f0] sm:$0xff]  ;;  %v2490_v6 = vld [vmem:[%s6563_s2 + $0x1f8] sm:$0xff] }
 0x446   :  { %v2653_v4 = vmul.f32 %v3410_v18, %v2569_v60  ;;  %v2654_v57 = vmul.f32 %v3410_v18, %v2570_v17  ;;  %v1856_v27 = vpop.xlane.xlu1 %1855  ;;  %3415 = vrsqrt.f32 %v2375_v50  ;;  %v2492_v18 = vld [vmem:[%s6563_s2 + $0x208] sm:$0xff]  ;;  %v6773_v56 = vld [vmem:[#allocation28_spill] sm:$0xff] }
 0x447   :  { %v3412_v63 = vpop.eup %3411  ;;  %v2334_v37 = vmax.f32 %v2292_v28, 0.0  ;;  %v2293_v13 = vsub.f32 %v2209_v9, %v2251_v5  ;;  %v6327_v0 = vmul.f32 0.0051020407, %v1856_v27 }
 0x448   :  { %v2737_v46 = vadd.f32 %v2653_v4, %v2485_v44  ;;  %v2738_v15 = vadd.f32 %v2654_v57, %v2486_v8  ;;  %v2655_v45 = vmul.f32 %v3412_v63, %v2571_v19  ;;  %v2656_v36 = vmul.f32 %v3412_v63, %v2572_v32  ;;  %v1860_v2 = vpop.xlane.xlu0 %1859 }
 0x449   :  { %v2376_v47 = vadd.f32 1e-05, %v2334_v37  ;;  %v2335_v62 = vmax.f32 %v2293_v13, 0.0  ;;  %v6336_v1 = vmul.f32 0.0051020407, %v1860_v2  ;;  %v2252_v22 = vmul.f32 %v6327_v0, %v6327_v0  ;;  %v2494_v37 = vld [vmem:[%s6563_s2 + $0x218] sm:$0xff] }
 0x44a   :  { %2821 = vst [vmem:[%s6564_s8 + $0x1d0] sm:$0xff] %v2737_v46  ;;  %2822 = vst.msk [vmem:[%s6564_s8 + $0x1d8] sm:$0xff] %vm1712_vm5, %v2738_v15  ;;  %v2739_v39 = vadd.f32 %v2655_v45, %v2487_v29  ;;  %v2740_v55 = vadd.f32 %v2656_v36, %v2488_v51  ;;  %v2150_v52 = vpop.xlane.xlu1 %2149  ;;  %v2577_v44 = vsub.f32 %v5543_v3, %v6285_v25  ;;  %v2493_v51 = vld [vmem:[%s6563_s2 + $0x210] sm:$0xff]  ;;  %v2495_v45 = vld [vmem:[%s6563_s2 + $0x220] sm:$0xff] }
 0x44b   :  { %3417 = vrsqrt.f32 %v2376_v47  ;;  %v2377_v31 = vadd.f32 1e-05, %v2335_v62  ;;  %v2210_v61 = vmul.f32 0.0051020407, %v2150_v52  ;;  %v2253_v49 = vmul.f32 %v6336_v1, %v6336_v1  ;;  %v2496_v36 = vld [vmem:[%s6563_s2 + $0x228] sm:$0xff] }
 0x44c   :  { %2823 = vst [vmem:[%s6564_s8 + $0x1e0] sm:$0xff] %v2739_v39  ;;  %2824 = vst.msk [vmem:[%s6564_s8 + $0x1e8] sm:$0xff] %vm1712_vm5, %v2740_v55  ;;  %v2154_v53 = vpop.xlane.xlu0 %2153  ;;  %v2578_v19 = vsub.f32 %v5549_v34, %v6285_v25  ;;  %v2579_v63 = vsub.f32 %v5559_v11, %v6294_v40  ;;  %v2580_v29 = vsub.f32 %v5562_v26, %v6294_v40 }
 0x44d   :  { %3419 = vrsqrt.f32 %v2377_v31  ;;  %v2294_v30 = vsub.f32 %v2210_v61, %v2252_v22  ;;  %v2211_v14 = vmul.f32 0.0051020407, %v2154_v53 }
 0x44e   :  { %v1864_v38 = vpop.xlane.xlu1 %1863 }
 0x44f   :  { %v3414_v21 = vpop.eup %3413  ;;  %v2336_v12 = vmax.f32 %v2294_v30, 0.0  ;;  %v2295_v60 = vsub.f32 %v2211_v14, %v2253_v49  ;;  %v6363_v17 = vmul.f32 0.0051020407, %v1864_v38  ;;  %v6774_v38 = vld [vmem:[#allocation38_spill] sm:$0xff] }
 0x450   :  { %v2657_v41 = vmul.f32 %v3414_v21, %v2573_v33  ;;  %v2658_v48 = vmul.f32 %v3414_v21, %v2574_v7  ;;  %v1868_v5 = vpop.xlane.xlu0 %1867  ;;  %v3416_v43 = vpop.eup %3415  ;;  %v2581_v7 = vsub.f32 %v6773_v56, %v6327_v0  ;;  %v2582_v21 = vsub.f32 %v6774_v38, %v6327_v0 }
 0x451   :  { %v2378_v8 = vadd.f32 1e-05, %v2336_v12  ;;  %v2337_v50 = vmax.f32 %v2295_v60, 0.0  ;;  %v2659_v28 = vmul.f32 %v3416_v43, %v2575_v42  ;;  %v2660_v9 = vmul.f32 %v3416_v43, %v2576_v59  ;;  %v2497_v60 = vld [vmem:[%s6563_s2 + $0x230] sm:$0xff]  ;;  %v2498_v59 = vld [vmem:[%s6563_s2 + $0x238] sm:$0xff] }
 0x452   :  { %v2741_v54 = vadd.f32 %v2657_v41, %v2489_v23  ;;  %v2742_v24 = vadd.f32 %v2658_v48, %v2490_v6  ;;  %v2158_v20 = vpop.xlane.xlu1 %2157  ;;  %v6375_v32 = vmul.f32 0.0051020407, %v1868_v5  ;;  %v2254_v57 = vmul.f32 %v6363_v17, %v6363_v17  ;;  %v6775_v6 = vld [vmem:[#allocation39_spill] sm:$0xff]  ;;  %v6776_v48 = vld [vmem:[#allocation40_spill] sm:$0xff] }
 0x453   :  { %3421 = vrsqrt.f32 %v2378_v8  ;;  %v2379_v35 = vadd.f32 1e-05, %v2337_v50  ;;  %v2743_v3 = vadd.f32 %v2659_v28, %v2491_v58  ;;  %v2744_v4 = vadd.f32 %v2660_v9, %v2492_v18  ;;  %v2499_v8 = vld [vmem:[%s6563_s2 + $0x240] sm:$0xff]  ;;  %v2500_v50 = vld [vmem:[%s6563_s2 + $0x248] sm:$0xff] }
 0x454   :  { %2825 = vst [vmem:[%s6564_s8 + $0x1f0] sm:$0xff] %v2741_v54  ;;  %2826 = vst.msk [vmem:[%s6564_s8 + $0x1f8] sm:$0xff] %vm1712_vm5, %v2742_v24  ;;  %v2212_v27 = vmul.f32 0.0051020407, %v2158_v20  ;;  %v2162_v34 = vpop.xlane.xlu0 %2161  ;;  %v2255_v2 = vmul.f32 %v6375_v32, %v6375_v32  ;;  %v2583_v12 = vsub.f32 %v6775_v6, %v6336_v1  ;;  %v2584_v5 = vsub.f32 %v6776_v48, %v6336_v1 }
 0x455   :  { %v3418_v25 = vpop.eup %3417  ;;  %3423 = vrsqrt.f32 %v2379_v35  ;;  %2827 = vst [vmem:[%s6564_s8 + $0x200] sm:$0xff] %v2743_v3  ;;  %2828 = vst.msk [vmem:[%s6564_s8 + $0x208] sm:$0xff] %vm1712_vm5, %v2744_v4  ;;  %v2213_v13 = vmul.f32 0.0051020407, %v2162_v34 }
 0x456   :  { %v2661_v11 = vmul.f32 %v3418_v25, %v2577_v44  ;;  %v2662_v26 = vmul.f32 %v3418_v25, %v2578_v19  ;;  %v2296_v40 = vsub.f32 %v2212_v27, %v2254_v57  ;;  %v1872_v46 = vpop.xlane.xlu1 %1871 }
 0x457   :  { %v3420_v15 = vpop.eup %3419  ;;  %v2297_v31 = vsub.f32 %v2213_v13, %v2255_v2  ;;  %v6418_v53 = vmul.f32 0.0051020407, %v1872_v46  ;;  %v6778_v46 = vld [vmem:[#allocation42_spill] sm:$0xff] }
 0x458   :  { %v2745_v47 = vadd.f32 %v2661_v11, %v2493_v51  ;;  %v2746_v62 = vadd.f32 %v2662_v26, %v2494_v37  ;;  %v2663_v39 = vmul.f32 %v3420_v15, %v2579_v63  ;;  %v2664_v55 = vmul.f32 %v3420_v15, %v2580_v29 }
 0x459   :  { %v2338_v52 = vmax.f32 %v2296_v40, 0.0  ;;  %v1876_v30 = vpop.xlane.xlu0 %1875  ;;  %v2339_v14 = vmax.f32 %v2297_v31, 0.0  ;;  %v2256_v54 = vmul.f32 %v6418_v53, %v6418_v53  ;;  %v6777_v40 = vld [vmem:[#allocation41_spill] sm:$0xff]  ;;  %v2586_v15 = vsub.f32 %v6778_v46, %v6363_v17 }
 0x45a   :  { %2829 = vst [vmem:[%s6564_s8 + $0x210] sm:$0xff] %v2745_v47  ;;  %2830 = vst.msk [vmem:[%s6564_s8 + $0x218] sm:$0xff] %vm1712_vm5, %v2746_v62  ;;  %v2747_v22 = vadd.f32 %v2663_v39, %v2495_v45  ;;  %v2748_v61 = vadd.f32 %v2664_v55, %v2496_v36  ;;  %v6420_v33 = vmul.f32 0.0051020407, %v1876_v30  ;;  %v2585_v13 = vsub.f32 %v6777_v40, %v6363_v17  ;;  %v6779_v36 = vld [vmem:[#allocation43_spill] sm:$0xff]  ;;  %v2501_v47 = vld [vmem:[%s6563_s2 + $0x250] sm:$0xff] }
 0x45b   :  { %v2380_v49 = vadd.f32 1e-05, %v2338_v52  ;;  %v2166_v42 = vpop.xlane.xlu1 %2165  ;;  %v2381_v41 = vadd.f32 1e-05, %v2339_v14  ;;  %v2587_v2 = vsub.f32 %v6779_v36, %v6375_v32  ;;  %v2502_v62 = vld [vmem:[%s6563_s2 + $0x258] sm:$0xff]  ;;  %v6780_v55 = vld [vmem:[#allocation44_spill] sm:$0xff] }
 0x45c   :  { %2831 = vst [vmem:[%s6564_s8 + $0x220] sm:$0xff] %v2747_v22  ;;  %2832 = vst.msk [vmem:[%s6564_s8 + $0x228] sm:$0xff] %vm1712_vm5, %v2748_v61  ;;  %v2214_v58 = vmul.f32 0.0051020407, %v2166_v42  ;;  %v2257_v1 = vmul.f32 %v6420_v33, %v6420_v33  ;;  %v2588_v52 = vsub.f32 %v6780_v55, %v6375_v32  ;;  %v2503_v61 = vld [vmem:[%s6563_s2 + $0x260] sm:$0xff]  ;;  %v2504_v30 = vld [vmem:[%s6563_s2 + $0x268] sm:$0xff] }
 0x45d   :  { %v3422_v23 = vpop.eup %3421  ;;  %3425 = vrsqrt.f32 %v2380_v49  ;;  %v2170_v18 = vpop.xlane.xlu0 %2169 }
 0x45e   :  { %v2665_v43 = vmul.f32 %v3422_v23, %v2581_v7  ;;  %v2666_v0 = vmul.f32 %v3422_v23, %v2582_v21  ;;  %3427 = vrsqrt.f32 %v2381_v41  ;;  %v2215_v24 = vmul.f32 0.0051020407, %v2170_v18  ;;  %v6781_v23 = vld [vmem:[#allocation45_spill] sm:$0xff]  ;;  %v6783_v41 = vld [vmem:[#allocation47_spill] sm:$0xff] }
 0x45f   :  { %v3424_v44 = vpop.eup %3423  ;;  %v1880_v35 = vpop.xlane.xlu1 %1879  ;;  %v2298_v3 = vsub.f32 %v2214_v58, %v2256_v54  ;;  %v2589_v6 = vsub.f32 %v6781_v23, %v6418_v53  ;;  %v2591_v48 = vsub.f32 %v6783_v41, %v6420_v33  ;;  %v2506_v58 = vld [vmem:[%s6563_s2 + $0x278] sm:$0xff] }
 0x460   :  { %v2749_v28 = vadd.f32 %v2665_v43, %v2497_v60  ;;  %v2750_v9 = vadd.f32 %v2666_v0, %v2498_v59  ;;  %v2667_v20 = vmul.f32 %v3424_v44, %v2583_v12  ;;  %v2668_v19 = vmul.f32 %v3424_v44, %v2584_v5  ;;  %v6782_v12 = vld [vmem:[#allocation46_spill] sm:$0xff]  ;;  %v6784_v5 = vld [vmem:[#allocation48_spill] sm:$0xff] }
 0x461   :  { %v2299_v4 = vsub.f32 %v2215_v24, %v2257_v1  ;;  %v6453_v57 = vmul.f32 0.0051020407, %v1880_v35  ;;  %v2340_v25 = vmax.f32 %v2298_v3, 0.0  ;;  %v2590_v60 = vsub.f32 %v6782_v12, %v6418_v53  ;;  %v2505_v0 = vld [vmem:[%s6563_s2 + $0x270] sm:$0xff]  ;;  %v2507_v53 = vld [vmem:[%s6563_s2 + $0x280] sm:$0xff] }
 0x462   :  { %2833 = vst [vmem:[%s6564_s8 + $0x230] sm:$0xff] %v2749_v28  ;;  %2834 = vst.msk [vmem:[%s6564_s8 + $0x238] sm:$0xff] %vm1712_vm5, %v2750_v9  ;;  %v2751_v27 = vadd.f32 %v2667_v20, %v2499_v8  ;;  %v2752_v34 = vadd.f32 %v2668_v19, %v2500_v50  ;;  %v2592_v43 = vsub.f32 %v6784_v5, %v6420_v33  ;;  %v2508_v50 = vld [vmem:[%s6563_s2 + $0x288] sm:$0xff]  ;;  %v2509_v3 = vld [vmem:[%s6563_s2 + $0x290] sm:$0xff] }
 0x463   :  { %v2341_v63 = vmax.f32 %v2299_v4, 0.0  ;;  %v2174_v29 = vpop.xlane.xlu1 %2173  ;;  %v2382_v51 = vadd.f32 1e-05, %v2340_v25  ;;  %v2258_v11 = vmul.f32 %v6453_v57, %v6453_v57  ;;  %v2593_v20 = vsub.f32 %v5666_v16, %v6453_v57  ;;  %v2510_v16 = vld [vmem:[%s6563_s2 + $0x298] sm:$0xff] }
 0x464   :  { %2835 = vst [vmem:[%s6564_s8 + $0x240] sm:$0xff] %v2751_v27  ;;  %2836 = vst.msk [vmem:[%s6564_s8 + $0x248] sm:$0xff] %vm1712_vm5, %v2752_v34  ;;  %v2216_v26 = vmul.f32 0.0051020407, %v2174_v29  ;;  %v2594_v19 = vsub.f32 %v5675_v10, %v6453_v57 }
 0x465   :  { %v2383_v37 = vadd.f32 1e-05, %v2341_v63  ;;  %3429 = vrsqrt.f32 %v2382_v51 }
 0x466   :  { %v2300_v39 = vsub.f32 %v2216_v26, %v2258_v11 }
 0x467   :  { %v3426_v45 = vpop.eup %3425  ;;  %3431 = vrsqrt.f32 %v2383_v37 }
 0x468   :  { %v2669_v31 = vmul.f32 %v3426_v45, %v2585_v13  ;;  %v2670_v22 = vmul.f32 %v3426_v45, %v2586_v15  ;;  %v3428_v17 = vpop.eup %3427  ;;  %v2342_v49 = vmax.f32 %v2300_v39, 0.0 }
 0x469   :  { %v2671_v7 = vmul.f32 %v3428_v17, %v2587_v2  ;;  %v2672_v38 = vmul.f32 %v3428_v17, %v2588_v52 }
 0x46a   :  { %v2753_v14 = vadd.f32 %v2669_v31, %v2501_v47  ;;  %v2754_v56 = vadd.f32 %v2670_v22, %v2502_v62  ;;  %v2384_v21 = vadd.f32 1e-05, %v2342_v49 }
 0x46b   :  { %v2755_v32 = vadd.f32 %v2671_v7, %v2503_v61  ;;  %v2756_v42 = vadd.f32 %v2672_v38, %v2504_v30 }
 0x46c   :  { %2837 = vst [vmem:[%s6564_s8 + $0x250] sm:$0xff] %v2753_v14  ;;  %2838 = vst.msk [vmem:[%s6564_s8 + $0x258] sm:$0xff] %vm1712_vm5, %v2754_v56  ;;  %3433 = vrsqrt.f32 %v2384_v21 }
 0x46d   :  { %2839 = vst [vmem:[%s6564_s8 + $0x260] sm:$0xff] %v2755_v32  ;;  %2840 = vst.msk [vmem:[%s6564_s8 + $0x268] sm:$0xff] %vm1712_vm5, %v2756_v42 }
 0x46f   :  { %v3430_v59 = vpop.eup %3429 }
 0x470   :  { %v2673_v44 = vmul.f32 %v3430_v59, %v2589_v6  ;;  %v2674_v8 = vmul.f32 %v3430_v59, %v2590_v60 }
 0x471   :  { %v3432_v18 = vpop.eup %3431 }
 0x472   :  { %v2675_v33 = vmul.f32 %v3432_v18, %v2591_v48  ;;  %v2676_v54 = vmul.f32 %v3432_v18, %v2592_v43  ;;  %v2757_v1 = vadd.f32 %v2673_v44, %v2505_v0  ;;  %v2758_v24 = vadd.f32 %v2674_v8, %v2506_v58 }
 0x474   :  { %v2759_v28 = vadd.f32 %v2675_v33, %v2507_v53  ;;  %v2760_v9 = vadd.f32 %v2676_v54, %v2508_v50  ;;  %2841 = vst [vmem:[%s6564_s8 + $0x270] sm:$0xff] %v2757_v1  ;;  %2842 = vst.msk [vmem:[%s6564_s8 + $0x278] sm:$0xff] %vm1712_vm5, %v2758_v24 }
 0x476   :  { %v3434_v35 = vpop.eup %3433  ;;  %2843 = vst [vmem:[%s6564_s8 + $0x280] sm:$0xff] %v2759_v28  ;;  %2844 = vst.msk [vmem:[%s6564_s8 + $0x288] sm:$0xff] %vm1712_vm5, %v2760_v9 }
 0x477   :  { %v2677_v4 = vmul.f32 %v3434_v35, %v2593_v20  ;;  %v2678_v10 = vmul.f32 %v3434_v35, %v2594_v19 }
 0x479   :  { %v2761_v57 = vadd.f32 %v2677_v4, %v2509_v3  ;;  %v2762_v27 = vadd.f32 %v2678_v10, %v2510_v16 }
 0x47b   :  { %2845 = vst [vmem:[%s6564_s8 + $0x290] sm:$0xff] %v2761_v57  ;;  %2846 = vst.msk [vmem:[%s6564_s8 + $0x298] sm:$0xff] %vm1712_vm5, %v2762_v27 }

</bundles_post_ra>
